<compile_context>
chip_gen: v5e
topology: v5e:2x2
jax: 0.10.0
libtpu: 0.0.40
codegen_flags: <defaults>
</compile_context>

<pallas_src>
import math
import numpy as np
import jax
import jax.numpy as jnp
from jax.experimental import pallas as pl
from jax.experimental.pallas import tpu as pltpu


# ------------------------------- kernel -------------------------------------
def _ae_lstm_kernel(x_ref,                       # (T, Bt, F)  time-major batch tile
                    wie_ref, whe_ref, be_ref,    # encoder: (F,4H), (H,4H), (1,4H)
                    wid_ref, whd_ref, bd_ref,    # decoder: (H,4H), (H,4H), (1,4H)
                    wl_ref, bl_ref,              # linear : (H,F), (1,F)
                    out_ref,                     # (T, Bt, F)
                    xg_ref,                      # scratch: (T*Bt, 4H) encoder pre-gates
                    hdec_ref):                   # scratch: (T*Bt, H)  decoder hiddens
    T, Bt, F = x_ref.shape
    H = whe_ref.shape[0]                         # (lane-padded) hidden size
    whe = whe_ref[...]
    whd = whd_ref[...]

    # (1) Encoder input projection hoisted out of the recurrence (bias folded in).
    x2d = x_ref[...].reshape(T * Bt, F)
    xg_ref[...] = (jnp.dot(x2d, wie_ref[...],
                           preferred_element_type=jnp.float32) + be_ref[...])

    def gate_math(pre, h, whh, c):
        # pre already contains x_t @ W_ih + (b_ih + b_hh); PyTorch gate order i,f,g,o.
        gates = pre + jnp.dot(h, whh, preferred_element_type=jnp.float32)
        if H >= 128:
            # lane-aligned per-gate activations; skip sigmoid over the g quarter
            i = jax.nn.sigmoid(gates[:, 0:H])
            f = jax.nn.sigmoid(gates[:, H:2 * H])
            o = jax.nn.sigmoid(gates[:, 3 * H:4 * H])
        else:
            sig = jax.nn.sigmoid(gates)
            i, f, o = sig[:, 0:H], sig[:, H:2 * H], sig[:, 3 * H:4 * H]
        g = jnp.tanh(gates[:, 2 * H:3 * H])
        c_new = f * c + i * g
        h_new = o * jnp.tanh(c_new)
        return h_new, c_new

    h0 = jnp.zeros((Bt, H), jnp.float32)
    c0 = jnp.zeros((Bt, H), jnp.float32)
    unroll = min(T, 8)                           # capped unroll (latency-bound body)

    # ---- Encoder recurrence: one matmul per step ----
    def enc_body(t, carry):
        h, c = carry
        row = pl.multiple_of(t * Bt, Bt)
        return gate_math(xg_ref[pl.ds(row, Bt), :], h, whe, c)

    h_enc, _ = jax.lax.fori_loop(0, T, enc_body, (h0, c0), unroll=unroll)

    # (2) Decoder input term is constant across time: compute once.
    dec_pre = (jnp.dot(h_enc, wid_ref[...],
                       preferred_element_type=jnp.float32) + bd_ref[...])

    # ---- Decoder recurrence: one matmul per step, stash hidden states ----
    def dec_body(t, carry):
        h, c = carry
        h_new, c_new = gate_math(dec_pre, h, whd, c)
        row = pl.multiple_of(t * Bt, Bt)
        hdec_ref[pl.ds(row, Bt), :] = h_new
        return (h_new, c_new)

    jax.lax.fori_loop(0, T, dec_body, (h0, c0), unroll=unroll)

    # (3) Deferred output Linear: one bulk matmul + one lane-dense store.
    y2d = (jnp.dot(hdec_ref[...], wl_ref[...],
                   preferred_element_type=jnp.float32) + bl_ref[...])
    out_ref[...] = y2d.reshape(T, Bt, F)


# ------------------------------ wrapper --------------------------------------
def _round_up(x, m):
    return -(-x // m) * m


def _physical_vmem_bytes():
    try:
        info = pltpu.get_tpu_info()
        v = getattr(info, "vmem_capacity_bytes", None)
        if v:
            return int(v)
    except Exception:
        pass
    return 64 * 1024 * 1024      # v7x per-TensorCore: most restrictive generation


def _vmem_footprint(bt, T, F, Hp):
    f32 = 4
    io = 2 * 2 * T * bt * F * f32                            # x/out tiles, double-buffered
    w = 2 * f32 * (F * 4 * Hp + 3 * Hp * 4 * Hp + 2 * 4 * Hp + Hp * F + F)
    sc = f32 * (T * bt * 4 * Hp + T * bt * Hp)               # xg + hdec scratch
    return io + w + sc


def _pick_batch_tile(B_pad, T, F, Hp, budget_bytes, max_tile):
    cands = [bt for bt in range(8, min(B_pad, max_tile) + 1, 8) if B_pad % bt == 0]
    cands.sort(reverse=True)
    for bt in cands:
        if _vmem_footprint(bt, T, F, Hp) <= budget_bytes:
            return bt
    # TODO(synk): even the smallest batch tile overflows VMEM; needs T-chunk streaming.
    return cands[-1]


def _prep_params(params, H, Hp, F):
    """Transpose / combine parameters and pad the hidden dim to Hp (exact)."""
    def pad_gate_cols(w):
        if Hp == H:
            return w
        lead = w.shape[:-1]
        w4 = w.reshape(lead + (4, H))
        pad = [(0, 0)] * (w4.ndim - 1) + [(0, Hp - H)]
        return jnp.pad(w4, pad).reshape(lead + (4 * Hp,))

    def pad_rows(w):
        if Hp == H:
            return w
        return jnp.pad(w, ((0, Hp - H), (0, 0)))

    wie = pad_gate_cols(params["w_ih_e"].T)                          # (F, 4Hp)
    whe = pad_rows(pad_gate_cols(params["w_hh_e"].T))                # (Hp, 4Hp)
    be = pad_gate_cols(params["b_ih_e"] + params["b_hh_e"]).reshape(1, 4 * Hp)
    wid = pad_rows(pad_gate_cols(params["w_ih_d"].T))                # (Hp, 4Hp)
    whd = pad_rows(pad_gate_cols(params["w_hh_d"].T))                # (Hp, 4Hp)
    bd = pad_gate_cols(params["b_ih_d"] + params["b_hh_d"]).reshape(1, 4 * Hp)
    wl = pad_rows(params["w_lin"].T)                                 # (Hp, F)
    bl = params["b_lin"].reshape(1, F)
    return wie, whe, be, wid, whd, bd, wl, bl


def autoencoder_lstm_expo(x_btf, params, *, max_batch_tile=256):
    """x_btf: (B, T, F) float32 (PyTorch batch_first). Returns (B, T, F)."""
    B, T, F = x_btf.shape
    H = params["w_hh_e"].shape[1]
    Hp = _round_up(H, 128)               # lane-dense hidden dim (padded units stay 0)
    B_pad = _round_up(B, 8)              # fill vreg sublanes / MXU rows

    physical = _physical_vmem_bytes()
    budget = physical - 16 * 1024 * 1024            # leave compiler headroom
    Bt = _pick_batch_tile(B_pad, T, F, Hp, budget, max_batch_tile)
    want = int(1.25 * _vmem_footprint(Bt, T, F, Hp)) + (4 << 20)
    vmem_limit = int(min(budget, max(32 << 20, want)))

    wie, whe, be, wid, whd, bd, wl, bl = _prep_params(params, H, Hp, F)

    # Time-major layout for contiguous per-step row blocks inside the kernel.
    # TODO(synk): for large shapes, pass x batch-major + strided sublane slices to
    # avoid this extra HBM round trip.
    x_tbf = jnp.transpose(x_btf, (1, 0, 2))
    if B_pad != B:
        x_tbf = jnp.pad(x_tbf, ((0, 0), (0, B_pad - B), (0, 0)))

    def full_spec(shape):
        return pl.BlockSpec(shape, lambda b, _s=shape: (0,) * len(_s))

    grid = (B_pad // Bt,)
    out3d = pl.pallas_call(
        _ae_lstm_kernel,
        out_shape=jax.ShapeDtypeStruct((T, B_pad, F), jnp.float32),
        grid=grid,
        in_specs=[pl.BlockSpec((T, Bt, F), lambda b: (0, b, 0)),
                  full_spec(wie.shape), full_spec(whe.shape), full_spec(be.shape),
                  full_spec(wid.shape), full_spec(whd.shape), full_spec(bd.shape),
                  full_spec(wl.shape), full_spec(bl.shape)],
        out_specs=pl.BlockSpec((T, Bt, F), lambda b: (0, b, 0)),
        scratch_shapes=[pltpu.VMEM((T * Bt, 4 * Hp), jnp.float32),
                        pltpu.VMEM((T * Bt, Hp), jnp.float32)],
        compiler_params=pltpu.CompilerParams(
            dimension_semantics=("parallel",),
            vmem_limit_bytes=vmem_limit),
    )(x_tbf, wie, whe, be, wid, whd, bd, wl, bl)

    out_tbf = out3d[:, :B, :]
    return jnp.transpose(out_tbf, (1, 0, 2))      # back to (B, T, F)


# ---------------- pure-JAX reference (for correctness check) ----------------
def _lstm_ref(x_btf, wih, whh, bih, bhh):
    B, T, F = x_btf.shape
    H = whh.shape[1]
    h = jnp.zeros((B, H), jnp.float32)
    c = jnp.zeros((B, H), jnp.float32)

    def step(carry, x_t):
        h, c = carry
        g = x_t @ wih.T + bih + h @ whh.T + bhh
        i = jax.nn.sigmoid(g[:, 0:H])
        f = jax.nn.sigmoid(g[:, H:2 * H])
        gg = jnp.tanh(g[:, 2 * H:3 * H])
        o = jax.nn.sigmoid(g[:, 3 * H:4 * H])
        c = f * c + i * gg
        h = o * jnp.tanh(c)
        return (h, c), h

    (h, c), hs = jax.lax.scan(step, (h, c), jnp.transpose(x_btf, (1, 0, 2)))
    return jnp.transpose(hs, (1, 0, 2)), h


def _reference(x_btf, p):
    _, h_enc = _lstm_ref(x_btf, p["w_ih_e"], p["w_hh_e"], p["b_ih_e"], p["b_hh_e"])
    B, T, F = x_btf.shape
    dec_in = jnp.broadcast_to(h_enc[:, None, :], (B, T, h_enc.shape[1]))
    dec_out, _ = _lstm_ref(dec_in, p["w_ih_d"], p["w_hh_d"], p["b_ih_d"], p["b_hh_d"])
    return dec_out @ p["w_lin"].T + p["b_lin"]


def _init_params(key, hidden_size, nb_feature):
    H, F = hidden_size, nb_feature
    k = 1.0 / math.sqrt(H)
    keys = jax.random.split(key, 10)
    u = lambda kk, shape, bound: jax.random.uniform(kk, shape, jnp.float32, -bound, bound)
    return {
        "w_ih_e": u(keys[0], (4 * H, F), k),
        "w_hh_e": u(keys[1], (4 * H, H), k),
        "b_ih_e": u(keys[2], (4 * H,), k),
        "b_hh_e": u(keys[3], (4 * H,), k),
        "w_ih_d": u(keys[4], (4 * H, H), k),
        "w_hh_d": u(keys[5], (4 * H, H), k),
        "b_ih_d": u(keys[6], (4 * H,), k),
        "b_hh_d": u(keys[7], (4 * H,), k),
        "w_lin": u(keys[8], (F, H), 1.0 / math.sqrt(H)),
        "b_lin": u(keys[9], (F,), 1.0 / math.sqrt(H)),
    }


if __name__ == "__main__":
    B, T, F, H = 2, 8, 4, 32
    key = jax.random.PRNGKey(0)
    kx, kp = jax.random.split(key)
    x = jax.random.normal(kx, (B, T, F), jnp.float32)    # (batch, seq, nb_feature)
    params = _init_params(kp, hidden_size=H, nb_feature=F)

    out = jax.block_until_ready(autoencoder_lstm_expo(x, params))
    ref = jax.block_until_ready(_reference(x, params))

    assert out.shape == (B, T, F)
    np.testing.assert_allclose(np.asarray(out), np.asarray(ref), rtol=1e-5, atol=1e-5)
    print("KERNEL_OK")
</pallas_src>

<mosaic_0001>
module attributes {stable_mosaic.version = 11 : i64} {
  func.func @_ae_lstm_kernel(%arg0: i32, %arg1: memref<8x8x4xf32, #tpu.memory_space<vmem>>, %arg2: memref<4x512xf32, #tpu.memory_space<vmem>>, %arg3: memref<128x512xf32, #tpu.memory_space<vmem>>, %arg4: memref<1x512xf32, #tpu.memory_space<vmem>>, %arg5: memref<128x512xf32, #tpu.memory_space<vmem>>, %arg6: memref<128x512xf32, #tpu.memory_space<vmem>>, %arg7: memref<1x512xf32, #tpu.memory_space<vmem>>, %arg8: memref<128x4xf32, #tpu.memory_space<vmem>>, %arg9: memref<1x4xf32, #tpu.memory_space<vmem>>, %arg10: memref<8x8x4xf32, #tpu.memory_space<vmem>>, %arg11: memref<64x512xf32, #tpu.memory_space<vmem>>, %arg12: memref<64x128xf32, #tpu.memory_space<vmem>>) attributes {dimension_semantics = [#tpu.dimension_semantics<parallel>], iteration_bounds = array<i64: 1>, scalar_prefetch = 0 : i64, scratch_operands = 2 : i64, tpu.core_type = #tpu.core_type<tc>, window_params = [{transform_indices = @transform_0, window_bounds = array<i64: 8, 8, 4>}, {pipeline_mode = #tpu.pipeline_mode<synchronous>, transform_indices = @transform_1, window_bounds = array<i64: 4, 512>}, {pipeline_mode = #tpu.pipeline_mode<synchronous>, transform_indices = @transform_2, window_bounds = array<i64: 128, 512>}, {pipeline_mode = #tpu.pipeline_mode<synchronous>, transform_indices = @transform_3, window_bounds = array<i64: 1, 512>}, {pipeline_mode = #tpu.pipeline_mode<synchronous>, transform_indices = @transform_4, window_bounds = array<i64: 128, 512>}, {pipeline_mode = #tpu.pipeline_mode<synchronous>, transform_indices = @transform_5, window_bounds = array<i64: 128, 512>}, {pipeline_mode = #tpu.pipeline_mode<synchronous>, transform_indices = @transform_6, window_bounds = array<i64: 1, 512>}, {pipeline_mode = #tpu.pipeline_mode<synchronous>, transform_indices = @transform_7, window_bounds = array<i64: 128, 4>}, {pipeline_mode = #tpu.pipeline_mode<synchronous>, transform_indices = @transform_8, window_bounds = array<i64: 1, 4>}, {transform_indices = @transform_9, window_bounds = array<i64: 8, 8, 4>}]} {
    %c0 = arith.constant 0 : index
    %c0_0 = arith.constant 0 : index
    %0 = vector.load %arg3[%c0, %c0_0] : memref<128x512xf32, #tpu.memory_space<vmem>>, vector<128x512xf32>
    %c0_1 = arith.constant 0 : index
    %c0_2 = arith.constant 0 : index
    %1 = vector.load %arg6[%c0_1, %c0_2] : memref<128x512xf32, #tpu.memory_space<vmem>>, vector<128x512xf32>
    %c0_3 = arith.constant 0 : index
    %c0_4 = arith.constant 0 : index
    %c0_5 = arith.constant 0 : index
    %2 = vector.load %arg1[%c0_3, %c0_4, %c0_5] : memref<8x8x4xf32, #tpu.memory_space<vmem>>, vector<8x8x4xf32>
    %3 = vector.shape_cast %2 : vector<8x8x4xf32> to vector<64x4xf32>
    %c0_6 = arith.constant 0 : index
    %c0_7 = arith.constant 0 : index
    %4 = vector.load %arg2[%c0_6, %c0_7] : memref<4x512xf32, #tpu.memory_space<vmem>>, vector<4x512xf32>
    %cst = arith.constant dense<0.000000e+00> : vector<64x512xf32>
    %5 = tpu.matmul %3, %4, %cst {dimension_numbers = #tpu.dot_dimension_numbers<[1], [0], [0], [1], [0, 0, 1, 1], [], []>} : vector<64x4xf32>, vector<4x512xf32>, vector<64x512xf32> -> vector<64x512xf32>
    %c0_8 = arith.constant 0 : index
    %c0_9 = arith.constant 0 : index
    %6 = vector.load %arg4[%c0_8, %c0_9] : memref<1x512xf32, #tpu.memory_space<vmem>>, vector<1x512xf32>
    %7 = vector.broadcast %6 : vector<1x512xf32> to vector<64x512xf32>
    %8 = arith.addf %5, %7 : vector<64x512xf32>
    %c0_10 = arith.constant 0 : index
    %c0_11 = arith.constant 0 : index
    %9 = vector.load %arg11[%c0_10, %c0_11] : memref<64x512xf32, #tpu.memory_space<vmem>>, vector<64x512xf32>
    tpu.vector_store %arg11[%c0_10, %c0_11], %8 {strides = array<i32>} : memref<64x512xf32, #tpu.memory_space<vmem>>, vector<64x512xf32>,
    %cst_12 = arith.constant 0.000000e+00 : f32
    %10 = vector.broadcast %cst_12 : f32 to vector<8x128xf32>
    %cst_13 = arith.constant 0.000000e+00 : f32
    %11 = vector.broadcast %cst_13 : f32 to vector<8x128xf32>
    %c0_i32 = arith.constant 0 : i32
    %c8_i32 = arith.constant 8 : i32
    %12 = arith.muli %c0_i32, %c8_i32 : i32
    %13 = tpu.assume_multiple %12, 8 : i32
    %14 = arith.index_cast %13 : i32 to index
    %c0_14 = arith.constant 0 : index
    %15 = vector.load %arg11[%14, %c0_14] : memref<64x512xf32, #tpu.memory_space<vmem>>, vector<8x512xf32>
    %cst_15 = arith.constant dense<0.000000e+00> : vector<8x512xf32>
    %16 = tpu.matmul %10, %0, %cst_15 {dimension_numbers = #tpu.dot_dimension_numbers<[1], [0], [0], [1], [0, 0, 1, 1], [], []>} : vector<8x128xf32>, vector<128x512xf32>, vector<8x512xf32> -> vector<8x512xf32>
    %17 = arith.addf %15, %16 : vector<8x512xf32>
    %18 = vector.extract_strided_slice %17 {offsets = [0, 0], sizes = [8, 128], strides = [1, 1]} : vector<8x512xf32> to vector<8x128xf32>
    %19 = arith.negf %18 : vector<8x128xf32>
    %20 = math.exp %19 : vector<8x128xf32>
    %cst_16 = arith.constant 1.000000e+00 : f32
    %21 = vector.broadcast %cst_16 : f32 to vector<8x128xf32>
    %22 = arith.addf %21, %20 : vector<8x128xf32>
    %23 = arith.divf %21, %22 : vector<8x128xf32>
    %24 = vector.extract_strided_slice %17 {offsets = [0, 128], sizes = [8, 128], strides = [1, 1]} : vector<8x512xf32> to vector<8x128xf32>
    %25 = arith.negf %24 : vector<8x128xf32>
    %26 = math.exp %25 : vector<8x128xf32>
    %cst_17 = arith.constant 1.000000e+00 : f32
    %27 = vector.broadcast %cst_17 : f32 to vector<8x128xf32>
    %28 = arith.addf %27, %26 : vector<8x128xf32>
    %29 = arith.divf %27, %28 : vector<8x128xf32>
    %30 = vector.extract_strided_slice %17 {offsets = [0, 384], sizes = [8, 128], strides = [1, 1]} : vector<8x512xf32> to vector<8x128xf32>
    %31 = arith.negf %30 : vector<8x128xf32>
    %32 = math.exp %31 : vector<8x128xf32>
    %cst_18 = arith.constant 1.000000e+00 : f32
    %33 = vector.broadcast %cst_18 : f32 to vector<8x128xf32>
    %34 = arith.addf %33, %32 : vector<8x128xf32>
    %35 = arith.divf %33, %34 : vector<8x128xf32>
    %36 = vector.extract_strided_slice %17 {offsets = [0, 256], sizes = [8, 128], strides = [1, 1]} : vector<8x512xf32> to vector<8x128xf32>
    %37 = math.tanh %36 : vector<8x128xf32>
    %38 = arith.mulf %29, %11 : vector<8x128xf32>
    %39 = arith.mulf %23, %37 : vector<8x128xf32>
    %40 = arith.addf %38, %39 : vector<8x128xf32>
    %41 = math.tanh %40 : vector<8x128xf32>
    %42 = arith.mulf %35, %41 : vector<8x128xf32>
    %c1_i32 = arith.constant 1 : i32
    %c8_i32_19 = arith.constant 8 : i32
    %43 = arith.muli %c1_i32, %c8_i32_19 : i32
    %44 = tpu.assume_multiple %43, 8 : i32
    %45 = arith.index_cast %44 : i32 to index
    %c0_20 = arith.constant 0 : index
    %46 = vector.load %arg11[%45, %c0_20] : memref<64x512xf32, #tpu.memory_space<vmem>>, vector<8x512xf32>
    %cst_21 = arith.constant dense<0.000000e+00> : vector<8x512xf32>
    %47 = tpu.matmul %42, %0, %cst_21 {dimension_numbers = #tpu.dot_dimension_numbers<[1], [0], [0], [1], [0, 0, 1, 1], [], []>} : vector<8x128xf32>, vector<128x512xf32>, vector<8x512xf32> -> vector<8x512xf32>
    %48 = arith.addf %46, %47 : vector<8x512xf32>
    %49 = vector.extract_strided_slice %48 {offsets = [0, 0], sizes = [8, 128], strides = [1, 1]} : vector<8x512xf32> to vector<8x128xf32>
    %50 = arith.negf %49 : vector<8x128xf32>
    %51 = math.exp %50 : vector<8x128xf32>
    %cst_22 = arith.constant 1.000000e+00 : f32
    %52 = vector.broadcast %cst_22 : f32 to vector<8x128xf32>
    %53 = arith.addf %52, %51 : vector<8x128xf32>
    %54 = arith.divf %52, %53 : vector<8x128xf32>
    %55 = vector.extract_strided_slice %48 {offsets = [0, 128], sizes = [8, 128], strides = [1, 1]} : vector<8x512xf32> to vector<8x128xf32>
    %56 = arith.negf %55 : vector<8x128xf32>
    %57 = math.exp %56 : vector<8x128xf32>
    %cst_23 = arith.constant 1.000000e+00 : f32
    %58 = vector.broadcast %cst_23 : f32 to vector<8x128xf32>
    %59 = arith.addf %58, %57 : vector<8x128xf32>
    %60 = arith.divf %58, %59 : vector<8x128xf32>
    %61 = vector.extract_strided_slice %48 {offsets = [0, 384], sizes = [8, 128], strides = [1, 1]} : vector<8x512xf32> to vector<8x128xf32>
    %62 = arith.negf %61 : vector<8x128xf32>
    %63 = math.exp %62 : vector<8x128xf32>
    %cst_24 = arith.constant 1.000000e+00 : f32
    %64 = vector.broadcast %cst_24 : f32 to vector<8x128xf32>
    %65 = arith.addf %64, %63 : vector<8x128xf32>
    %66 = arith.divf %64, %65 : vector<8x128xf32>
    %67 = vector.extract_strided_slice %48 {offsets = [0, 256], sizes = [8, 128], strides = [1, 1]} : vector<8x512xf32> to vector<8x128xf32>
    %68 = math.tanh %67 : vector<8x128xf32>
    %69 = arith.mulf %60, %40 : vector<8x128xf32>
    %70 = arith.mulf %54, %68 : vector<8x128xf32>
    %71 = arith.addf %69, %70 : vector<8x128xf32>
    %72 = math.tanh %71 : vector<8x128xf32>
    %73 = arith.mulf %66, %72 : vector<8x128xf32>
    %c2_i32 = arith.constant 2 : i32
    %c8_i32_25 = arith.constant 8 : i32
    %74 = arith.muli %c2_i32, %c8_i32_25 : i32
    %75 = tpu.assume_multiple %74, 8 : i32
    %76 = arith.index_cast %75 : i32 to index
    %c0_26 = arith.constant 0 : index
    %77 = vector.load %arg11[%76, %c0_26] : memref<64x512xf32, #tpu.memory_space<vmem>>, vector<8x512xf32>
    %cst_27 = arith.constant dense<0.000000e+00> : vector<8x512xf32>
    %78 = tpu.matmul %73, %0, %cst_27 {dimension_numbers = #tpu.dot_dimension_numbers<[1], [0], [0], [1], [0, 0, 1, 1], [], []>} : vector<8x128xf32>, vector<128x512xf32>, vector<8x512xf32> -> vector<8x512xf32>
    %79 = arith.addf %77, %78 : vector<8x512xf32>
    %80 = vector.extract_strided_slice %79 {offsets = [0, 0], sizes = [8, 128], strides = [1, 1]} : vector<8x512xf32> to vector<8x128xf32>
    %81 = arith.negf %80 : vector<8x128xf32>
    %82 = math.exp %81 : vector<8x128xf32>
    %cst_28 = arith.constant 1.000000e+00 : f32
    %83 = vector.broadcast %cst_28 : f32 to vector<8x128xf32>
    %84 = arith.addf %83, %82 : vector<8x128xf32>
    %85 = arith.divf %83, %84 : vector<8x128xf32>
    %86 = vector.extract_strided_slice %79 {offsets = [0, 128], sizes = [8, 128], strides = [1, 1]} : vector<8x512xf32> to vector<8x128xf32>
    %87 = arith.negf %86 : vector<8x128xf32>
    %88 = math.exp %87 : vector<8x128xf32>
    %cst_29 = arith.constant 1.000000e+00 : f32
    %89 = vector.broadcast %cst_29 : f32 to vector<8x128xf32>
    %90 = arith.addf %89, %88 : vector<8x128xf32>
    %91 = arith.divf %89, %90 : vector<8x128xf32>
    %92 = vector.extract_strided_slice %79 {offsets = [0, 384], sizes = [8, 128], strides = [1, 1]} : vector<8x512xf32> to vector<8x128xf32>
    %93 = arith.negf %92 : vector<8x128xf32>
    %94 = math.exp %93 : vector<8x128xf32>
    %cst_30 = arith.constant 1.000000e+00 : f32
    %95 = vector.broadcast %cst_30 : f32 to vector<8x128xf32>
    %96 = arith.addf %95, %94 : vector<8x128xf32>
    %97 = arith.divf %95, %96 : vector<8x128xf32>
    %98 = vector.extract_strided_slice %79 {offsets = [0, 256], sizes = [8, 128], strides = [1, 1]} : vector<8x512xf32> to vector<8x128xf32>
    %99 = math.tanh %98 : vector<8x128xf32>
    %100 = arith.mulf %91, %71 : vector<8x128xf32>
    %101 = arith.mulf %85, %99 : vector<8x128xf32>
    %102 = arith.addf %100, %101 : vector<8x128xf32>
    %103 = math.tanh %102 : vector<8x128xf32>
    %104 = arith.mulf %97, %103 : vector<8x128xf32>
    %c3_i32 = arith.constant 3 : i32
    %c8_i32_31 = arith.constant 8 : i32
    %105 = arith.muli %c3_i32, %c8_i32_31 : i32
    %106 = tpu.assume_multiple %105, 8 : i32
    %107 = arith.index_cast %106 : i32 to index
    %c0_32 = arith.constant 0 : index
    %108 = vector.load %arg11[%107, %c0_32] : memref<64x512xf32, #tpu.memory_space<vmem>>, vector<8x512xf32>
    %cst_33 = arith.constant dense<0.000000e+00> : vector<8x512xf32>
    %109 = tpu.matmul %104, %0, %cst_33 {dimension_numbers = #tpu.dot_dimension_numbers<[1], [0], [0], [1], [0, 0, 1, 1], [], []>} : vector<8x128xf32>, vector<128x512xf32>, vector<8x512xf32> -> vector<8x512xf32>
    %110 = arith.addf %108, %109 : vector<8x512xf32>
    %111 = vector.extract_strided_slice %110 {offsets = [0, 0], sizes = [8, 128], strides = [1, 1]} : vector<8x512xf32> to vector<8x128xf32>
    %112 = arith.negf %111 : vector<8x128xf32>
    %113 = math.exp %112 : vector<8x128xf32>
    %cst_34 = arith.constant 1.000000e+00 : f32
    %114 = vector.broadcast %cst_34 : f32 to vector<8x128xf32>
    %115 = arith.addf %114, %113 : vector<8x128xf32>
    %116 = arith.divf %114, %115 : vector<8x128xf32>
    %117 = vector.extract_strided_slice %110 {offsets = [0, 128], sizes = [8, 128], strides = [1, 1]} : vector<8x512xf32> to vector<8x128xf32>
    %118 = arith.negf %117 : vector<8x128xf32>
    %119 = math.exp %118 : vector<8x128xf32>
    %cst_35 = arith.constant 1.000000e+00 : f32
    %120 = vector.broadcast %cst_35 : f32 to vector<8x128xf32>
    %121 = arith.addf %120, %119 : vector<8x128xf32>
    %122 = arith.divf %120, %121 : vector<8x128xf32>
    %123 = vector.extract_strided_slice %110 {offsets = [0, 384], sizes = [8, 128], strides = [1, 1]} : vector<8x512xf32> to vector<8x128xf32>
    %124 = arith.negf %123 : vector<8x128xf32>
    %125 = math.exp %124 : vector<8x128xf32>
    %cst_36 = arith.constant 1.000000e+00 : f32
    %126 = vector.broadcast %cst_36 : f32 to vector<8x128xf32>
    %127 = arith.addf %126, %125 : vector<8x128xf32>
    %128 = arith.divf %126, %127 : vector<8x128xf32>
    %129 = vector.extract_strided_slice %110 {offsets = [0, 256], sizes = [8, 128], strides = [1, 1]} : vector<8x512xf32> to vector<8x128xf32>
    %130 = math.tanh %129 : vector<8x128xf32>
    %131 = arith.mulf %122, %102 : vector<8x128xf32>
    %132 = arith.mulf %116, %130 : vector<8x128xf32>
    %133 = arith.addf %131, %132 : vector<8x128xf32>
    %134 = math.tanh %133 : vector<8x128xf32>
    %135 = arith.mulf %128, %134 : vector<8x128xf32>
    %c4_i32 = arith.constant 4 : i32
    %c8_i32_37 = arith.constant 8 : i32
    %136 = arith.muli %c4_i32, %c8_i32_37 : i32
    %137 = tpu.assume_multiple %136, 8 : i32
    %138 = arith.index_cast %137 : i32 to index
    %c0_38 = arith.constant 0 : index
    %139 = vector.load %arg11[%138, %c0_38] : memref<64x512xf32, #tpu.memory_space<vmem>>, vector<8x512xf32>
    %cst_39 = arith.constant dense<0.000000e+00> : vector<8x512xf32>
    %140 = tpu.matmul %135, %0, %cst_39 {dimension_numbers = #tpu.dot_dimension_numbers<[1], [0], [0], [1], [0, 0, 1, 1], [], []>} : vector<8x128xf32>, vector<128x512xf32>, vector<8x512xf32> -> vector<8x512xf32>
    %141 = arith.addf %139, %140 : vector<8x512xf32>
    %142 = vector.extract_strided_slice %141 {offsets = [0, 0], sizes = [8, 128], strides = [1, 1]} : vector<8x512xf32> to vector<8x128xf32>
    %143 = arith.negf %142 : vector<8x128xf32>
    %144 = math.exp %143 : vector<8x128xf32>
    %cst_40 = arith.constant 1.000000e+00 : f32
    %145 = vector.broadcast %cst_40 : f32 to vector<8x128xf32>
    %146 = arith.addf %145, %144 : vector<8x128xf32>
    %147 = arith.divf %145, %146 : vector<8x128xf32>
    %148 = vector.extract_strided_slice %141 {offsets = [0, 128], sizes = [8, 128], strides = [1, 1]} : vector<8x512xf32> to vector<8x128xf32>
    %149 = arith.negf %148 : vector<8x128xf32>
    %150 = math.exp %149 : vector<8x128xf32>
    %cst_41 = arith.constant 1.000000e+00 : f32
    %151 = vector.broadcast %cst_41 : f32 to vector<8x128xf32>
    %152 = arith.addf %151, %150 : vector<8x128xf32>
    %153 = arith.divf %151, %152 : vector<8x128xf32>
    %154 = vector.extract_strided_slice %141 {offsets = [0, 384], sizes = [8, 128], strides = [1, 1]} : vector<8x512xf32> to vector<8x128xf32>
    %155 = arith.negf %154 : vector<8x128xf32>
    %156 = math.exp %155 : vector<8x128xf32>
    %cst_42 = arith.constant 1.000000e+00 : f32
    %157 = vector.broadcast %cst_42 : f32 to vector<8x128xf32>
    %158 = arith.addf %157, %156 : vector<8x128xf32>
    %159 = arith.divf %157, %158 : vector<8x128xf32>
    %160 = vector.extract_strided_slice %141 {offsets = [0, 256], sizes = [8, 128], strides = [1, 1]} : vector<8x512xf32> to vector<8x128xf32>
    %161 = math.tanh %160 : vector<8x128xf32>
    %162 = arith.mulf %153, %133 : vector<8x128xf32>
    %163 = arith.mulf %147, %161 : vector<8x128xf32>
    %164 = arith.addf %162, %163 : vector<8x128xf32>
    %165 = math.tanh %164 : vector<8x128xf32>
    %166 = arith.mulf %159, %165 : vector<8x128xf32>
    %c5_i32 = arith.constant 5 : i32
    %c8_i32_43 = arith.constant 8 : i32
    %167 = arith.muli %c5_i32, %c8_i32_43 : i32
    %168 = tpu.assume_multiple %167, 8 : i32
    %169 = arith.index_cast %168 : i32 to index
    %c0_44 = arith.constant 0 : index
    %170 = vector.load %arg11[%169, %c0_44] : memref<64x512xf32, #tpu.memory_space<vmem>>, vector<8x512xf32>
    %cst_45 = arith.constant dense<0.000000e+00> : vector<8x512xf32>
    %171 = tpu.matmul %166, %0, %cst_45 {dimension_numbers = #tpu.dot_dimension_numbers<[1], [0], [0], [1], [0, 0, 1, 1], [], []>} : vector<8x128xf32>, vector<128x512xf32>, vector<8x512xf32> -> vector<8x512xf32>
    %172 = arith.addf %170, %171 : vector<8x512xf32>
    %173 = vector.extract_strided_slice %172 {offsets = [0, 0], sizes = [8, 128], strides = [1, 1]} : vector<8x512xf32> to vector<8x128xf32>
    %174 = arith.negf %173 : vector<8x128xf32>
    %175 = math.exp %174 : vector<8x128xf32>
    %cst_46 = arith.constant 1.000000e+00 : f32
    %176 = vector.broadcast %cst_46 : f32 to vector<8x128xf32>
    %177 = arith.addf %176, %175 : vector<8x128xf32>
    %178 = arith.divf %176, %177 : vector<8x128xf32>
    %179 = vector.extract_strided_slice %172 {offsets = [0, 128], sizes = [8, 128], strides = [1, 1]} : vector<8x512xf32> to vector<8x128xf32>
    %180 = arith.negf %179 : vector<8x128xf32>
    %181 = math.exp %180 : vector<8x128xf32>
    %cst_47 = arith.constant 1.000000e+00 : f32
    %182 = vector.broadcast %cst_47 : f32 to vector<8x128xf32>
    %183 = arith.addf %182, %181 : vector<8x128xf32>
    %184 = arith.divf %182, %183 : vector<8x128xf32>
    %185 = vector.extract_strided_slice %172 {offsets = [0, 384], sizes = [8, 128], strides = [1, 1]} : vector<8x512xf32> to vector<8x128xf32>
    %186 = arith.negf %185 : vector<8x128xf32>
    %187 = math.exp %186 : vector<8x128xf32>
    %cst_48 = arith.constant 1.000000e+00 : f32
    %188 = vector.broadcast %cst_48 : f32 to vector<8x128xf32>
    %189 = arith.addf %188, %187 : vector<8x128xf32>
    %190 = arith.divf %188, %189 : vector<8x128xf32>
    %191 = vector.extract_strided_slice %172 {offsets = [0, 256], sizes = [8, 128], strides = [1, 1]} : vector<8x512xf32> to vector<8x128xf32>
    %192 = math.tanh %191 : vector<8x128xf32>
    %193 = arith.mulf %184, %164 : vector<8x128xf32>
    %194 = arith.mulf %178, %192 : vector<8x128xf32>
    %195 = arith.addf %193, %194 : vector<8x128xf32>
    %196 = math.tanh %195 : vector<8x128xf32>
    %197 = arith.mulf %190, %196 : vector<8x128xf32>
    %c6_i32 = arith.constant 6 : i32
    %c8_i32_49 = arith.constant 8 : i32
    %198 = arith.muli %c6_i32, %c8_i32_49 : i32
    %199 = tpu.assume_multiple %198, 8 : i32
    %200 = arith.index_cast %199 : i32 to index
    %c0_50 = arith.constant 0 : index
    %201 = vector.load %arg11[%200, %c0_50] : memref<64x512xf32, #tpu.memory_space<vmem>>, vector<8x512xf32>
    %cst_51 = arith.constant dense<0.000000e+00> : vector<8x512xf32>
    %202 = tpu.matmul %197, %0, %cst_51 {dimension_numbers = #tpu.dot_dimension_numbers<[1], [0], [0], [1], [0, 0, 1, 1], [], []>} : vector<8x128xf32>, vector<128x512xf32>, vector<8x512xf32> -> vector<8x512xf32>
    %203 = arith.addf %201, %202 : vector<8x512xf32>
    %204 = vector.extract_strided_slice %203 {offsets = [0, 0], sizes = [8, 128], strides = [1, 1]} : vector<8x512xf32> to vector<8x128xf32>
    %205 = arith.negf %204 : vector<8x128xf32>
    %206 = math.exp %205 : vector<8x128xf32>
    %cst_52 = arith.constant 1.000000e+00 : f32
    %207 = vector.broadcast %cst_52 : f32 to vector<8x128xf32>
    %208 = arith.addf %207, %206 : vector<8x128xf32>
    %209 = arith.divf %207, %208 : vector<8x128xf32>
    %210 = vector.extract_strided_slice %203 {offsets = [0, 128], sizes = [8, 128], strides = [1, 1]} : vector<8x512xf32> to vector<8x128xf32>
    %211 = arith.negf %210 : vector<8x128xf32>
    %212 = math.exp %211 : vector<8x128xf32>
    %cst_53 = arith.constant 1.000000e+00 : f32
    %213 = vector.broadcast %cst_53 : f32 to vector<8x128xf32>
    %214 = arith.addf %213, %212 : vector<8x128xf32>
    %215 = arith.divf %213, %214 : vector<8x128xf32>
    %216 = vector.extract_strided_slice %203 {offsets = [0, 384], sizes = [8, 128], strides = [1, 1]} : vector<8x512xf32> to vector<8x128xf32>
    %217 = arith.negf %216 : vector<8x128xf32>
    %218 = math.exp %217 : vector<8x128xf32>
    %cst_54 = arith.constant 1.000000e+00 : f32
    %219 = vector.broadcast %cst_54 : f32 to vector<8x128xf32>
    %220 = arith.addf %219, %218 : vector<8x128xf32>
    %221 = arith.divf %219, %220 : vector<8x128xf32>
    %222 = vector.extract_strided_slice %203 {offsets = [0, 256], sizes = [8, 128], strides = [1, 1]} : vector<8x512xf32> to vector<8x128xf32>
    %223 = math.tanh %222 : vector<8x128xf32>
    %224 = arith.mulf %215, %195 : vector<8x128xf32>
    %225 = arith.mulf %209, %223 : vector<8x128xf32>
    %226 = arith.addf %224, %225 : vector<8x128xf32>
    %227 = math.tanh %226 : vector<8x128xf32>
    %228 = arith.mulf %221, %227 : vector<8x128xf32>
    %c7_i32 = arith.constant 7 : i32
    %c8_i32_55 = arith.constant 8 : i32
    %229 = arith.muli %c7_i32, %c8_i32_55 : i32
    %230 = tpu.assume_multiple %229, 8 : i32
    %231 = arith.index_cast %230 : i32 to index
    %c0_56 = arith.constant 0 : index
    %232 = vector.load %arg11[%231, %c0_56] : memref<64x512xf32, #tpu.memory_space<vmem>>, vector<8x512xf32>
    %cst_57 = arith.constant dense<0.000000e+00> : vector<8x512xf32>
    %233 = tpu.matmul %228, %0, %cst_57 {dimension_numbers = #tpu.dot_dimension_numbers<[1], [0], [0], [1], [0, 0, 1, 1], [], []>} : vector<8x128xf32>, vector<128x512xf32>, vector<8x512xf32> -> vector<8x512xf32>
    %234 = arith.addf %232, %233 : vector<8x512xf32>
    %235 = vector.extract_strided_slice %234 {offsets = [0, 0], sizes = [8, 128], strides = [1, 1]} : vector<8x512xf32> to vector<8x128xf32>
    %236 = arith.negf %235 : vector<8x128xf32>
    %237 = math.exp %236 : vector<8x128xf32>
    %cst_58 = arith.constant 1.000000e+00 : f32
    %238 = vector.broadcast %cst_58 : f32 to vector<8x128xf32>
    %239 = arith.addf %238, %237 : vector<8x128xf32>
    %240 = arith.divf %238, %239 : vector<8x128xf32>
    %241 = vector.extract_strided_slice %234 {offsets = [0, 128], sizes = [8, 128], strides = [1, 1]} : vector<8x512xf32> to vector<8x128xf32>
    %242 = arith.negf %241 : vector<8x128xf32>
    %243 = math.exp %242 : vector<8x128xf32>
    %cst_59 = arith.constant 1.000000e+00 : f32
    %244 = vector.broadcast %cst_59 : f32 to vector<8x128xf32>
    %245 = arith.addf %244, %243 : vector<8x128xf32>
    %246 = arith.divf %244, %245 : vector<8x128xf32>
    %247 = vector.extract_strided_slice %234 {offsets = [0, 384], sizes = [8, 128], strides = [1, 1]} : vector<8x512xf32> to vector<8x128xf32>
    %248 = arith.negf %247 : vector<8x128xf32>
    %249 = math.exp %248 : vector<8x128xf32>
    %cst_60 = arith.constant 1.000000e+00 : f32
    %250 = vector.broadcast %cst_60 : f32 to vector<8x128xf32>
    %251 = arith.addf %250, %249 : vector<8x128xf32>
    %252 = arith.divf %250, %251 : vector<8x128xf32>
    %253 = vector.extract_strided_slice %234 {offsets = [0, 256], sizes = [8, 128], strides = [1, 1]} : vector<8x512xf32> to vector<8x128xf32>
    %254 = math.tanh %253 : vector<8x128xf32>
    %255 = arith.mulf %246, %226 : vector<8x128xf32>
    %256 = arith.mulf %240, %254 : vector<8x128xf32>
    %257 = arith.addf %255, %256 : vector<8x128xf32>
    %258 = math.tanh %257 : vector<8x128xf32>
    %259 = arith.mulf %252, %258 : vector<8x128xf32>
    %c8_i32_61 = arith.constant 8 : i32
    %c0_62 = arith.constant 0 : index
    %c0_63 = arith.constant 0 : index
    %260 = vector.load %arg5[%c0_62, %c0_63] : memref<128x512xf32, #tpu.memory_space<vmem>>, vector<128x512xf32>
    %cst_64 = arith.constant dense<0.000000e+00> : vector<8x512xf32>
    %261 = tpu.matmul %259, %260, %cst_64 {dimension_numbers = #tpu.dot_dimension_numbers<[1], [0], [0], [1], [0, 0, 1, 1], [], []>} : vector<8x128xf32>, vector<128x512xf32>, vector<8x512xf32> -> vector<8x512xf32>
    %c0_65 = arith.constant 0 : index
    %c0_66 = arith.constant 0 : index
    %262 = vector.load %arg7[%c0_65, %c0_66] : memref<1x512xf32, #tpu.memory_space<vmem>>, vector<1x512xf32>
    %263 = vector.broadcast %262 : vector<1x512xf32> to vector<8x512xf32>
    %264 = arith.addf %261, %263 : vector<8x512xf32>
    %c0_i32_67 = arith.constant 0 : i32
    %cst_68 = arith.constant dense<0.000000e+00> : vector<8x512xf32>
    %265 = tpu.matmul %10, %1, %cst_68 {dimension_numbers = #tpu.dot_dimension_numbers<[1], [0], [0], [1], [0, 0, 1, 1], [], []>} : vector<8x128xf32>, vector<128x512xf32>, vector<8x512xf32> -> vector<8x512xf32>
    %266 = arith.addf %264, %265 : vector<8x512xf32>
    %267 = vector.extract_strided_slice %266 {offsets = [0, 0], sizes = [8, 128], strides = [1, 1]} : vector<8x512xf32> to vector<8x128xf32>
    %268 = arith.negf %267 : vector<8x128xf32>
    %269 = math.exp %268 : vector<8x128xf32>
    %cst_69 = arith.constant 1.000000e+00 : f32
    %270 = vector.broadcast %cst_69 : f32 to vector<8x128xf32>
    %271 = arith.addf %270, %269 : vector<8x128xf32>
    %272 = arith.divf %270, %271 : vector<8x128xf32>
    %273 = vector.extract_strided_slice %266 {offsets = [0, 128], sizes = [8, 128], strides = [1, 1]} : vector<8x512xf32> to vector<8x128xf32>
    %274 = arith.negf %273 : vector<8x128xf32>
    %275 = math.exp %274 : vector<8x128xf32>
    %cst_70 = arith.constant 1.000000e+00 : f32
    %276 = vector.broadcast %cst_70 : f32 to vector<8x128xf32>
    %277 = arith.addf %276, %275 : vector<8x128xf32>
    %278 = arith.divf %276, %277 : vector<8x128xf32>
    %279 = vector.extract_strided_slice %266 {offsets = [0, 384], sizes = [8, 128], strides = [1, 1]} : vector<8x512xf32> to vector<8x128xf32>
    %280 = arith.negf %279 : vector<8x128xf32>
    %281 = math.exp %280 : vector<8x128xf32>
    %cst_71 = arith.constant 1.000000e+00 : f32
    %282 = vector.broadcast %cst_71 : f32 to vector<8x128xf32>
    %283 = arith.addf %282, %281 : vector<8x128xf32>
    %284 = arith.divf %282, %283 : vector<8x128xf32>
    %285 = vector.extract_strided_slice %266 {offsets = [0, 256], sizes = [8, 128], strides = [1, 1]} : vector<8x512xf32> to vector<8x128xf32>
    %286 = math.tanh %285 : vector<8x128xf32>
    %287 = arith.mulf %278, %11 : vector<8x128xf32>
    %288 = arith.mulf %272, %286 : vector<8x128xf32>
    %289 = arith.addf %287, %288 : vector<8x128xf32>
    %290 = math.tanh %289 : vector<8x128xf32>
    %291 = arith.mulf %284, %290 : vector<8x128xf32>
    %c8_i32_72 = arith.constant 8 : i32
    %292 = arith.muli %c0_i32_67, %c8_i32_72 : i32
    %293 = tpu.assume_multiple %292, 8 : i32
    %294 = arith.index_cast %293 : i32 to index
    %c0_73 = arith.constant 0 : index
    %295 = vector.load %arg12[%294, %c0_73] : memref<64x128xf32, #tpu.memory_space<vmem>>, vector<8x128xf32>
    tpu.vector_store %arg12[%294, %c0_73], %291 {strides = array<i32>} : memref<64x128xf32, #tpu.memory_space<vmem>>, vector<8x128xf32>,
    %c1_i32_74 = arith.constant 1 : i32
    %cst_75 = arith.constant dense<0.000000e+00> : vector<8x512xf32>
    %296 = tpu.matmul %291, %1, %cst_75 {dimension_numbers = #tpu.dot_dimension_numbers<[1], [0], [0], [1], [0, 0, 1, 1], [], []>} : vector<8x128xf32>, vector<128x512xf32>, vector<8x512xf32> -> vector<8x512xf32>
    %297 = arith.addf %264, %296 : vector<8x512xf32>
    %298 = vector.extract_strided_slice %297 {offsets = [0, 0], sizes = [8, 128], strides = [1, 1]} : vector<8x512xf32> to vector<8x128xf32>
    %299 = arith.negf %298 : vector<8x128xf32>
    %300 = math.exp %299 : vector<8x128xf32>
    %cst_76 = arith.constant 1.000000e+00 : f32
    %301 = vector.broadcast %cst_76 : f32 to vector<8x128xf32>
    %302 = arith.addf %301, %300 : vector<8x128xf32>
    %303 = arith.divf %301, %302 : vector<8x128xf32>
    %304 = vector.extract_strided_slice %297 {offsets = [0, 128], sizes = [8, 128], strides = [1, 1]} : vector<8x512xf32> to vector<8x128xf32>
    %305 = arith.negf %304 : vector<8x128xf32>
    %306 = math.exp %305 : vector<8x128xf32>
    %cst_77 = arith.constant 1.000000e+00 : f32
    %307 = vector.broadcast %cst_77 : f32 to vector<8x128xf32>
    %308 = arith.addf %307, %306 : vector<8x128xf32>
    %309 = arith.divf %307, %308 : vector<8x128xf32>
    %310 = vector.extract_strided_slice %297 {offsets = [0, 384], sizes = [8, 128], strides = [1, 1]} : vector<8x512xf32> to vector<8x128xf32>
    %311 = arith.negf %310 : vector<8x128xf32>
    %312 = math.exp %311 : vector<8x128xf32>
    %cst_78 = arith.constant 1.000000e+00 : f32
    %313 = vector.broadcast %cst_78 : f32 to vector<8x128xf32>
    %314 = arith.addf %313, %312 : vector<8x128xf32>
    %315 = arith.divf %313, %314 : vector<8x128xf32>
    %316 = vector.extract_strided_slice %297 {offsets = [0, 256], sizes = [8, 128], strides = [1, 1]} : vector<8x512xf32> to vector<8x128xf32>
    %317 = math.tanh %316 : vector<8x128xf32>
    %318 = arith.mulf %309, %289 : vector<8x128xf32>
    %319 = arith.mulf %303, %317 : vector<8x128xf32>
    %320 = arith.addf %318, %319 : vector<8x128xf32>
    %321 = math.tanh %320 : vector<8x128xf32>
    %322 = arith.mulf %315, %321 : vector<8x128xf32>
    %c8_i32_79 = arith.constant 8 : i32
    %323 = arith.muli %c1_i32_74, %c8_i32_79 : i32
    %324 = tpu.assume_multiple %323, 8 : i32
    %325 = arith.index_cast %324 : i32 to index
    %c0_80 = arith.constant 0 : index
    %326 = vector.load %arg12[%325, %c0_80] : memref<64x128xf32, #tpu.memory_space<vmem>>, vector<8x128xf32>
    tpu.vector_store %arg12[%325, %c0_80], %322 {strides = array<i32>} : memref<64x128xf32, #tpu.memory_space<vmem>>, vector<8x128xf32>,
    %c2_i32_81 = arith.constant 2 : i32
    %cst_82 = arith.constant dense<0.000000e+00> : vector<8x512xf32>
    %327 = tpu.matmul %322, %1, %cst_82 {dimension_numbers = #tpu.dot_dimension_numbers<[1], [0], [0], [1], [0, 0, 1, 1], [], []>} : vector<8x128xf32>, vector<128x512xf32>, vector<8x512xf32> -> vector<8x512xf32>
    %328 = arith.addf %264, %327 : vector<8x512xf32>
    %329 = vector.extract_strided_slice %328 {offsets = [0, 0], sizes = [8, 128], strides = [1, 1]} : vector<8x512xf32> to vector<8x128xf32>
    %330 = arith.negf %329 : vector<8x128xf32>
    %331 = math.exp %330 : vector<8x128xf32>
    %cst_83 = arith.constant 1.000000e+00 : f32
    %332 = vector.broadcast %cst_83 : f32 to vector<8x128xf32>
    %333 = arith.addf %332, %331 : vector<8x128xf32>
    %334 = arith.divf %332, %333 : vector<8x128xf32>
    %335 = vector.extract_strided_slice %328 {offsets = [0, 128], sizes = [8, 128], strides = [1, 1]} : vector<8x512xf32> to vector<8x128xf32>
    %336 = arith.negf %335 : vector<8x128xf32>
    %337 = math.exp %336 : vector<8x128xf32>
    %cst_84 = arith.constant 1.000000e+00 : f32
    %338 = vector.broadcast %cst_84 : f32 to vector<8x128xf32>
    %339 = arith.addf %338, %337 : vector<8x128xf32>
    %340 = arith.divf %338, %339 : vector<8x128xf32>
    %341 = vector.extract_strided_slice %328 {offsets = [0, 384], sizes = [8, 128], strides = [1, 1]} : vector<8x512xf32> to vector<8x128xf32>
    %342 = arith.negf %341 : vector<8x128xf32>
    %343 = math.exp %342 : vector<8x128xf32>
    %cst_85 = arith.constant 1.000000e+00 : f32
    %344 = vector.broadcast %cst_85 : f32 to vector<8x128xf32>
    %345 = arith.addf %344, %343 : vector<8x128xf32>
    %346 = arith.divf %344, %345 : vector<8x128xf32>
    %347 = vector.extract_strided_slice %328 {offsets = [0, 256], sizes = [8, 128], strides = [1, 1]} : vector<8x512xf32> to vector<8x128xf32>
    %348 = math.tanh %347 : vector<8x128xf32>
    %349 = arith.mulf %340, %320 : vector<8x128xf32>
    %350 = arith.mulf %334, %348 : vector<8x128xf32>
    %351 = arith.addf %349, %350 : vector<8x128xf32>
    %352 = math.tanh %351 : vector<8x128xf32>
    %353 = arith.mulf %346, %352 : vector<8x128xf32>
    %c8_i32_86 = arith.constant 8 : i32
    %354 = arith.muli %c2_i32_81, %c8_i32_86 : i32
    %355 = tpu.assume_multiple %354, 8 : i32
    %356 = arith.index_cast %355 : i32 to index
    %c0_87 = arith.constant 0 : index
    %357 = vector.load %arg12[%356, %c0_87] : memref<64x128xf32, #tpu.memory_space<vmem>>, vector<8x128xf32>
    tpu.vector_store %arg12[%356, %c0_87], %353 {strides = array<i32>} : memref<64x128xf32, #tpu.memory_space<vmem>>, vector<8x128xf32>,
    %c3_i32_88 = arith.constant 3 : i32
    %cst_89 = arith.constant dense<0.000000e+00> : vector<8x512xf32>
    %358 = tpu.matmul %353, %1, %cst_89 {dimension_numbers = #tpu.dot_dimension_numbers<[1], [0], [0], [1], [0, 0, 1, 1], [], []>} : vector<8x128xf32>, vector<128x512xf32>, vector<8x512xf32> -> vector<8x512xf32>
    %359 = arith.addf %264, %358 : vector<8x512xf32>
    %360 = vector.extract_strided_slice %359 {offsets = [0, 0], sizes = [8, 128], strides = [1, 1]} : vector<8x512xf32> to vector<8x128xf32>
    %361 = arith.negf %360 : vector<8x128xf32>
    %362 = math.exp %361 : vector<8x128xf32>
    %cst_90 = arith.constant 1.000000e+00 : f32
    %363 = vector.broadcast %cst_90 : f32 to vector<8x128xf32>
    %364 = arith.addf %363, %362 : vector<8x128xf32>
    %365 = arith.divf %363, %364 : vector<8x128xf32>
    %366 = vector.extract_strided_slice %359 {offsets = [0, 128], sizes = [8, 128], strides = [1, 1]} : vector<8x512xf32> to vector<8x128xf32>
    %367 = arith.negf %366 : vector<8x128xf32>
    %368 = math.exp %367 : vector<8x128xf32>
    %cst_91 = arith.constant 1.000000e+00 : f32
    %369 = vector.broadcast %cst_91 : f32 to vector<8x128xf32>
    %370 = arith.addf %369, %368 : vector<8x128xf32>
    %371 = arith.divf %369, %370 : vector<8x128xf32>
    %372 = vector.extract_strided_slice %359 {offsets = [0, 384], sizes = [8, 128], strides = [1, 1]} : vector<8x512xf32> to vector<8x128xf32>
    %373 = arith.negf %372 : vector<8x128xf32>
    %374 = math.exp %373 : vector<8x128xf32>
    %cst_92 = arith.constant 1.000000e+00 : f32
    %375 = vector.broadcast %cst_92 : f32 to vector<8x128xf32>
    %376 = arith.addf %375, %374 : vector<8x128xf32>
    %377 = arith.divf %375, %376 : vector<8x128xf32>
    %378 = vector.extract_strided_slice %359 {offsets = [0, 256], sizes = [8, 128], strides = [1, 1]} : vector<8x512xf32> to vector<8x128xf32>
    %379 = math.tanh %378 : vector<8x128xf32>
    %380 = arith.mulf %371, %351 : vector<8x128xf32>
    %381 = arith.mulf %365, %379 : vector<8x128xf32>
    %382 = arith.addf %380, %381 : vector<8x128xf32>
    %383 = math.tanh %382 : vector<8x128xf32>
    %384 = arith.mulf %377, %383 : vector<8x128xf32>
    %c8_i32_93 = arith.constant 8 : i32
    %385 = arith.muli %c3_i32_88, %c8_i32_93 : i32
    %386 = tpu.assume_multiple %385, 8 : i32
    %387 = arith.index_cast %386 : i32 to index
    %c0_94 = arith.constant 0 : index
    %388 = vector.load %arg12[%387, %c0_94] : memref<64x128xf32, #tpu.memory_space<vmem>>, vector<8x128xf32>
    tpu.vector_store %arg12[%387, %c0_94], %384 {strides = array<i32>} : memref<64x128xf32, #tpu.memory_space<vmem>>, vector<8x128xf32>,
    %c4_i32_95 = arith.constant 4 : i32
    %cst_96 = arith.constant dense<0.000000e+00> : vector<8x512xf32>
    %389 = tpu.matmul %384, %1, %cst_96 {dimension_numbers = #tpu.dot_dimension_numbers<[1], [0], [0], [1], [0, 0, 1, 1], [], []>} : vector<8x128xf32>, vector<128x512xf32>, vector<8x512xf32> -> vector<8x512xf32>
    %390 = arith.addf %264, %389 : vector<8x512xf32>
    %391 = vector.extract_strided_slice %390 {offsets = [0, 0], sizes = [8, 128], strides = [1, 1]} : vector<8x512xf32> to vector<8x128xf32>
    %392 = arith.negf %391 : vector<8x128xf32>
    %393 = math.exp %392 : vector<8x128xf32>
    %cst_97 = arith.constant 1.000000e+00 : f32
    %394 = vector.broadcast %cst_97 : f32 to vector<8x128xf32>
    %395 = arith.addf %394, %393 : vector<8x128xf32>
    %396 = arith.divf %394, %395 : vector<8x128xf32>
    %397 = vector.extract_strided_slice %390 {offsets = [0, 128], sizes = [8, 128], strides = [1, 1]} : vector<8x512xf32> to vector<8x128xf32>
    %398 = arith.negf %397 : vector<8x128xf32>
    %399 = math.exp %398 : vector<8x128xf32>
    %cst_98 = arith.constant 1.000000e+00 : f32
    %400 = vector.broadcast %cst_98 : f32 to vector<8x128xf32>
    %401 = arith.addf %400, %399 : vector<8x128xf32>
    %402 = arith.divf %400, %401 : vector<8x128xf32>
    %403 = vector.extract_strided_slice %390 {offsets = [0, 384], sizes = [8, 128], strides = [1, 1]} : vector<8x512xf32> to vector<8x128xf32>
    %404 = arith.negf %403 : vector<8x128xf32>
    %405 = math.exp %404 : vector<8x128xf32>
    %cst_99 = arith.constant 1.000000e+00 : f32
    %406 = vector.broadcast %cst_99 : f32 to vector<8x128xf32>
    %407 = arith.addf %406, %405 : vector<8x128xf32>
    %408 = arith.divf %406, %407 : vector<8x128xf32>
    %409 = vector.extract_strided_slice %390 {offsets = [0, 256], sizes = [8, 128], strides = [1, 1]} : vector<8x512xf32> to vector<8x128xf32>
    %410 = math.tanh %409 : vector<8x128xf32>
    %411 = arith.mulf %402, %382 : vector<8x128xf32>
    %412 = arith.mulf %396, %410 : vector<8x128xf32>
    %413 = arith.addf %411, %412 : vector<8x128xf32>
    %414 = math.tanh %413 : vector<8x128xf32>
    %415 = arith.mulf %408, %414 : vector<8x128xf32>
    %c8_i32_100 = arith.constant 8 : i32
    %416 = arith.muli %c4_i32_95, %c8_i32_100 : i32
    %417 = tpu.assume_multiple %416, 8 : i32
    %418 = arith.index_cast %417 : i32 to index
    %c0_101 = arith.constant 0 : index
    %419 = vector.load %arg12[%418, %c0_101] : memref<64x128xf32, #tpu.memory_space<vmem>>, vector<8x128xf32>
    tpu.vector_store %arg12[%418, %c0_101], %415 {strides = array<i32>} : memref<64x128xf32, #tpu.memory_space<vmem>>, vector<8x128xf32>,
    %c5_i32_102 = arith.constant 5 : i32
    %cst_103 = arith.constant dense<0.000000e+00> : vector<8x512xf32>
    %420 = tpu.matmul %415, %1, %cst_103 {dimension_numbers = #tpu.dot_dimension_numbers<[1], [0], [0], [1], [0, 0, 1, 1], [], []>} : vector<8x128xf32>, vector<128x512xf32>, vector<8x512xf32> -> vector<8x512xf32>
    %421 = arith.addf %264, %420 : vector<8x512xf32>
    %422 = vector.extract_strided_slice %421 {offsets = [0, 0], sizes = [8, 128], strides = [1, 1]} : vector<8x512xf32> to vector<8x128xf32>
    %423 = arith.negf %422 : vector<8x128xf32>
    %424 = math.exp %423 : vector<8x128xf32>
    %cst_104 = arith.constant 1.000000e+00 : f32
    %425 = vector.broadcast %cst_104 : f32 to vector<8x128xf32>
    %426 = arith.addf %425, %424 : vector<8x128xf32>
    %427 = arith.divf %425, %426 : vector<8x128xf32>
    %428 = vector.extract_strided_slice %421 {offsets = [0, 128], sizes = [8, 128], strides = [1, 1]} : vector<8x512xf32> to vector<8x128xf32>
    %429 = arith.negf %428 : vector<8x128xf32>
    %430 = math.exp %429 : vector<8x128xf32>
    %cst_105 = arith.constant 1.000000e+00 : f32
    %431 = vector.broadcast %cst_105 : f32 to vector<8x128xf32>
    %432 = arith.addf %431, %430 : vector<8x128xf32>
    %433 = arith.divf %431, %432 : vector<8x128xf32>
    %434 = vector.extract_strided_slice %421 {offsets = [0, 384], sizes = [8, 128], strides = [1, 1]} : vector<8x512xf32> to vector<8x128xf32>
    %435 = arith.negf %434 : vector<8x128xf32>
    %436 = math.exp %435 : vector<8x128xf32>
    %cst_106 = arith.constant 1.000000e+00 : f32
    %437 = vector.broadcast %cst_106 : f32 to vector<8x128xf32>
    %438 = arith.addf %437, %436 : vector<8x128xf32>
    %439 = arith.divf %437, %438 : vector<8x128xf32>
    %440 = vector.extract_strided_slice %421 {offsets = [0, 256], sizes = [8, 128], strides = [1, 1]} : vector<8x512xf32> to vector<8x128xf32>
    %441 = math.tanh %440 : vector<8x128xf32>
    %442 = arith.mulf %433, %413 : vector<8x128xf32>
    %443 = arith.mulf %427, %441 : vector<8x128xf32>
    %444 = arith.addf %442, %443 : vector<8x128xf32>
    %445 = math.tanh %444 : vector<8x128xf32>
    %446 = arith.mulf %439, %445 : vector<8x128xf32>
    %c8_i32_107 = arith.constant 8 : i32
    %447 = arith.muli %c5_i32_102, %c8_i32_107 : i32
    %448 = tpu.assume_multiple %447, 8 : i32
    %449 = arith.index_cast %448 : i32 to index
    %c0_108 = arith.constant 0 : index
    %450 = vector.load %arg12[%449, %c0_108] : memref<64x128xf32, #tpu.memory_space<vmem>>, vector<8x128xf32>
    tpu.vector_store %arg12[%449, %c0_108], %446 {strides = array<i32>} : memref<64x128xf32, #tpu.memory_space<vmem>>, vector<8x128xf32>,
    %c6_i32_109 = arith.constant 6 : i32
    %cst_110 = arith.constant dense<0.000000e+00> : vector<8x512xf32>
    %451 = tpu.matmul %446, %1, %cst_110 {dimension_numbers = #tpu.dot_dimension_numbers<[1], [0], [0], [1], [0, 0, 1, 1], [], []>} : vector<8x128xf32>, vector<128x512xf32>, vector<8x512xf32> -> vector<8x512xf32>
    %452 = arith.addf %264, %451 : vector<8x512xf32>
    %453 = vector.extract_strided_slice %452 {offsets = [0, 0], sizes = [8, 128], strides = [1, 1]} : vector<8x512xf32> to vector<8x128xf32>
    %454 = arith.negf %453 : vector<8x128xf32>
    %455 = math.exp %454 : vector<8x128xf32>
    %cst_111 = arith.constant 1.000000e+00 : f32
    %456 = vector.broadcast %cst_111 : f32 to vector<8x128xf32>
    %457 = arith.addf %456, %455 : vector<8x128xf32>
    %458 = arith.divf %456, %457 : vector<8x128xf32>
    %459 = vector.extract_strided_slice %452 {offsets = [0, 128], sizes = [8, 128], strides = [1, 1]} : vector<8x512xf32> to vector<8x128xf32>
    %460 = arith.negf %459 : vector<8x128xf32>
    %461 = math.exp %460 : vector<8x128xf32>
    %cst_112 = arith.constant 1.000000e+00 : f32
    %462 = vector.broadcast %cst_112 : f32 to vector<8x128xf32>
    %463 = arith.addf %462, %461 : vector<8x128xf32>
    %464 = arith.divf %462, %463 : vector<8x128xf32>
    %465 = vector.extract_strided_slice %452 {offsets = [0, 384], sizes = [8, 128], strides = [1, 1]} : vector<8x512xf32> to vector<8x128xf32>
    %466 = arith.negf %465 : vector<8x128xf32>
    %467 = math.exp %466 : vector<8x128xf32>
    %cst_113 = arith.constant 1.000000e+00 : f32
    %468 = vector.broadcast %cst_113 : f32 to vector<8x128xf32>
    %469 = arith.addf %468, %467 : vector<8x128xf32>
    %470 = arith.divf %468, %469 : vector<8x128xf32>
    %471 = vector.extract_strided_slice %452 {offsets = [0, 256], sizes = [8, 128], strides = [1, 1]} : vector<8x512xf32> to vector<8x128xf32>
    %472 = math.tanh %471 : vector<8x128xf32>
    %473 = arith.mulf %464, %444 : vector<8x128xf32>
    %474 = arith.mulf %458, %472 : vector<8x128xf32>
    %475 = arith.addf %473, %474 : vector<8x128xf32>
    %476 = math.tanh %475 : vector<8x128xf32>
    %477 = arith.mulf %470, %476 : vector<8x128xf32>
    %c8_i32_114 = arith.constant 8 : i32
    %478 = arith.muli %c6_i32_109, %c8_i32_114 : i32
    %479 = tpu.assume_multiple %478, 8 : i32
    %480 = arith.index_cast %479 : i32 to index
    %c0_115 = arith.constant 0 : index
    %481 = vector.load %arg12[%480, %c0_115] : memref<64x128xf32, #tpu.memory_space<vmem>>, vector<8x128xf32>
    tpu.vector_store %arg12[%480, %c0_115], %477 {strides = array<i32>} : memref<64x128xf32, #tpu.memory_space<vmem>>, vector<8x128xf32>,
    %c7_i32_116 = arith.constant 7 : i32
    %cst_117 = arith.constant dense<0.000000e+00> : vector<8x512xf32>
    %482 = tpu.matmul %477, %1, %cst_117 {dimension_numbers = #tpu.dot_dimension_numbers<[1], [0], [0], [1], [0, 0, 1, 1], [], []>} : vector<8x128xf32>, vector<128x512xf32>, vector<8x512xf32> -> vector<8x512xf32>
    %483 = arith.addf %264, %482 : vector<8x512xf32>
    %484 = vector.extract_strided_slice %483 {offsets = [0, 0], sizes = [8, 128], strides = [1, 1]} : vector<8x512xf32> to vector<8x128xf32>
    %485 = arith.negf %484 : vector<8x128xf32>
    %486 = math.exp %485 : vector<8x128xf32>
    %cst_118 = arith.constant 1.000000e+00 : f32
    %487 = vector.broadcast %cst_118 : f32 to vector<8x128xf32>
    %488 = arith.addf %487, %486 : vector<8x128xf32>
    %489 = arith.divf %487, %488 : vector<8x128xf32>
    %490 = vector.extract_strided_slice %483 {offsets = [0, 128], sizes = [8, 128], strides = [1, 1]} : vector<8x512xf32> to vector<8x128xf32>
    %491 = arith.negf %490 : vector<8x128xf32>
    %492 = math.exp %491 : vector<8x128xf32>
    %cst_119 = arith.constant 1.000000e+00 : f32
    %493 = vector.broadcast %cst_119 : f32 to vector<8x128xf32>
    %494 = arith.addf %493, %492 : vector<8x128xf32>
    %495 = arith.divf %493, %494 : vector<8x128xf32>
    %496 = vector.extract_strided_slice %483 {offsets = [0, 384], sizes = [8, 128], strides = [1, 1]} : vector<8x512xf32> to vector<8x128xf32>
    %497 = arith.negf %496 : vector<8x128xf32>
    %498 = math.exp %497 : vector<8x128xf32>
    %cst_120 = arith.constant 1.000000e+00 : f32
    %499 = vector.broadcast %cst_120 : f32 to vector<8x128xf32>
    %500 = arith.addf %499, %498 : vector<8x128xf32>
    %501 = arith.divf %499, %500 : vector<8x128xf32>
    %502 = vector.extract_strided_slice %483 {offsets = [0, 256], sizes = [8, 128], strides = [1, 1]} : vector<8x512xf32> to vector<8x128xf32>
    %503 = math.tanh %502 : vector<8x128xf32>
    %504 = arith.mulf %495, %475 : vector<8x128xf32>
    %505 = arith.mulf %489, %503 : vector<8x128xf32>
    %506 = arith.addf %504, %505 : vector<8x128xf32>
    %507 = math.tanh %506 : vector<8x128xf32>
    %508 = arith.mulf %501, %507 : vector<8x128xf32>
    %c8_i32_121 = arith.constant 8 : i32
    %509 = arith.muli %c7_i32_116, %c8_i32_121 : i32
    %510 = tpu.assume_multiple %509, 8 : i32
    %511 = arith.index_cast %510 : i32 to index
    %c0_122 = arith.constant 0 : index
    %512 = vector.load %arg12[%511, %c0_122] : memref<64x128xf32, #tpu.memory_space<vmem>>, vector<8x128xf32>
    tpu.vector_store %arg12[%511, %c0_122], %508 {strides = array<i32>} : memref<64x128xf32, #tpu.memory_space<vmem>>, vector<8x128xf32>,
    %c8_i32_123 = arith.constant 8 : i32
    %c0_124 = arith.constant 0 : index
    %c0_125 = arith.constant 0 : index
    %513 = vector.load %arg12[%c0_124, %c0_125] : memref<64x128xf32, #tpu.memory_space<vmem>>, vector<64x128xf32>
    %c0_126 = arith.constant 0 : index
    %c0_127 = arith.constant 0 : index
    %514 = vector.load %arg8[%c0_126, %c0_127] : memref<128x4xf32, #tpu.memory_space<vmem>>, vector<128x4xf32>
    %cst_128 = arith.constant dense<0.000000e+00> : vector<64x4xf32>
    %515 = tpu.matmul %513, %514, %cst_128 {dimension_numbers = #tpu.dot_dimension_numbers<[1], [0], [0], [1], [0, 0, 1, 1], [], []>} : vector<64x128xf32>, vector<128x4xf32>, vector<64x4xf32> -> vector<64x4xf32>
    %c0_129 = arith.constant 0 : index
    %c0_130 = arith.constant 0 : index
    %516 = vector.load %arg9[%c0_129, %c0_130] : memref<1x4xf32, #tpu.memory_space<vmem>>, vector<1x4xf32>
    %517 = vector.broadcast %516 : vector<1x4xf32> to vector<64x4xf32>
    %518 = arith.addf %515, %517 : vector<64x4xf32>
    %519 = vector.shape_cast %518 : vector<64x4xf32> to vector<8x8x4xf32>
    %c0_131 = arith.constant 0 : index
    %c0_132 = arith.constant 0 : index
    %c0_133 = arith.constant 0 : index
    %520 = vector.load %arg10[%c0_131, %c0_132, %c0_133] : memref<8x8x4xf32, #tpu.memory_space<vmem>>, vector<8x8x4xf32>
    tpu.vector_store %arg10[%c0_131, %c0_132, %c0_133], %519 {strides = array<i32>} : memref<8x8x4xf32, #tpu.memory_space<vmem>>, vector<8x8x4xf32>,
    return
  }
  func.func @transform_0(%arg0: i32) -> (i32, i32, i32) {
    %c0_i32 = arith.constant 0 : i32
    %c0_i32_0 = arith.constant 0 : i32
    %c0_i32_1 = arith.constant 0 : i32
    return %c0_i32, %arg0, %c0_i32_0 : i32, i32, i32
  }
  func.func @transform_1(%arg0: i32) -> (i32, i32) {
    %c0_i32 = arith.constant 0 : i32
    %c0_i32_0 = arith.constant 0 : i32
    %c0_i32_1 = arith.constant 0 : i32
    return %c0_i32, %c0_i32_0 : i32, i32
  }
  func.func @transform_2(%arg0: i32) -> (i32, i32) {
    %c0_i32 = arith.constant 0 : i32
    %c0_i32_0 = arith.constant 0 : i32
    %c0_i32_1 = arith.constant 0 : i32
    return %c0_i32, %c0_i32_0 : i32, i32
  }
  func.func @transform_3(%arg0: i32) -> (i32, i32) {
    %c0_i32 = arith.constant 0 : i32
    %c0_i32_0 = arith.constant 0 : i32
    %c0_i32_1 = arith.constant 0 : i32
    return %c0_i32, %c0_i32_0 : i32, i32
  }
  func.func @transform_4(%arg0: i32) -> (i32, i32) {
    %c0_i32 = arith.constant 0 : i32
    %c0_i32_0 = arith.constant 0 : i32
    %c0_i32_1 = arith.constant 0 : i32
    return %c0_i32, %c0_i32_0 : i32, i32
  }
  func.func @transform_5(%arg0: i32) -> (i32, i32) {
    %c0_i32 = arith.constant 0 : i32
    %c0_i32_0 = arith.constant 0 : i32
    %c0_i32_1 = arith.constant 0 : i32
    return %c0_i32, %c0_i32_0 : i32, i32
  }
  func.func @transform_6(%arg0: i32) -> (i32, i32) {
    %c0_i32 = arith.constant 0 : i32
    %c0_i32_0 = arith.constant 0 : i32
    %c0_i32_1 = arith.constant 0 : i32
    return %c0_i32, %c0_i32_0 : i32, i32
  }
  func.func @transform_7(%arg0: i32) -> (i32, i32) {
    %c0_i32 = arith.constant 0 : i32
    %c0_i32_0 = arith.constant 0 : i32
    %c0_i32_1 = arith.constant 0 : i32
    return %c0_i32, %c0_i32_0 : i32, i32
  }
  func.func @transform_8(%arg0: i32) -> (i32, i32) {
    %c0_i32 = arith.constant 0 : i32
    %c0_i32_0 = arith.constant 0 : i32
    %c0_i32_1 = arith.constant 0 : i32
    return %c0_i32, %c0_i32_0 : i32, i32
  }
  func.func @transform_9(%arg0: i32) -> (i32, i32, i32) {
    %c0_i32 = arith.constant 0 : i32
    %c0_i32_0 = arith.constant 0 : i32
    %c0_i32_1 = arith.constant 0 : i32
    return %c0_i32, %arg0, %c0_i32_0 : i32, i32, i32
  }
}

</mosaic_0001>

<bundles_post_ra>
// kernel: tpu_custom_call.1
= control target key start
LH: loop header
LB: loop body
LE: loop exit
PB: predicated region body
PF: predicated region fallthrough
CT: control target
= control target key end

     0   :  { %14 = vsyncpa [#allocation5], 0  ;;  %s5793_s0 = inlined_call_operand.vmem [shape: f32[8,8,4], index: 0, kind: input, shape index: {}]   ;;  %s5794_s1 = inlined_call_operand.vmem [shape: f32[4,512], index: 1, kind: input, shape index: {}]   ;;  %s5795_s2 = inlined_call_operand.hbm [shape: f32[128,512], index: 2, kind: input, shape index: {}]   ;;  %s5796_s3 = inlined_call_operand.vmem [shape: f32[1,512], index: 3, kind: input, shape index: {}]   ;;  %s5797_s4 = inlined_call_operand.hbm [shape: f32[128,512], index: 4, kind: input, shape index: {}]   ;;  %s5798_s5 = inlined_call_operand.hbm [shape: f32[128,512], index: 5, kind: input, shape index: {}]   ;;  %s5799_s6 = inlined_call_operand.vmem [shape: f32[1,512], index: 6, kind: input, shape index: {}]   ;;  %s5800_s7 = inlined_call_operand.vmem [shape: f32[128,4], index: 7, kind: input, shape index: {}]   ;;  %s5801_s8 = inlined_call_operand.vmem [shape: f32[1,4], index: 8, kind: input, shape index: {}]   ;;  %s5802_s9 = inlined_call_operand.vmem [shape: f32[8,8,4], index: 9, kind: output, shape index: {}]  }
   0x1   :  { %15 = vsyncpa [#allocation7], 0  ;;  %s39_s11 = sshll.u32 %s5797_s4, 4  ;;  %s3686_s12 = smov [#allocation6]   ;;  %s40_s11 = int_to_ptr.hbm [resolvable:$true] %s39_s11 }
   0x2   :  { %s41_s13 = sshll.u32 %s3686_s12, 4  ;;  %s24_s16 = sshll.u32 %s5795_s2, 4  ;;  %s42_s13 = int_to_ptr.vmem [resolvable:$true] %s41_s13  ;;  %s25_s16 = int_to_ptr.hbm [resolvable:$true] %s24_s16 }
   0x3   :  { %s3687_s17 = smov 512   ;;  %s3688_s18 = smov 32  }
   0x4   :  { %47 = dma.hbm_to_vmem [thread:$0]  %s40_s11, 8192, %s42_s13, [#allocation7], %s3687_s17, %s3687_s17, %s3688_s18  }
   0x5   :  { %s3689_s19 = smov [#allocation4]   ;;  %s52_s23 = sshll.u32 %s5798_s5, 4  ;;  %s53_s23 = int_to_ptr.hbm [resolvable:$true] %s52_s23 }
   0x6   :  { %s26_s20 = sshll.u32 %s3689_s19, 4  ;;  %s3690_s4 = smov [#allocation8]   ;;  %s27_s20 = int_to_ptr.vmem [resolvable:$true] %s26_s20 }
   0x7   :  { %32 = dma.hbm_to_vmem [thread:$0]  %s25_s16, 8192, %s27_s20, [#allocation5], %s3687_s17, %s3687_s17, %s3688_s18  }
   0x8   :  { %s54_s24 = sshll.u32 %s3690_s4, 4  ;;  %s55_s24 = int_to_ptr.vmem [resolvable:$true] %s54_s24 }
   0x9   :  { %60 = dma.hbm_to_vmem [thread:$0]  %s53_s23, 8192, %s55_s24, [#allocation7], %s3687_s17, %s3687_s17, %s3688_s18  }
   0xa   :  { %3682 = dma.done.wait [#allocation5], 8192  }
   0xb   :  { %3683 = vsyncadd [#allocation5], 4294959104 }
   0xc   :  { %3684 = dma.done.wait [#allocation7], 16384  }
   0xd   :  { %3685 = vsyncadd [#allocation7], 4294950912  ;;  %v215_v0 = vld [vmem:[%s5794_s1] sm:$0xff]  ;;  %v216_v1 = vld [vmem:[%s5794_s1 + $0x8] sm:$0xff]  ;;  %vm261_vm0 = vcmask 1043456   ;;  %vm236_vm1 = vcmask 31744  }
   0xe   :  { %229 = vst [vmem:[#allocation1] ss:$2 sm:$0xff] %v215_v0  ;;  %v3760_v2 = vld [vmem:[%s5793_s0 + $0x20] sm:$0xff]  ;;  %v3765_v3 = vld [vmem:[%s5793_s0 + $0x28] sm:$0xff]  ;;  %v3779_v10 = vld [vmem:[#allocation4 + $0x1e8] sm:$0xff] }
   0xf   :  { %231 = vst [vmem:[#allocation1 + $0x10] ss:$2 sm:$0xff] %v216_v1  ;;  %v3770_v4 = vld [vmem:[%s5793_s0] sm:$0xff]  ;;  %v3777_v9 = vld [vmem:[#allocation4 + $0x1e0] sm:$0xff]  ;;  %v3791_v13 = vld [vmem:[#allocation4 + $0x1c8] sm:$0xff] }
  0x10   :  { %v3785_v11 = vld [vmem:[#allocation4 + $0x1f8] sm:$0xff]  ;;  %v3789_v12 = vld [vmem:[#allocation4 + $0x1c0] sm:$0xff]  ;;  %v3800_v16 = vld [vmem:[#allocation4 + $0x1a8] sm:$0xff] }
  0x11   :  { %v3795_v14 = vld [vmem:[#allocation4 + $0x1d8] sm:$0xff]  ;;  %v3797_v15 = vld [vmem:[#allocation4 + $0x1a0] sm:$0xff]  ;;  %v3810_v18 = vld [vmem:[%s5793_s0 + $0x30] sm:$0xff] }
  0x12   :  { %v3805_v17 = vld [vmem:[#allocation4 + $0x1b8] sm:$0xff]  ;;  %v3815_v19 = vld [vmem:[%s5793_s0 + $0x8] sm:$0xff]  ;;  %v3824_v21 = vld [vmem:[#allocation4 + $0x188] sm:$0xff] }
  0x13   :  { %v3821_v20 = vld [vmem:[#allocation4 + $0x180] sm:$0xff]  ;;  %v3829_v22 = vld [vmem:[#allocation4 + $0x198] sm:$0xff]  ;;  %v3837_v24 = vld [vmem:[#allocation4 + $0x168] sm:$0xff] }
  0x14   :  { %v3835_v23 = vld [vmem:[#allocation4 + $0x160] sm:$0xff]  ;;  %v3841_v25 = vld [vmem:[#allocation4 + $0x178] sm:$0xff]  ;;  %v3846_v27 = vld [vmem:[#allocation4 + $0x148] sm:$0xff] }
  0x15   :  { %v232_v5 = vld.sshfl [vmem:[#allocation1] sm:$0xff pattern:$0x75316420]  ;;  %v233_v6 = vld.sshfl [vmem:[#allocation1 + $0x8] sm:$0xff pattern:$0x75316420] }
  0x16   :  { %3217 = vmatpush.msk.msra.mxu1 %vm261_vm0, %v232_v5  ;;  %3218 = vmatpush.msk.msra.mxu3 %vm261_vm0, %v232_v5  ;;  %v234_v7 = vld.sshfl [vmem:[#allocation1 + $0x10] sm:$0xff pattern:$0x75316420]  ;;  %v235_v8 = vld.sshfl [vmem:[#allocation1 + $0x18] sm:$0xff pattern:$0x75316420] }
  0x17   :  { %3151 = vmatpush.msk.msra.mxu2 %vm261_vm0, %v234_v7  ;;  %3138 = vmatmul.msk.f32.vlgmr.msra.gmra.mxu1 %vm236_vm1, %v3760_v2  ;;  %v3843_v26 = vld [vmem:[#allocation4 + $0x140] sm:$0xff]  ;;  %v3851_v28 = vld [vmem:[#allocation4 + $0x158] sm:$0xff]  ;;  %v3860_v30 = vld [vmem:[%s5793_s0 + $0x38] sm:$0xff] }
  0x18   :  { %3139 = vmatmul.msk.f32.vlgmr.msra.gmra.mxu3 %vm236_vm1, %v3765_v3  ;;  %3152 = vmatmul.msk.f32.vlgmr.msra.gmra.mxu2 %vm236_vm1, %v3770_v4  ;;  %v3853_v29 = vld [vmem:[#allocation4 + $0x120] sm:$0xff]  ;;  %v3865_v31 = vld [vmem:[%s5793_s0 + $0x10] sm:$0xff]  ;;  %v3886_v36 = vld [vmem:[#allocation4 + $0x138] sm:$0xff] }
  0x19   :  { %3160 = vmatpush.msk.msrb.mxu3 %vm261_vm0, %v235_v8  ;;  %3142 = vmatpush.msk.msrb.mxu1 %vm261_vm0, %v233_v6  ;;  %v3869_v32 = vld [vmem:[#allocation4 + $0x100] sm:$0xff]  ;;  %v3871_v33 = vld [vmem:[#allocation4 + $0x128] sm:$0xff]  ;;  %v3890_v37 = vld [vmem:[#allocation4 + $0x118] sm:$0xff] }
  0x1a   :  { %473 = vmatpush.msrb.mxu2 %v3777_v9  ;;  %3133 = vmatpush.msk.msra.mxu0 %vm261_vm0, %v232_v5  ;;  %v3882_v34 = vld [vmem:[#allocation4 + $0xe0] sm:$0xff]  ;;  %v3884_v35 = vld [vmem:[#allocation4 + $0x108] sm:$0xff]  ;;  %v3908_v41 = vld [vmem:[%s5793_s0 + $0x18] sm:$0xff] }
  0x1b   :  { %493 = vmatpush.msra.mxu1 %v3779_v10  ;;  %533 = vmatpush.msra.mxu3 %v3785_v11  ;;  %v3892_v38 = vld [vmem:[#allocation4 + $0xc0] sm:$0xff]  ;;  %v3895_v39 = vld [vmem:[#allocation4 + $0xe8] sm:$0xff]  ;;  %v3926_v45 = vld [vmem:[#allocation4 + $0xf8] sm:$0xff] }
  0x1c   :  { %474 = vmatpush.msrb.mxu2 %v3789_v12  ;;  %3134 = vmatmul.msk.f32.vlgmr.msra.gmra.mxu0 %vm236_vm1, %v3770_v4  ;;  %v3900_v40 = vld [vmem:[#allocation4 + $0xa0] sm:$0xff]  ;;  %v3914_v43 = vld [vmem:[#allocation4 + $0xc8] sm:$0xff]  ;;  %v3932_v47 = vld [vmem:[#allocation4 + $0xd8] sm:$0xff] }
  0x1d   :  { %494 = vmatpush.msra.mxu1 %v3791_v13  ;;  %534 = vmatpush.msra.mxu3 %v3795_v14  ;;  %6046 = vst [vmem:[#allocation11_spill] sm:$0xff] %v3900_v40  ;;  %v3912_v42 = vld [vmem:[#allocation4 + $0x80] sm:$0xff]  ;;  %v3928_v46 = vld [vmem:[#allocation4 + $0xa8] sm:$0xff]  ;;  %v3954_v52 = vld [vmem:[#allocation4 + $0x1f0] sm:$0xff] }
  0x1e   :  { %475 = vmatpush.msrb.mxu2 %v3797_v15  ;;  %627 = vmatpush.msrb.mxu0 %v3777_v9  ;;  %6047 = vst [vmem:[#allocation12_spill] sm:$0xff] %v3912_v42  ;;  %v3924_v44 = vld [vmem:[#allocation4 + $0x60] sm:$0xff]  ;;  %v3937_v49 = vld [vmem:[#allocation4 + $0x88] sm:$0xff]  ;;  %v3960_v53 = vld [vmem:[#allocation4 + $0xb8] sm:$0xff] }
  0x1f   :  { %495 = vmatpush.msra.mxu1 %v3800_v16  ;;  %535 = vmatpush.msra.mxu3 %v3805_v17  ;;  %6048 = vst [vmem:[#allocation13_spill] sm:$0xff] %v3924_v44  ;;  %v3934_v48 = vld [vmem:[#allocation4 + $0x40] sm:$0xff]  ;;  %v3962_v54 = vld [vmem:[#allocation4 + $0x68] sm:$0xff]  ;;  %v3965_v55 = vld [vmem:[#allocation4 + $0x1d0] sm:$0xff] }
  0x20   :  { %3143 = vmatmul.msk.f32.vlgmr.msrb.gmra.mxu1 %vm236_vm1, %v3770_v4  ;;  %3140 = vmatmul.msk.f32.gmra.mxu3 %vm236_vm1, %v3810_v18  ;;  %6049 = vst [vmem:[#allocation14_spill] sm:$0xff] %v3928_v46  ;;  %v3942_v50 = vld [vmem:[#allocation4 + $0x20] sm:$0xff]  ;;  %v3968_v56 = vld [vmem:[#allocation4 + $0x48] sm:$0xff]  ;;  %v3970_v57 = vld [vmem:[#allocation4 + $0x98] sm:$0xff] }
  0x21   :  { %3153 = vmatmul.msk.f32.gmra.mxu2 %vm236_vm1, %v3815_v19  ;;  %496 = vmatpush.msra.mxu1 %v3824_v21  ;;  %6050 = vst [vmem:[#allocation15_spill] sm:$0xff] %v3934_v48  ;;  %v3948_v51 = vld [vmem:[#allocation4] sm:$0xff]  ;;  %v3974_v58 = vld [vmem:[#allocation4 + $0x1b0] sm:$0xff]  ;;  %v3977_v59 = vld [vmem:[#allocation4 + $0x28] sm:$0xff] }
  0x22   :  { %476 = vmatpush.msrb.mxu2 %v3821_v20  ;;  %536 = vmatpush.msra.mxu3 %v3829_v22  ;;  %6051 = vst [vmem:[#allocation16_spill] sm:$0xff] %v3937_v49  ;;  %v3985_v60 = vld [vmem:[#allocation4 + $0x190] sm:$0xff]  ;;  %v3988_v61 = vld [vmem:[#allocation4 + $0x8] sm:$0xff]  ;;  %v3999_v63 = vld [vmem:[#allocation4 + $0x78] sm:$0xff] }
  0x23   :  { %497 = vmatpush.msra.mxu1 %v3837_v24  ;;  %628 = vmatpush.msrb.mxu0 %v3789_v12  ;;  %6052 = vst [vmem:[#allocation17_spill] sm:$0xff] %v3942_v50  ;;  %v3997_v62 = vld [vmem:[#allocation4 + $0x170] sm:$0xff]  ;;  %v4003_v0 = vld [vmem:[#allocation4 + $0x58] sm:$0xff] }
  0x24   :  { %477 = vmatpush.msrb.mxu2 %v3835_v23  ;;  %537 = vmatpush.msra.mxu3 %v3841_v25  ;;  %6053 = vst [vmem:[#allocation18_spill] sm:$0xff] %v3948_v51  ;;  %v4005_v1 = vld [vmem:[#allocation4 + $0x150] sm:$0xff]  ;;  %v4031_v7 = vld [vmem:[#allocation4 + $0x38] sm:$0xff] }
  0x25   :  { %498 = vmatpush.msra.mxu1 %v3846_v27  ;;  %629 = vmatpush.msrb.mxu0 %v3797_v15  ;;  %6054 = vst [vmem:[#allocation19_spill] sm:$0xff] %v3960_v53  ;;  %v4017_v5 = vld [vmem:[#allocation4 + $0x110] sm:$0xff]  ;;  %v4033_v8 = vld [vmem:[#allocation4 + $0x18] sm:$0xff] }
  0x26   :  { %478 = vmatpush.msrb.mxu2 %v3843_v26  ;;  %538 = vmatpush.msra.mxu3 %v3851_v28  ;;  %6055 = vst [vmem:[#allocation20_spill] sm:$0xff] %v3962_v54  ;;  %v4029_v6 = vld [vmem:[#allocation4 + $0xf0] sm:$0xff] }
  0x27   :  { %499 = vmatpush.msra.mxu1 %v3871_v33  ;;  %630 = vmatpush.msrb.mxu0 %v3821_v20  ;;  %6056 = vst [vmem:[#allocation21_spill] sm:$0xff] %v3968_v56 }
  0x28   :  { %3144 = vmatmul.msk.f32.gmra.mxu1 %vm236_vm1, %v3815_v19  ;;  %479 = vmatpush.msrb.mxu2 %v3853_v29  ;;  %6057 = vst [vmem:[#allocation22_spill] sm:$0xff] %v3970_v57 }
  0x29   :  { %3141 = vmatmul.msk.f32.gmra.mxu3 %vm236_vm1, %v3860_v30  ;;  %3154 = vmatmul.msk.f32.gmra.mxu2 %vm236_vm1, %v3865_v31  ;;  %6058 = vst [vmem:[#allocation23_spill] sm:$0xff] %v3977_v59 }
  0x2a   :  { %480 = vmatpush.msrb.mxu2 %v3869_v32  ;;  %539 = vmatpush.msra.mxu3 %v3886_v36  ;;  %6059 = vst [vmem:[#allocation24_spill] sm:$0xff] %v3988_v61 }
  0x2b   :  { %500 = vmatpush.msra.mxu1 %v3884_v35  ;;  %3135 = vmatmul.msk.f32.gmra.mxu0 %vm236_vm1, %v3815_v19  ;;  %6060 = vst [vmem:[#allocation25_spill] sm:$0xff] %v3999_v63 }
  0x2c   :  { %481 = vmatpush.msrb.mxu2 %v3882_v34  ;;  %540 = vmatpush.msra.mxu3 %v3890_v37  ;;  %6061 = vst [vmem:[#allocation26_spill] sm:$0xff] %v4003_v0 }
  0x2d   :  { %501 = vmatpush.msra.mxu1 %v3895_v39  ;;  %631 = vmatpush.msrb.mxu0 %v3835_v23  ;;  %6062 = vst [vmem:[#allocation27_spill] sm:$0xff] %v4031_v7 }
  0x2e   :  { %482 = vmatpush.msrb.mxu2 %v3892_v38  ;;  %541 = vmatpush.msra.mxu3 %v3926_v45  ;;  %6063 = vst [vmem:[#allocation28_spill] sm:$0xff] %v4033_v8 }
  0x2f   :  { %502 = vmatpush.msra.mxu1 %v3914_v43  ;;  %632 = vmatpush.msrb.mxu0 %v3843_v26 }
  0x30   :  { %3145 = vmatmul.msk.f32.gmra.mxu1 %vm236_vm1, %v3865_v31  ;;  %483 = vmatpush.msrb.mxu2 %v3900_v40 }
  0x31   :  { %3155 = vmatmul.msk.f32.gmra.mxu2 %vm236_vm1, %v3908_v41  ;;  %3161 = vmatmul.msk.f32.vlgmr.msrb.gmra.mxu3 %vm236_vm1, %v3770_v4  ;;  %v4011_v4 = vld [vmem:[#allocation4 + $0x130] sm:$0xff] }
  0x32   :  { %484 = vmatpush.msrb.mxu2 %v3912_v42  ;;  %503 = vmatpush.msra.mxu1 %v3928_v46 }
  0x33   :  { %542 = vmatpush.msra.mxu3 %v3932_v47  ;;  %633 = vmatpush.msrb.mxu0 %v3853_v29 }
  0x34   :  { %485 = vmatpush.msrb.mxu2 %v3924_v44  ;;  %504 = vmatpush.msra.mxu1 %v3937_v49 }
  0x35   :  { %634 = vmatpush.msrb.mxu0 %v3869_v32  ;;  %543 = vmatpush.msra.mxu3 %v3960_v53 }
  0x36   :  { %486 = vmatpush.msrb.mxu2 %v3934_v48  ;;  %505 = vmatpush.msra.mxu1 %v3962_v54 }
  0x37   :  { %544 = vmatpush.msra.mxu3 %v3970_v57  ;;  %3136 = vmatmul.msk.f32.gmra.mxu0 %vm236_vm1, %v3865_v31 }
  0x38   :  { %3146 = vmatmul.msk.f32.gmra.mxu1 %vm236_vm1, %v3908_v41  ;;  %487 = vmatpush.msrb.mxu2 %v3942_v50 }
  0x39   :  { %3156 = vmatmul.msk.f32.gmra.mxu2 %vm236_vm1, %v3760_v2  ;;  %3162 = vmatmul.msk.f32.gmra.mxu3 %vm236_vm1, %v3815_v19  ;;  %v4037_v19 = vld [vmem:[#allocation4 + $0xd0] sm:$0xff] }
  0x3a   :  { %488 = vmatpush.msrb.mxu2 %v3948_v51  ;;  %506 = vmatpush.msra.mxu1 %v3968_v56 }
  0x3b   :  { %635 = vmatpush.msrb.mxu0 %v3882_v34  ;;  %545 = vmatpush.msra.mxu3 %v3999_v63 }
  0x3c   :  { %513 = vmatpush.msra.mxu2 %v3954_v52  ;;  %507 = vmatpush.msra.mxu1 %v3977_v59 }
  0x3d   :  { %636 = vmatpush.msrb.mxu0 %v3892_v38  ;;  %546 = vmatpush.msra.mxu3 %v4003_v0 }
  0x3e   :  { %514 = vmatpush.msra.mxu2 %v3965_v55  ;;  %508 = vmatpush.msra.mxu1 %v3988_v61 }
  0x3f   :  { %637 = vmatpush.msrb.mxu0 %v3900_v40  ;;  %547 = vmatpush.msra.mxu3 %v4031_v7 }
  0x40   :  { %515 = vmatpush.msra.mxu2 %v3974_v58  ;;  %3147 = vmatmul.msk.f32.gmra.mxu1 %vm236_vm1, %v3760_v2 }
  0x41   :  { %3157 = vmatmul.msk.f32.gmra.mxu2 %vm236_vm1, %v3765_v3  ;;  %3163 = vmatmul.msk.f32.gmra.mxu3 %vm236_vm1, %v3865_v31  ;;  %v4043_v31 = vld [vmem:[#allocation4 + $0xb0] sm:$0xff] }
  0x42   :  { %516 = vmatpush.msra.mxu2 %v3985_v60  ;;  %647 = vmatpush.msrb.mxu1 %v3779_v10  ;;  %6064 = vst [vmem:[#allocation29_spill] sm:$0xff] %v4043_v31 }
  0x43   :  { %638 = vmatpush.msrb.mxu0 %v3912_v42  ;;  %548 = vmatpush.msra.mxu3 %v4033_v8  ;;  %v4070_v42 = vld [vmem:[#allocation4 + $0x30] sm:$0xff] }
  0x44   :  { %517 = vmatpush.msra.mxu2 %v3997_v62  ;;  %648 = vmatpush.msrb.mxu1 %v3791_v13  ;;  %6068 = vst [vmem:[#allocation33_spill] sm:$0xff] %v4070_v42 }
  0x45   :  { %3137 = vmatmul.msk.f32.gmra.mxu0 %vm236_vm1, %v3908_v41  ;;  %687 = vmatpush.msrb.mxu3 %v3785_v11 }
  0x46   :  { %518 = vmatpush.msra.mxu2 %v4005_v1  ;;  %649 = vmatpush.msrb.mxu1 %v3800_v16 }
  0x47   :  { %639 = vmatpush.msrb.mxu0 %v3924_v44  ;;  %688 = vmatpush.msrb.mxu3 %v3795_v14  ;;  %v4060_v44 = vld [vmem:[#allocation4 + $0x70] sm:$0xff] }
  0x48   :  { %3148 = vmatmul.msk.f32.gmra.mxu1 %vm236_vm1, %v3765_v3  ;;  %519 = vmatpush.msra.mxu2 %v4011_v4  ;;  %6066 = vst [vmem:[#allocation31_spill] sm:$0xff] %v4060_v44 }
  0x49   :  { %3158 = vmatmul.msk.f32.gmra.mxu2 %vm236_vm1, %v3810_v18  ;;  %3164 = vmatmul.msk.f32.gmra.mxu3 %vm236_vm1, %v3908_v41  ;;  %v4049_v41 = vld [vmem:[#allocation4 + $0x90] sm:$0xff] }
  0x4a   :  { %520 = vmatpush.msra.mxu2 %v4017_v5  ;;  %650 = vmatpush.msrb.mxu1 %v3824_v21  ;;  %6065 = vst [vmem:[#allocation30_spill] sm:$0xff] %v4049_v41 }
  0x4b   :  { %640 = vmatpush.msrb.mxu0 %v3934_v48  ;;  %689 = vmatpush.msrb.mxu3 %v3805_v17  ;;  %v4064_v48 = vld [vmem:[#allocation4 + $0x50] sm:$0xff] }
  0x4c   :  { %521 = vmatpush.msra.mxu2 %v4029_v6  ;;  %651 = vmatpush.msrb.mxu1 %v3837_v24  ;;  %6067 = vst [vmem:[#allocation32_spill] sm:$0xff] %v4064_v48 }
  0x4d   :  { %641 = vmatpush.msrb.mxu0 %v3942_v50  ;;  %690 = vmatpush.msrb.mxu3 %v3829_v22  ;;  %v5811_v50 = vmov 0.0  }
  0x4e   :  { %522 = vmatpush.msra.mxu2 %v4037_v19  ;;  %652 = vmatpush.msrb.mxu1 %v3846_v27 }
  0x4f   :  { %642 = vmatpush.msrb.mxu0 %v3948_v51  ;;  %691 = vmatpush.msrb.mxu3 %v3841_v25 }
  0x50   :  { %3149 = vmatmul.msk.f32.gmra.mxu1 %vm236_vm1, %v3810_v18  ;;  %523 = vmatpush.msra.mxu2 %v4043_v31 }
  0x51   :  { %3159 = vmatmul.msk.f32.gmra.mxu2 %vm236_vm1, %v3860_v30  ;;  %3165 = vmatmul.msk.f32.gmra.mxu3 %vm236_vm1, %v3760_v2  ;;  %v4076_v2 = vld [vmem:[#allocation4 + $0x10] sm:$0xff] }
  0x52   :  { %524 = vmatpush.msra.mxu2 %v4049_v41  ;;  %653 = vmatpush.msrb.mxu1 %v3871_v33  ;;  %6069 = vst [vmem:[#allocation34_spill] sm:$0xff] %v4076_v2 }
  0x53   :  { %781 = vmatpush.msra.mxu0 %v3777_v9  ;;  %692 = vmatpush.msrb.mxu3 %v3851_v28 }
  0x54   :  { %525 = vmatpush.msra.mxu2 %v4060_v44  ;;  %654 = vmatpush.msrb.mxu1 %v3884_v35 }
  0x55   :  { %693 = vmatpush.msrb.mxu3 %v3886_v36  ;;  %782 = vmatpush.msra.mxu0 %v3789_v12 }
  0x56   :  { %526 = vmatpush.msra.mxu2 %v4064_v48  ;;  %655 = vmatpush.msrb.mxu1 %v3895_v39 }
  0x57   :  { %694 = vmatpush.msrb.mxu3 %v3890_v37  ;;  %783 = vmatpush.msra.mxu0 %v3797_v15 }
  0x58   :  { %3150 = vmatmul.msk.f32.gmra.mxu1 %vm236_vm1, %v3860_v30  ;;  %527 = vmatpush.msra.mxu2 %v4070_v42 }
  0x59   :  { %3166 = vmatmul.msk.f32.gmra.mxu3 %vm236_vm1, %v3765_v3  ;;  %489 = vmatmul.f32.vlgmr.msrb.gmra.mxu2 %v5811_v50  ;;  %v6070_v3 = vld [vmem:[#allocation12_spill] sm:$0xff] }
  0x5a   :  { %528 = vmatpush.msra.mxu2 %v4076_v2  ;;  %656 = vmatpush.msrb.mxu1 %v3914_v43 }
  0x5b   :  { %695 = vmatpush.msrb.mxu3 %v3926_v45  ;;  %784 = vmatpush.msra.mxu0 %v3821_v20 }
  0x5c   :  { %667 = vmatpush.msrb.mxu2 %v3954_v52  ;;  %657 = vmatpush.msrb.mxu1 %v3928_v46 }
  0x5d   :  { %696 = vmatpush.msrb.mxu3 %v3932_v47  ;;  %785 = vmatpush.msra.mxu0 %v3835_v23 }
  0x5e   :  { %668 = vmatpush.msrb.mxu2 %v3965_v55  ;;  %658 = vmatpush.msrb.mxu1 %v3937_v49 }
  0x5f   :  { %697 = vmatpush.msrb.mxu3 %v3960_v53  ;;  %786 = vmatpush.msra.mxu0 %v3843_v26 }
  0x60   :  { %669 = vmatpush.msrb.mxu2 %v3974_v58  ;;  %509 = vmatmul.f32.vlgmr.msra.gmra.mxu1 %v5811_v50 }
  0x61   :  { %3167 = vmatmul.msk.f32.gmra.mxu3 %vm236_vm1, %v3810_v18  ;;  %529 = vmatmul.f32.vlgmr.msra.gmra.mxu2 %v5811_v50  ;;  %v6071_v18 = vld [vmem:[#allocation13_spill] sm:$0xff] }
  0x62   :  { %670 = vmatpush.msrb.mxu2 %v3985_v60  ;;  %659 = vmatpush.msrb.mxu1 %v3962_v54 }
  0x63   :  { %698 = vmatpush.msrb.mxu3 %v3970_v57  ;;  %787 = vmatpush.msra.mxu0 %v3853_v29 }
  0x64   :  { %671 = vmatpush.msrb.mxu2 %v3997_v62  ;;  %660 = vmatpush.msrb.mxu1 %v3968_v56 }
  0x65   :  { %699 = vmatpush.msrb.mxu3 %v3999_v63  ;;  %788 = vmatpush.msra.mxu0 %v3869_v32 }
  0x66   :  { %672 = vmatpush.msrb.mxu2 %v4005_v1  ;;  %661 = vmatpush.msrb.mxu1 %v3977_v59 }
  0x67   :  { %700 = vmatpush.msrb.mxu3 %v4003_v0  ;;  %789 = vmatpush.msra.mxu0 %v3882_v34 }
  0x68   :  { %673 = vmatpush.msrb.mxu2 %v4011_v4  ;;  %662 = vmatpush.msrb.mxu1 %v3988_v61 }
  0x69   :  { %3168 = vmatmul.msk.f32.gmra.mxu3 %vm236_vm1, %v3860_v30  ;;  %790 = vmatpush.msra.mxu0 %v3892_v38  ;;  %v6072_v30 = vld [vmem:[#allocation15_spill] sm:$0xff] }
  0x6a   :  { %674 = vmatpush.msrb.mxu2 %v4017_v5  ;;  %801 = vmatpush.msra.mxu1 %v3779_v10 }
  0x6b   :  { %701 = vmatpush.msrb.mxu3 %v4031_v7  ;;  %791 = vmatpush.msra.mxu0 %v3900_v40 }
  0x6c   :  { %675 = vmatpush.msrb.mxu2 %v4029_v6  ;;  %802 = vmatpush.msra.mxu1 %v3791_v13 }
  0x6d   :  { %702 = vmatpush.msrb.mxu3 %v4033_v8  ;;  %792 = vmatpush.msra.mxu0 %v6070_v3 }
  0x6e   :  { %676 = vmatpush.msrb.mxu2 %v4037_v19  ;;  %803 = vmatpush.msra.mxu1 %v3800_v16 }
  0x6f   :  { %793 = vmatpush.msra.mxu0 %v6071_v18 }
  0x70   :  { %677 = vmatpush.msrb.mxu2 %v4043_v31  ;;  %804 = vmatpush.msra.mxu1 %v3824_v21 }
  0x71   :  { %549 = vmatmul.f32.vlgmr.msra.gmra.mxu3 %v5811_v50  ;;  %794 = vmatpush.msra.mxu0 %v6072_v30  ;;  %v6073_v50 = vld [vmem:[#allocation17_spill] sm:$0xff] }
  0x72   :  { %678 = vmatpush.msrb.mxu2 %v4049_v41  ;;  %841 = vmatpush.msra.mxu3 %v3785_v11 }
  0x73   :  { %805 = vmatpush.msra.mxu1 %v3837_v24  ;;  %795 = vmatpush.msra.mxu0 %v6073_v50 }
  0x74   :  { %679 = vmatpush.msrb.mxu2 %v4060_v44  ;;  %842 = vmatpush.msra.mxu3 %v3795_v14 }
  0x75   :  { %806 = vmatpush.msra.mxu1 %v3846_v27  ;;  %796 = vmatpush.msra.mxu0 %v3948_v51 }
  0x76   :  { %680 = vmatpush.msrb.mxu2 %v4064_v48  ;;  %843 = vmatpush.msra.mxu3 %v3805_v17 }
  0x77   :  { %807 = vmatpush.msra.mxu1 %v3871_v33 }
  0x78   :  { %681 = vmatpush.msrb.mxu2 %v4070_v42  ;;  %844 = vmatpush.msra.mxu3 %v3829_v22 }
  0x79   :  { %808 = vmatpush.msra.mxu1 %v3884_v35 }
  0x7a   :  { %682 = vmatpush.msrb.mxu2 %v4076_v2  ;;  %845 = vmatpush.msra.mxu3 %v3841_v25 }
  0x7b   :  { %809 = vmatpush.msra.mxu1 %v3895_v39 }
  0x7c   :  { %821 = vmatpush.msra.mxu2 %v3954_v52  ;;  %846 = vmatpush.msra.mxu3 %v3851_v28 }
  0x7d   :  { %810 = vmatpush.msra.mxu1 %v3914_v43 }
  0x7e   :  { %822 = vmatpush.msra.mxu2 %v3965_v55  ;;  %847 = vmatpush.msra.mxu3 %v3886_v36 }
  0x7f   :  { %811 = vmatpush.msra.mxu1 %v3928_v46 }
  0x80   :  { %823 = vmatpush.msra.mxu2 %v3974_v58  ;;  %848 = vmatpush.msra.mxu3 %v3890_v37 }
  0x81   :  { %812 = vmatpush.msra.mxu1 %v3937_v49 }
  0x82   :  { %824 = vmatpush.msra.mxu2 %v3985_v60  ;;  %849 = vmatpush.msra.mxu3 %v3926_v45 }
  0x83   :  { %813 = vmatpush.msra.mxu1 %v3962_v54 }
  0x84   :  { %825 = vmatpush.msra.mxu2 %v3997_v62  ;;  %850 = vmatpush.msra.mxu3 %v3932_v47 }
  0x85   :  { %814 = vmatpush.msra.mxu1 %v3968_v56 }
  0x86   :  { %826 = vmatpush.msra.mxu2 %v4005_v1  ;;  %851 = vmatpush.msra.mxu3 %v3960_v53 }
  0x87   :  { %815 = vmatpush.msra.mxu1 %v3977_v59 }
  0x88   :  { %827 = vmatpush.msra.mxu2 %v4011_v4  ;;  %852 = vmatpush.msra.mxu3 %v3970_v57 }
  0x89   :  { %816 = vmatpush.msra.mxu1 %v3988_v61 }
  0x8a   :  { %828 = vmatpush.msra.mxu2 %v4017_v5  ;;  %853 = vmatpush.msra.mxu3 %v3999_v63 }
  0x8c   :  { %829 = vmatpush.msra.mxu2 %v4029_v6  ;;  %854 = vmatpush.msra.mxu3 %v4003_v0 }
  0x8e   :  { %830 = vmatpush.msra.mxu2 %v4037_v19  ;;  %855 = vmatpush.msra.mxu3 %v4031_v7 }
  0x90   :  { %831 = vmatpush.msra.mxu2 %v4043_v31  ;;  %856 = vmatpush.msra.mxu3 %v4033_v8  ;;  %v217_v8 = vld [vmem:[%s5796_s3] sm:$0xf] }
  0x91   :  { %v220_v50 = vperm.slane %v217_v8, 1 }
  0x92   :  { %832 = vmatpush.msra.mxu2 %v4049_v41 }
  0x94   :  { %833 = vmatpush.msra.mxu2 %v4060_v44  ;;  %v4188_v51 = vpop.f32.mrf.mxu1 }
  0x95   :  { %6074 = vst [vmem:[#allocation35_spill] sm:$0xff] %v4188_v51 }
  0x96   :  { %834 = vmatpush.msra.mxu2 %v4064_v48 }
  0x98   :  { %835 = vmatpush.msra.mxu2 %v4070_v42  ;;  %v4206_v42 = vperm.slane %v217_v8, 2 }
  0x9a   :  { %836 = vmatpush.msra.mxu2 %v4076_v2 }
  0x9b   :  { %v4193_v61 = vpop.f32.mrf.mxu3  ;;  %v4195_v59 = vpop.f32.mrf.mxu2 }
  0x9c   :  { %6075 = vst [vmem:[#allocation36_spill] sm:$0xff] %v4193_v61 }
  0x9d   :  { %v328_v7 = vpop.f32.mrf.mxu1 }
  0xa3   :  { %v4200_v0 = vpop.f32.mrf.mxu3 }
  0xa4   :  { %6076 = vst [vmem:[#allocation37_spill] sm:$0xff] %v4200_v0  ;;  %v4202_v56 = vpop.f32.mrf.mxu2 }
  0xa5   :  { %6077 = vst [vmem:[#allocation38_spill] sm:$0xff] %v4202_v56  ;;  %v331_v51 = vpop.f32.mrf.mxu1 }
  0xa6   :  { %v4204_v48 = vadd.f32 %v331_v51, %v220_v50  ;;  %v222_v51 = vperm.slane %v217_v8, 3 }
  0xa8   :  { %6078 = vst [vmem:[#allocation39_spill] sm:$0xff] %v4204_v48 }
  0xac   :  { %v4208_v2 = vpop.f32.mrf.mxu3  ;;  %v375_v61 = vpop.f32.mrf.mxu2 }
  0xad   :  { %6079 = vst [vmem:[#allocation40_spill] sm:$0xff] %v4208_v2  ;;  %v4211_v30 = vadd.f32 %v375_v61, %v4206_v42  ;;  %v334_v63 = vpop.f32.mrf.mxu1 }
  0xae   :  { %v4213_v44 = vadd.f32 %v334_v63, %v220_v50 }
  0xaf   :  { %6080 = vst [vmem:[#allocation41_spill] sm:$0xff] %v4211_v30 }
  0xb0   :  { %6081 = vst [vmem:[#allocation42_spill] sm:$0xff] %v4213_v44 }
  0xb4   :  { %v378_v54 = vpop.f32.mrf.mxu2  ;;  %v410_v18 = vpop.f32.mrf.mxu3 }
  0xb5   :  { %v4216_v0 = vadd.f32 %v378_v54, %v4206_v42  ;;  %v337_v56 = vpop.f32.mrf.mxu1 }
  0xb6   :  { %v4218_v57 = vadd.f32 %v337_v56, %v220_v50 }
  0xb7   :  { %6082 = vst [vmem:[#allocation43_spill] sm:$0xff] %v4216_v0 }
  0xb8   :  { %6083 = vst [vmem:[#allocation44_spill] sm:$0xff] %v4218_v57 }
  0xbc   :  { %v381_v48 = vpop.f32.mrf.mxu2  ;;  %v413_v41 = vpop.f32.mrf.mxu3 }
  0xbd   :  { %v4221_v2 = vadd.f32 %v381_v48, %v4206_v42  ;;  %v4223_v49 = vadd.f32 %v413_v41, %v222_v51  ;;  %v340_v61 = vpop.f32.mrf.mxu1 }
  0xbe   :  { %v4225_v30 = vadd.f32 %v340_v61, %v220_v50 }
  0xbf   :  { %6084 = vst [vmem:[#allocation45_spill] sm:$0xff] %v4221_v2 }
  0xc0   :  { %6085 = vst [vmem:[#allocation46_spill] sm:$0xff] %v4223_v49 }
  0xc1   :  { %6086 = vst [vmem:[#allocation47_spill] sm:$0xff] %v4225_v30 }
  0xc4   :  { %v384_v63 = vpop.f32.mrf.mxu2  ;;  %v416_v44 = vpop.f32.mrf.mxu3 }
  0xc5   :  { %v4228_v3 = vadd.f32 %v384_v63, %v4206_v42  ;;  %v4230_v54 = vadd.f32 %v416_v44, %v222_v51  ;;  %v343_v56 = vpop.f32.mrf.mxu1 }
  0xc6   :  { %v4232_v0 = vadd.f32 %v343_v56, %v220_v50 }
  0xc7   :  { %6087 = vst [vmem:[#allocation48_spill] sm:$0xff] %v4228_v3 }
  0xc8   :  { %6088 = vst [vmem:[#allocation49_spill] sm:$0xff] %v4230_v54  ;;  %v4248_v54 = vperm.slane %v217_v8, 0 }
  0xc9   :  { %6089 = vst [vmem:[#allocation50_spill] sm:$0xff] %v4232_v0  ;;  %v287_v0 = vpop.f32.mrf.mxu0 }
  0xca   :  { %6096 = vst [vmem:[#allocation57_spill] sm:$0xff] %v4248_v54 }
  0xcc   :  { %v387_v57 = vpop.f32.mrf.mxu2  ;;  %v419_v53 = vpop.f32.mrf.mxu3 }
  0xcd   :  { %v4235_v48 = vadd.f32 %v387_v57, %v4206_v42  ;;  %v4237_v41 = vadd.f32 %v419_v53, %v222_v51  ;;  %v346_v2 = vpop.f32.mrf.mxu1  ;;  %v288_v57 = vadd.f32 %v287_v0, %v4248_v54  ;;  %v329_v53 = vadd.f32 %v328_v7, %v220_v50 }
  0xce   :  { %v4239_v61 = vadd.f32 %v346_v2, %v220_v50 }
  0xcf   :  { %6090 = vst [vmem:[#allocation51_spill] sm:$0xff] %v4235_v48 }
  0xd0   :  { %6091 = vst [vmem:[#allocation52_spill] sm:$0xff] %v4237_v41 }
  0xd1   :  { %6092 = vst [vmem:[#allocation53_spill] sm:$0xff] %v4239_v61 }
  0xd4   :  { %v390_v30 = vpop.f32.mrf.mxu2  ;;  %v422_v49 = vpop.f32.mrf.mxu3 }
  0xd5   :  { %v4242_v63 = vadd.f32 %v390_v30, %v4206_v42  ;;  %v4244_v44 = vadd.f32 %v422_v49, %v222_v51  ;;  %v349_v3 = vpop.f32.mrf.mxu1 }
  0xd6   :  { %v4246_v56 = vadd.f32 %v349_v3, %v220_v50 }
  0xd7   :  { %6093 = vst [vmem:[#allocation54_spill] sm:$0xff] %v4242_v63 }
  0xd8   :  { %6094 = vst [vmem:[#allocation55_spill] sm:$0xff] %v4244_v44 }
  0xd9   :  { %6095 = vst [vmem:[#allocation56_spill] sm:$0xff] %v4246_v56 }
  0xdc   :  { %v425_v48 = vpop.f32.mrf.mxu3  ;;  %v490_v41 = vpop.f32.mrf.mxu2 }
  0xdd   :  { %v4251_v2 = vadd.f32 %v425_v48, %v222_v51  ;;  %v553_v61 = vadd.f32 %v490_v41, %v288_v57  ;;  %v510_v31 = vpop.f32.mrf.mxu1 }
  0xde   :  { %v554_v46 = vadd.f32 %v510_v31, %v329_v53 }
  0xdf   :  { %6097 = vst [vmem:[#allocation58_spill] sm:$0xff] %v4251_v2  ;;  %v3169_v30 = vmul.f32 -1.442695, %v553_v61  ;;  %v411_v61 = vadd.f32 %v410_v18, %v222_v51 }
  0xe0   :  { %v3170_v63 = vmul.f32 -1.442695, %v554_v46 }
  0xe1   :  { %3226 = vpow2.f32 %v3169_v30 }
  0xe2   :  { %3228 = vpow2.f32 %v3170_v63 }
  0xe4   :  { %v428_v49 = vpop.f32.mrf.mxu3 }
  0xe5   :  { %v4253_v3 = vadd.f32 %v428_v49, %v222_v51 }
  0xe7   :  { %6098 = vst [vmem:[#allocation59_spill] sm:$0xff] %v4253_v3  ;;  %v3227_v56 = vpop.eup %3226  ;;  %v530_v3 = vpop.f32.mrf.mxu2 }
  0xe8   :  { %v3229_v8 = vpop.eup %3228  ;;  %v560_v44 = vadd.f32 1.0, %v3227_v56  ;;  %v370_v56 = vadd.f32 %v4195_v59, %v4206_v42 }
  0xe9   :  { %v579_v40 = vadd.f32 1.0, %v3229_v8 }
  0xea   :  { %3230 = vrcp.f32 %v560_v44  ;;  %vm566_vm2 = vweird.f32 %v560_v44  ;;  %v572_v54 = vand.u32 2147483648, %v560_v44 }
  0xeb   :  { %3232 = vrcp.f32 %v579_v40  ;;  %vm585_vm5 = vweird.f32 %v579_v40 }
  0xec   :  { %v431_v50 = vpop.f32.mrf.mxu3 }
  0xed   :  { %v4255_v0 = vadd.f32 %v431_v50, %v222_v51  ;;  %v591_v50 = vand.u32 2147483648, %v579_v40 }
  0xef   :  { %6099 = vst [vmem:[#allocation60_spill] sm:$0xff] %v4255_v0  ;;  %v555_v0 = vadd.f32 %v530_v3, %v370_v56  ;;  %v592_v59 = vor.u32 1.1754944e-38, %v591_v50 }
  0xf0   :  { %v3231_v7 = vpop.eup %3230 }
  0xf1   :  { %v3233_v48 = vpop.eup %3232  ;;  %v562_v41 = vmul.f32 %v3231_v7, %v560_v44  ;;  %vm567_vm3 = vweird.f32 %v3231_v7 }
  0xf2   :  { %v581_v31 = vmul.f32 %v3233_v48, %v579_v40  ;;  %vm586_vm4 = vweird.f32 %v3233_v48  ;;  %vm4259_vm6 = vmor %vm566_vm2, %vm567_vm3 }
  0xf3   :  { %v563_v46 = vsub.f32 1.0, %v562_v41  ;;  %v570_v41 = vand.u32 2147483647, %v560_v44  ;;  %vm587_vm7 = vmor %vm585_vm5, %vm586_vm4 }
  0xf4   :  { %v582_v57 = vsub.f32 1.0, %v581_v31  ;;  %v550_v63 = vpop.f32.mrf.mxu3  ;;  %v589_v31 = vand.u32 2147483647, %v579_v40 }
  0xf5   :  { %v556_v53 = vadd.f32 %v550_v63, %v411_v61  ;;  %v564_v2 = vmul.f32 %v3231_v7, %v563_v46  ;;  %vm571_vm8 = vcmp.eq.f32.partialorder %v570_v41, 8.507059e+37 }
  0xf6   :  { %v583_v30 = vmul.f32 %v3233_v48, %v582_v57  ;;  %v573_v57 = vor.u32 1.1754944e-38, %v572_v54  ;;  %vm590_vm9 = vcmp.eq.f32.partialorder %v589_v31, 8.507059e+37 }
  0xf7   :  { %v3171_v49 = vmul.f32 -1.442695, %v556_v53  ;;  %v565_v18 = vadd.f32 %v3231_v7, %v564_v2 }
  0xf8   :  { %v584_v8 = vadd.f32 %v3233_v48, %v583_v30 }
  0xf9   :  { %3234 = vpow2.f32 %v3171_v49  ;;  %v569_v63 = vsel %vm4259_vm6, %v3231_v7, %v565_v18 }
  0xfa   :  { %v588_v61 = vsel %vm587_vm7, %v3233_v48, %v584_v8  ;;  %3236 = vtanh.f32 %v555_v0  ;;  %v574_v2 = vsel %vm571_vm8, %v573_v57, %v569_v63  ;;  %v6128_v57 = vld [vmem:[#allocation39_spill] sm:$0xff] }
  0xfb   :  { %v593_v53 = vsel %vm590_vm9, %v592_v59, %v588_v61 }
  0xfc   :  { %v615_v30 = vmul.f32 0.0, %v593_v53 }
  0xff   :  { %v3235_v46 = vpop.eup %3234 }
 0x100   :  { %v598_v3 = vadd.f32 1.0, %v3235_v46  ;;  %v3237_v49 = vpop.eup %3236 }
 0x101   :  { %v616_v56 = vmul.f32 %v3237_v49, %v574_v2 }
 0x102   :  { %3238 = vrcp.f32 %v598_v3  ;;  %v610_v54 = vand.u32 2147483648, %v598_v3  ;;  %v608_v7 = vand.u32 2147483647, %v598_v3  ;;  %vm604_vm11 = vweird.f32 %v598_v3 }
 0x103   :  { %v4265_v40 = vadd.f32 %v616_v56, %v615_v30  ;;  %v6129_v30 = vld [vmem:[#allocation46_spill] sm:$0xff] }
 0x104   :  { %v611_v18 = vor.u32 1.1754944e-38, %v610_v54  ;;  %vm609_vm13 = vcmp.eq.f32.partialorder %v608_v7, 8.507059e+37 }
 0x105   :  { %3240 = vtanh.f32 %v4265_v40 }
 0x108   :  { %v3239_v44 = vpop.eup %3238 }
 0x109   :  { %v600_v48 = vmul.f32 %v3239_v44, %v598_v3  ;;  %vm605_vm10 = vweird.f32 %v3239_v44 }
 0x10a   :  { %vm606_vm12 = vmor %vm604_vm11, %vm605_vm10 }
 0x10b   :  { %v601_v8 = vsub.f32 1.0, %v600_v48  ;;  %v3241_v41 = vpop.eup %3240 }
 0x10d   :  { %v602_v0 = vmul.f32 %v3239_v44, %v601_v8 }
 0x10f   :  { %v603_v50 = vadd.f32 %v3239_v44, %v602_v0 }
 0x111   :  { %v607_v51 = vsel %vm606_vm12, %v3239_v44, %v603_v50  ;;  %v6130_v50 = vld [vmem:[#allocation38_spill] sm:$0xff] }
 0x112   :  { %v612_v31 = vsel %vm609_vm13, %v611_v18, %v607_v51  ;;  %v373_v18 = vadd.f32 %v6130_v50, %v4206_v42  ;;  %v4348_v50 = vld [vmem:[#allocation4 + $0x1e8] sm:$0xff] }
 0x113   :  { %v619_v61 = vmul.f32 %v3241_v41, %v612_v31 }
 0x115   :  { %643 = vmatmul.f32.vlgmr.msrb.gmra.mxu0 %v619_v61  ;;  %663 = vmatmul.f32.vlgmr.msrb.gmra.mxu1 %v619_v61 }
 0x116   :  { %683 = vmatmul.f32.vlgmr.msrb.gmra.mxu2 %v619_v61  ;;  %703 = vmatmul.f32.vlgmr.msrb.gmra.mxu3 %v619_v61 }
 0x117   :  { %935 = vmatpush.msrb.mxu0 %v3777_v9  ;;  %955 = vmatpush.msrb.mxu1 %v3779_v10  ;;  %v6102_v9 = vld [vmem:[#allocation11_spill] sm:$0xff]  ;;  %v6103_v10 = vld [vmem:[#allocation14_spill] sm:$0xff] }
 0x118   :  { %975 = vmatpush.msrb.mxu2 %v3954_v52  ;;  %995 = vmatpush.msrb.mxu3 %v3785_v11  ;;  %v6104_v11 = vld [vmem:[#allocation29_spill] sm:$0xff] }
 0x119   :  { %936 = vmatpush.msrb.mxu0 %v3789_v12  ;;  %956 = vmatpush.msrb.mxu1 %v3791_v13  ;;  %v6105_v12 = vld [vmem:[#allocation19_spill] sm:$0xff]  ;;  %v6106_v13 = vld [vmem:[#allocation12_spill] sm:$0xff] }
 0x11a   :  { %976 = vmatpush.msrb.mxu2 %v3965_v55  ;;  %996 = vmatpush.msrb.mxu3 %v3795_v14  ;;  %v6107_v14 = vld [vmem:[#allocation16_spill] sm:$0xff] }
 0x11b   :  { %937 = vmatpush.msrb.mxu0 %v3797_v15  ;;  %957 = vmatpush.msrb.mxu1 %v3800_v16  ;;  %v6108_v15 = vld [vmem:[#allocation30_spill] sm:$0xff] }
 0x11c   :  { %977 = vmatpush.msrb.mxu2 %v3974_v58  ;;  %997 = vmatpush.msrb.mxu3 %v3805_v17  ;;  %v6109_v16 = vld [vmem:[#allocation22_spill] sm:$0xff]  ;;  %v6110_v17 = vld [vmem:[#allocation13_spill] sm:$0xff] }
 0x11d   :  { %938 = vmatpush.msrb.mxu0 %v3821_v20  ;;  %958 = vmatpush.msrb.mxu1 %v3824_v21  ;;  %v6111_v20 = vld [vmem:[#allocation20_spill] sm:$0xff]  ;;  %v6112_v21 = vld [vmem:[#allocation31_spill] sm:$0xff] }
 0x11e   :  { %978 = vmatpush.msrb.mxu2 %v3985_v60  ;;  %998 = vmatpush.msrb.mxu3 %v3829_v22  ;;  %v6113_v22 = vld [vmem:[#allocation25_spill] sm:$0xff] }
 0x11f   :  { %939 = vmatpush.msrb.mxu0 %v3835_v23  ;;  %959 = vmatpush.msrb.mxu1 %v3837_v24  ;;  %v6114_v23 = vld [vmem:[#allocation15_spill] sm:$0xff]  ;;  %v6115_v24 = vld [vmem:[#allocation21_spill] sm:$0xff] }
 0x120   :  { %979 = vmatpush.msrb.mxu2 %v3997_v62  ;;  %999 = vmatpush.msrb.mxu3 %v3841_v25  ;;  %v6116_v25 = vld [vmem:[#allocation32_spill] sm:$0xff] }
 0x121   :  { %940 = vmatpush.msrb.mxu0 %v3843_v26  ;;  %960 = vmatpush.msrb.mxu1 %v3846_v27  ;;  %v6117_v26 = vld [vmem:[#allocation26_spill] sm:$0xff]  ;;  %v6118_v27 = vld [vmem:[#allocation17_spill] sm:$0xff] }
 0x122   :  { %980 = vmatpush.msrb.mxu2 %v4005_v1  ;;  %1000 = vmatpush.msrb.mxu3 %v3851_v28  ;;  %v6119_v28 = vld [vmem:[#allocation23_spill] sm:$0xff] }
 0x123   :  { %941 = vmatpush.msrb.mxu0 %v3853_v29  ;;  %961 = vmatpush.msrb.mxu1 %v3871_v33  ;;  %v6120_v29 = vld [vmem:[#allocation33_spill] sm:$0xff]  ;;  %v6122_v33 = vld [vmem:[#allocation18_spill] sm:$0xff] }
 0x124   :  { %981 = vmatpush.msrb.mxu2 %v4011_v4  ;;  %1001 = vmatpush.msrb.mxu3 %v3886_v36  ;;  %v6125_v36 = vld [vmem:[#allocation28_spill] sm:$0xff] }
 0x125   :  { %942 = vmatpush.msrb.mxu0 %v3869_v32  ;;  %962 = vmatpush.msrb.mxu1 %v3884_v35  ;;  %v6121_v32 = vld [vmem:[#allocation27_spill] sm:$0xff]  ;;  %v6124_v35 = vld [vmem:[#allocation34_spill] sm:$0xff] }
 0x126   :  { %982 = vmatpush.msrb.mxu2 %v4017_v5  ;;  %1002 = vmatpush.msrb.mxu3 %v3890_v37  ;;  %v290_v37 = vpop.f32.mrf.mxu0 }
 0x127   :  { %943 = vmatpush.msrb.mxu0 %v3882_v34  ;;  %963 = vmatpush.msrb.mxu1 %v3895_v39  ;;  %v6123_v34 = vld [vmem:[#allocation24_spill] sm:$0xff] }
 0x128   :  { %983 = vmatpush.msrb.mxu2 %v4029_v6  ;;  %1003 = vmatpush.msrb.mxu3 %v3926_v45 }
 0x129   :  { %944 = vmatpush.msrb.mxu0 %v3892_v38  ;;  %964 = vmatpush.msrb.mxu1 %v3914_v43  ;;  %v6127_v43 = vld [vmem:[#allocation57_spill] sm:$0xff] }
 0x12a   :  { %984 = vmatpush.msrb.mxu2 %v4037_v19  ;;  %1004 = vmatpush.msrb.mxu3 %v3932_v47  ;;  %v291_v45 = vadd.f32 %v290_v37, %v6127_v43 }
 0x12b   :  { %945 = vmatpush.msrb.mxu0 %v6102_v9  ;;  %965 = vmatpush.msrb.mxu1 %v6103_v10 }
 0x12c   :  { %985 = vmatpush.msrb.mxu2 %v6104_v11  ;;  %1005 = vmatpush.msrb.mxu3 %v6105_v12 }
 0x12d   :  { %946 = vmatpush.msrb.mxu0 %v6106_v13  ;;  %966 = vmatpush.msrb.mxu1 %v6107_v14 }
 0x12e   :  { %986 = vmatpush.msrb.mxu2 %v6108_v15  ;;  %1006 = vmatpush.msrb.mxu3 %v6109_v16  ;;  %v4332_v38 = vpop.f32.mrf.mxu0 }
 0x12f   :  { %947 = vmatpush.msrb.mxu0 %v6110_v17  ;;  %967 = vmatpush.msrb.mxu1 %v6111_v20 }
 0x130   :  { %987 = vmatpush.msrb.mxu2 %v6112_v21  ;;  %1007 = vmatpush.msrb.mxu3 %v6113_v22 }
 0x131   :  { %948 = vmatpush.msrb.mxu0 %v6114_v23  ;;  %968 = vmatpush.msrb.mxu1 %v6115_v24 }
 0x132   :  { %988 = vmatpush.msrb.mxu2 %v6116_v25  ;;  %1008 = vmatpush.msrb.mxu3 %v6117_v26 }
 0x133   :  { %949 = vmatpush.msrb.mxu0 %v6118_v27  ;;  %969 = vmatpush.msrb.mxu1 %v6119_v28 }
 0x134   :  { %989 = vmatpush.msrb.mxu2 %v6120_v29  ;;  %1009 = vmatpush.msrb.mxu3 %v6121_v32 }
 0x135   :  { %950 = vmatpush.msrb.mxu0 %v6122_v33  ;;  %970 = vmatpush.msrb.mxu1 %v6123_v34 }
 0x136   :  { %990 = vmatpush.msrb.mxu2 %v6124_v35  ;;  %1010 = vmatpush.msrb.mxu3 %v6125_v36  ;;  %v4334_v39 = vpop.f32.mrf.mxu0 }
 0x137   :  { %6126 = vst [vmem:[#allocation11_spill] sm:$0xff] %v4334_v39 }
 0x192   :  { %v644_v47 = vpop.f32.mrf.mxu0  ;;  %v664_v46 = vpop.f32.mrf.mxu1 }
 0x193   :  { %v707_v59 = vadd.f32 %v644_v47, %v291_v45  ;;  %v708_v63 = vadd.f32 %v664_v46, %v6128_v57 }
 0x195   :  { %v3172_v3 = vmul.f32 -1.442695, %v707_v59  ;;  %v3173_v53 = vmul.f32 -1.442695, %v708_v63 }
 0x197   :  { %3242 = vpow2.f32 %v3172_v3 }
 0x198   :  { %3244 = vpow2.f32 %v3173_v53 }
 0x199   :  { %v704_v2 = vpop.f32.mrf.mxu3  ;;  %v684_v0 = vpop.f32.mrf.mxu2 }
 0x19a   :  { %v710_v49 = vadd.f32 %v704_v2, %v6129_v30  ;;  %v709_v31 = vadd.f32 %v684_v0, %v373_v18  ;;  %v4352_v18 = vld [vmem:[#allocation4 + $0x1f8] sm:$0xff] }
 0x19c   :  { %v3174_v56 = vmul.f32 -1.442695, %v710_v49 }
 0x19d   :  { %v3243_v44 = vpop.eup %3242 }
 0x19e   :  { %v3245_v48 = vpop.eup %3244  ;;  %v714_v8 = vadd.f32 1.0, %v3243_v44  ;;  %3246 = vpow2.f32 %v3174_v56 }
 0x19f   :  { %v733_v54 = vadd.f32 1.0, %v3245_v48 }
 0x1a0   :  { %3248 = vrcp.f32 %v714_v8  ;;  %v726_v14 = vand.u32 2147483648, %v714_v8  ;;  %v724_v20 = vand.u32 2147483647, %v714_v8  ;;  %vm720_vm0 = vweird.f32 %v714_v8 }
 0x1a1   :  { %3250 = vrcp.f32 %v733_v54  ;;  %v745_v16 = vand.u32 2147483648, %v733_v54  ;;  %v743_v24 = vand.u32 2147483647, %v733_v54  ;;  %vm739_vm2 = vweird.f32 %v733_v54 }
 0x1a2   :  { %v727_v28 = vor.u32 1.1754944e-38, %v726_v14  ;;  %vm725_vm5 = vcmp.eq.f32.partialorder %v724_v20, 8.507059e+37  ;;  %v4392_v14 = vld [vmem:[#allocation4 + $0x178] sm:$0xff]  ;;  %v4405_v20 = vld [vmem:[#allocation4 + $0x120] sm:$0xff] }
 0x1a3   :  { %v746_v37 = vor.u32 1.1754944e-38, %v745_v16  ;;  %vm744_vm6 = vcmp.eq.f32.partialorder %v743_v24, 8.507059e+37  ;;  %v4395_v16 = vld [vmem:[#allocation4 + $0x140] sm:$0xff] }
 0x1a4   :  { %v3247_v7 = vpop.eup %3246  ;;  %v4415_v24 = vld [vmem:[#allocation4 + $0x100] sm:$0xff] }
 0x1a5   :  { %v752_v51 = vadd.f32 1.0, %v3247_v7 }
 0x1a6   :  { %v3249_v41 = vpop.eup %3248 }
 0x1a7   :  { %v3251_v61 = vpop.eup %3250  ;;  %v716_v9 = vmul.f32 %v3249_v41, %v714_v8  ;;  %3252 = vrcp.f32 %v752_v51  ;;  %vm721_vm14 = vweird.f32 %v3249_v41  ;;  %v764_v56 = vand.u32 2147483648, %v752_v51 }
 0x1a8   :  { %v735_v10 = vmul.f32 %v3251_v61, %v733_v54  ;;  %3254 = vtanh.f32 %v709_v31  ;;  %vm740_vm15 = vweird.f32 %v3251_v61  ;;  %vm722_vm3 = vmor %vm720_vm0, %vm721_vm14  ;;  %vm758_vm8 = vweird.f32 %v752_v51  ;;  %v4362_v31 = vld [vmem:[#allocation4 + $0x1d8] sm:$0xff] }
 0x1a9   :  { %v717_v12 = vsub.f32 1.0, %v716_v9  ;;  %vm741_vm4 = vmor %vm739_vm2, %vm740_vm15  ;;  %v762_v44 = vand.u32 2147483647, %v752_v51  ;;  %v765_v8 = vor.u32 1.1754944e-38, %v764_v56  ;;  %v4372_v9 = vld [vmem:[#allocation4 + $0x1b8] sm:$0xff] }
 0x1aa   :  { %v736_v13 = vsub.f32 1.0, %v735_v10  ;;  %v4375_v10 = vld [vmem:[#allocation4 + $0x180] sm:$0xff] }
 0x1ab   :  { %v718_v17 = vmul.f32 %v3249_v41, %v717_v12  ;;  %vm763_vm10 = vcmp.eq.f32.partialorder %v762_v44, 8.507059e+37  ;;  %v4382_v12 = vld [vmem:[#allocation4 + $0x198] sm:$0xff] }
 0x1ac   :  { %v737_v23 = vmul.f32 %v3251_v61, %v736_v13  ;;  %v4385_v13 = vld [vmem:[#allocation4 + $0x160] sm:$0xff] }
 0x1ad   :  { %v3253_v27 = vpop.eup %3252  ;;  %v719_v42 = vadd.f32 %v3249_v41, %v718_v17  ;;  %v4402_v17 = vld [vmem:[#allocation4 + $0x158] sm:$0xff] }
 0x1ae   :  { %v738_v33 = vadd.f32 %v3251_v61, %v737_v23  ;;  %v754_v34 = vmul.f32 %v3253_v27, %v752_v51  ;;  %v3255_v47 = vpop.eup %3254  ;;  %vm759_vm7 = vweird.f32 %v3253_v27  ;;  %v4355_v51 = vld [vmem:[#allocation4 + $0x1c0] sm:$0xff]  ;;  %v4412_v23 = vld [vmem:[#allocation4 + $0x138] sm:$0xff] }
 0x1af   :  { %v723_v45 = vsel %vm722_vm3, %v3249_v41, %v719_v42  ;;  %vm760_vm9 = vmor %vm758_vm8, %vm759_vm7  ;;  %v4358_v41 = vld [vmem:[#allocation4 + $0x1c8] sm:$0xff]  ;;  %v4425_v42 = vld [vmem:[#allocation4 + $0xe0] sm:$0xff] }
 0x1b0   :  { %v728_v46 = vsel %vm725_vm5, %v727_v28, %v723_v45  ;;  %v742_v59 = vsel %vm741_vm4, %v3251_v61, %v738_v33  ;;  %v755_v57 = vsub.f32 1.0, %v754_v34  ;;  %v4365_v61 = vld [vmem:[#allocation4 + $0x1a0] sm:$0xff]  ;;  %v4432_v28 = vld [vmem:[#allocation4 + $0xf8] sm:$0xff] }
 0x1b1   :  { %v747_v63 = vsel %vm744_vm6, %v746_v37, %v742_v59  ;;  %v770_v3 = vmul.f32 %v3255_v47, %v728_v46  ;;  %v4435_v33 = vld [vmem:[#allocation4 + $0xc0] sm:$0xff]  ;;  %v4442_v34 = vld [vmem:[#allocation4 + $0xd8] sm:$0xff] }
 0x1b2   :  { %v769_v53 = vmul.f32 %v747_v63, %v4265_v40  ;;  %v756_v2 = vmul.f32 %v3253_v27, %v755_v57  ;;  %v4345_v40 = vld [vmem:[#allocation4 + $0x1e0] sm:$0xff]  ;;  %6131 = vst [vmem:[#allocation14_spill] sm:$0xff] %v4442_v34  ;;  %v4452_v45 = vld [vmem:[#allocation4 + $0xb8] sm:$0xff] }
 0x1b3   :  { %v4445_v37 = vld [vmem:[#allocation4 + $0xa0] sm:$0xff]  ;;  %6134 = vst [vmem:[#allocation12_spill] sm:$0xff] %v4452_v45  ;;  %v4462_v46 = vld [vmem:[#allocation4 + $0x98] sm:$0xff] }
 0x1b4   :  { %v4342_v30 = vadd.f32 %v770_v3, %v769_v53  ;;  %v757_v49 = vadd.f32 %v3253_v27, %v756_v2  ;;  %6132 = vst [vmem:[#allocation29_spill] sm:$0xff] %v4445_v37  ;;  %v4455_v47 = vld [vmem:[#allocation4 + $0x80] sm:$0xff]  ;;  %v4484_v3 = vld [vmem:[#allocation4 + $0x28] sm:$0xff]  ;;  %v6146_v2 = vld [vmem:[#allocation42_spill] sm:$0xff] }
 0x1b5   :  { %6135 = vst [vmem:[#allocation16_spill] sm:$0xff] %v4455_v47  ;;  %v4465_v59 = vld [vmem:[#allocation4 + $0x60] sm:$0xff] }
 0x1b6   :  { %3256 = vtanh.f32 %v4342_v30  ;;  %v761_v48 = vsel %vm760_vm9, %v3253_v27, %v757_v49  ;;  %v4422_v27 = vld [vmem:[#allocation4 + $0x118] sm:$0xff]  ;;  %6137 = vst [vmem:[#allocation22_spill] sm:$0xff] %v4462_v46  ;;  %v4473_v57 = vld [vmem:[#allocation4 + $0x40] sm:$0xff] }
 0x1b7   :  { %v766_v0 = vsel %vm763_vm10, %v765_v8, %v761_v48  ;;  %6138 = vst [vmem:[#allocation13_spill] sm:$0xff] %v4465_v59  ;;  %v4481_v63 = vld [vmem:[#allocation4 + $0x20] sm:$0xff]  ;;  %v6147_v48 = vld [vmem:[#allocation49_spill] sm:$0xff] }
 0x1b8   :  { %6140 = vst [vmem:[#allocation31_spill] sm:$0xff] %v4473_v57 }
 0x1b9   :  { %6142 = vst [vmem:[#allocation15_spill] sm:$0xff] %v4481_v63 }
 0x1ba   :  { %6143 = vst [vmem:[#allocation21_spill] sm:$0xff] %v4484_v3 }
 0x1bc   :  { %v3257_v54 = vpop.eup %3256 }
 0x1bd   :  { %v773_v7 = vmul.f32 %v3257_v54, %v766_v0 }
 0x1bf   :  { %797 = vmatmul.f32.vlgmr.msra.gmra.mxu0 %v773_v7  ;;  %817 = vmatmul.f32.vlgmr.msra.gmra.mxu1 %v773_v7 }
 0x1c0   :  { %837 = vmatmul.f32.vlgmr.msra.gmra.mxu2 %v773_v7  ;;  %857 = vmatmul.f32.vlgmr.msra.gmra.mxu3 %v773_v7 }
 0x1c1   :  { %1089 = vmatpush.msra.mxu0 %v4345_v40  ;;  %1109 = vmatpush.msra.mxu1 %v4348_v50 }
 0x1c2   :  { %1129 = vmatpush.msra.mxu2 %v3954_v52  ;;  %1149 = vmatpush.msra.mxu3 %v4352_v18  ;;  %v4368_v52 = vld [vmem:[#allocation4 + $0x1a8] sm:$0xff] }
 0x1c3   :  { %1090 = vmatpush.msra.mxu0 %v4355_v51  ;;  %1110 = vmatpush.msra.mxu1 %v4358_v41 }
 0x1c4   :  { %1130 = vmatpush.msra.mxu2 %v3965_v55  ;;  %1150 = vmatpush.msra.mxu3 %v4362_v31  ;;  %v4378_v55 = vld [vmem:[#allocation4 + $0x188] sm:$0xff] }
 0x1c5   :  { %1091 = vmatpush.msra.mxu0 %v4365_v61  ;;  %1111 = vmatpush.msra.mxu1 %v4368_v52 }
 0x1c6   :  { %1131 = vmatpush.msra.mxu2 %v3974_v58  ;;  %1151 = vmatpush.msra.mxu3 %v4372_v9  ;;  %v4388_v58 = vld [vmem:[#allocation4 + $0x168] sm:$0xff] }
 0x1c7   :  { %1092 = vmatpush.msra.mxu0 %v4375_v10  ;;  %1112 = vmatpush.msra.mxu1 %v4378_v55 }
 0x1c8   :  { %1132 = vmatpush.msra.mxu2 %v3985_v60  ;;  %1152 = vmatpush.msra.mxu3 %v4382_v12  ;;  %v4398_v60 = vld [vmem:[#allocation4 + $0x148] sm:$0xff] }
 0x1c9   :  { %1093 = vmatpush.msra.mxu0 %v4385_v13  ;;  %1113 = vmatpush.msra.mxu1 %v4388_v58 }
 0x1ca   :  { %1133 = vmatpush.msra.mxu2 %v3997_v62  ;;  %1153 = vmatpush.msra.mxu3 %v4392_v14  ;;  %v4408_v62 = vld [vmem:[#allocation4 + $0x128] sm:$0xff] }
 0x1cb   :  { %1094 = vmatpush.msra.mxu0 %v4395_v16  ;;  %1114 = vmatpush.msra.mxu1 %v4398_v60 }
 0x1cc   :  { %1134 = vmatpush.msra.mxu2 %v4005_v1  ;;  %1154 = vmatpush.msra.mxu3 %v4402_v17  ;;  %v4418_v1 = vld [vmem:[#allocation4 + $0x108] sm:$0xff] }
 0x1cd   :  { %1095 = vmatpush.msra.mxu0 %v4405_v20  ;;  %1115 = vmatpush.msra.mxu1 %v4408_v62 }
 0x1ce   :  { %1135 = vmatpush.msra.mxu2 %v4011_v4  ;;  %1155 = vmatpush.msra.mxu3 %v4412_v23  ;;  %v4428_v4 = vld [vmem:[#allocation4 + $0xe8] sm:$0xff] }
 0x1cf   :  { %1096 = vmatpush.msra.mxu0 %v4415_v24  ;;  %1116 = vmatpush.msra.mxu1 %v4418_v1 }
 0x1d0   :  { %1136 = vmatpush.msra.mxu2 %v4017_v5  ;;  %1156 = vmatpush.msra.mxu3 %v4422_v27  ;;  %v4438_v5 = vld [vmem:[#allocation4 + $0xc8] sm:$0xff] }
 0x1d1   :  { %1097 = vmatpush.msra.mxu0 %v4425_v42  ;;  %1117 = vmatpush.msra.mxu1 %v4428_v4 }
 0x1d2   :  { %1137 = vmatpush.msra.mxu2 %v4029_v6  ;;  %1157 = vmatpush.msra.mxu3 %v4432_v28  ;;  %v4448_v6 = vld [vmem:[#allocation4 + $0xa8] sm:$0xff] }
 0x1d3   :  { %1098 = vmatpush.msra.mxu0 %v4435_v33  ;;  %1118 = vmatpush.msra.mxu1 %v4438_v5  ;;  %6133 = vst [vmem:[#allocation19_spill] sm:$0xff] %v4448_v6 }
 0x1d4   :  { %1138 = vmatpush.msra.mxu2 %v4037_v19  ;;  %1158 = vmatpush.msra.mxu3 %v4442_v34  ;;  %v4458_v19 = vld [vmem:[#allocation4 + $0x88] sm:$0xff] }
 0x1d5   :  { %1099 = vmatpush.msra.mxu0 %v4445_v37  ;;  %1119 = vmatpush.msra.mxu1 %v4448_v6  ;;  %6136 = vst [vmem:[#allocation30_spill] sm:$0xff] %v4458_v19 }
 0x1d6   :  { %1139 = vmatpush.msra.mxu2 %v6104_v11  ;;  %1159 = vmatpush.msra.mxu3 %v4452_v45  ;;  %v4468_v11 = vld [vmem:[#allocation4 + $0x68] sm:$0xff] }
 0x1d7   :  { %1100 = vmatpush.msra.mxu0 %v4455_v47  ;;  %1120 = vmatpush.msra.mxu1 %v4458_v19  ;;  %6139 = vst [vmem:[#allocation20_spill] sm:$0xff] %v4468_v11 }
 0x1d8   :  { %1140 = vmatpush.msra.mxu2 %v6108_v15  ;;  %1160 = vmatpush.msra.mxu3 %v4462_v46  ;;  %v4476_v15 = vld [vmem:[#allocation4 + $0x48] sm:$0xff] }
 0x1d9   :  { %1101 = vmatpush.msra.mxu0 %v4465_v59  ;;  %1121 = vmatpush.msra.mxu1 %v4468_v11  ;;  %6141 = vst [vmem:[#allocation25_spill] sm:$0xff] %v4476_v15 }
 0x1da   :  { %1141 = vmatpush.msra.mxu2 %v6112_v21  ;;  %1161 = vmatpush.msra.mxu3 %v6113_v22  ;;  %v4489_v21 = vld [vmem:[#allocation4] sm:$0xff]  ;;  %v4492_v22 = vld [vmem:[#allocation4 + $0x8] sm:$0xff] }
 0x1db   :  { %1102 = vmatpush.msra.mxu0 %v4473_v57  ;;  %1122 = vmatpush.msra.mxu1 %v4476_v15  ;;  %6144 = vst [vmem:[#allocation32_spill] sm:$0xff] %v4489_v21 }
 0x1dc   :  { %1142 = vmatpush.msra.mxu2 %v6116_v25  ;;  %1162 = vmatpush.msra.mxu3 %v6117_v26  ;;  %6145 = vst [vmem:[#allocation26_spill] sm:$0xff] %v4492_v22  ;;  %v294_v25 = vadd.f32 %v4332_v38, %v6127_v43 }
 0x1dd   :  { %1103 = vmatpush.msra.mxu0 %v4481_v63  ;;  %1123 = vmatpush.msra.mxu1 %v4484_v3 }
 0x1de   :  { %1143 = vmatpush.msra.mxu2 %v6120_v29  ;;  %1163 = vmatpush.msra.mxu3 %v6121_v32 }
 0x1df   :  { %1104 = vmatpush.msra.mxu0 %v4489_v21  ;;  %1124 = vmatpush.msra.mxu1 %v4492_v22 }
 0x1e0   :  { %1144 = vmatpush.msra.mxu2 %v6124_v35  ;;  %1164 = vmatpush.msra.mxu3 %v6125_v36 }
 0x23c   :  { %v798_v26 = vpop.f32.mrf.mxu0  ;;  %v818_v53 = vpop.f32.mrf.mxu1 }
 0x23d   :  { %v861_v29 = vadd.f32 %v798_v26, %v294_v25  ;;  %v862_v32 = vadd.f32 %v818_v53, %v6146_v2  ;;  %v6148_v53 = vld [vmem:[#allocation41_spill] sm:$0xff] }
 0x23f   :  { %v3175_v49 = vmul.f32 -1.442695, %v861_v29  ;;  %v3176_v56 = vmul.f32 -1.442695, %v862_v32 }
 0x241   :  { %3258 = vpow2.f32 %v3175_v49 }
 0x242   :  { %3260 = vpow2.f32 %v3176_v56 }
 0x243   :  { %v858_v44 = vpop.f32.mrf.mxu3  ;;  %v838_v38 = vpop.f32.mrf.mxu2 }
 0x244   :  { %v864_v8 = vadd.f32 %v858_v44, %v6147_v48  ;;  %v863_v29 = vadd.f32 %v838_v38, %v6148_v53 }
 0x246   :  { %v3177_v54 = vmul.f32 -1.442695, %v864_v8 }
 0x247   :  { %v3259_v0 = vpop.eup %3258 }
 0x248   :  { %v3261_v35 = vpop.eup %3260  ;;  %v868_v7 = vadd.f32 1.0, %v3259_v0  ;;  %3262 = vpow2.f32 %v3177_v54 }
 0x249   :  { %v887_v36 = vadd.f32 1.0, %v3261_v35 }
 0x24a   :  { %3264 = vrcp.f32 %v868_v7  ;;  %v880_v48 = vand.u32 2147483648, %v868_v7  ;;  %v878_v54 = vand.u32 2147483647, %v868_v7  ;;  %vm874_vm13 = vweird.f32 %v868_v7 }
 0x24b   :  { %3266 = vrcp.f32 %v887_v36  ;;  %v899_v8 = vand.u32 2147483648, %v887_v36  ;;  %v897_v43 = vand.u32 2147483647, %v887_v36  ;;  %vm893_vm14 = vweird.f32 %v887_v36 }
 0x24c   :  { %v881_v38 = vor.u32 1.1754944e-38, %v880_v48  ;;  %vm879_vm2 = vcmp.eq.f32.partialorder %v878_v54, 8.507059e+37 }
 0x24d   :  { %vm898_vm3 = vcmp.eq.f32.partialorder %v897_v43, 8.507059e+37 }
 0x24e   :  { %v3263_v39 = vpop.eup %3262 }
 0x24f   :  { %v906_v25 = vadd.f32 1.0, %v3263_v39 }
 0x250   :  { %v3265_v26 = vpop.eup %3264 }
 0x251   :  { %v3267_v2 = vpop.eup %3266  ;;  %v870_v32 = vmul.f32 %v3265_v26, %v868_v7  ;;  %3268 = vrcp.f32 %v906_v25  ;;  %vm875_vm11 = vweird.f32 %v3265_v26  ;;  %v918_v48 = vand.u32 2147483648, %v906_v25 }
 0x252   :  { %v889_v49 = vmul.f32 %v3267_v2, %v887_v36  ;;  %3270 = vtanh.f32 %v863_v29  ;;  %vm894_vm12 = vweird.f32 %v3267_v2  ;;  %vm876_vm15 = vmor %vm874_vm13, %vm875_vm11  ;;  %vm912_vm5 = vweird.f32 %v906_v25 }
 0x253   :  { %v871_v56 = vsub.f32 1.0, %v870_v32  ;;  %vm895_vm0 = vmor %vm893_vm14, %vm894_vm12  ;;  %v900_v32 = vor.u32 1.1754944e-38, %v899_v8  ;;  %v919_v54 = vor.u32 1.1754944e-38, %v918_v48  ;;  %v6158_v48 = vld [vmem:[#allocation15_spill] sm:$0xff] }
 0x254   :  { %v890_v44 = vsub.f32 1.0, %v889_v49 }
 0x255   :  { %v872_v0 = vmul.f32 %v3265_v26, %v871_v56 }
 0x256   :  { %v891_v35 = vmul.f32 %v3267_v2, %v890_v44 }
 0x257   :  { %v3269_v22 = vpop.eup %3268  ;;  %v873_v39 = vadd.f32 %v3265_v26, %v872_v0 }
 0x258   :  { %v892_v53 = vadd.f32 %v3267_v2, %v891_v35  ;;  %v908_v21 = vmul.f32 %v3269_v22, %v906_v25  ;;  %v3271_v29 = vpop.eup %3270  ;;  %vm913_vm4 = vweird.f32 %v3269_v22  ;;  %v4550_v35 = vld [vmem:[#allocation4 + $0x110] sm:$0xff] }
 0x259   :  { %v877_v49 = vsel %vm876_vm15, %v3265_v26, %v873_v39  ;;  %v916_v26 = vand.u32 2147483647, %v906_v25  ;;  %vm914_vm6 = vmor %vm912_vm5, %vm913_vm4  ;;  %v4544_v25 = vld [vmem:[#allocation4 + $0x130] sm:$0xff] }
 0x25a   :  { %v882_v3 = vsel %vm879_vm2, %v881_v38, %v877_v49  ;;  %v896_v56 = vsel %vm895_vm0, %v3267_v2, %v892_v53  ;;  %v909_v63 = vsub.f32 1.0, %v908_v21  ;;  %v4556_v39 = vld [vmem:[#allocation4 + $0xf0] sm:$0xff] }
 0x25b   :  { %v901_v44 = vsel %vm898_vm3, %v900_v32, %v896_v56  ;;  %v924_v15 = vmul.f32 %v3271_v29, %v882_v3  ;;  %vm917_vm7 = vcmp.eq.f32.partialorder %v916_v26, 8.507059e+37  ;;  %v4532_v3 = vld [vmem:[#allocation4 + $0x170] sm:$0xff]  ;;  %v4583_v29 = vld [vmem:[#allocation4 + $0x78] sm:$0xff]  ;;  %v6154_v56 = vld [vmem:[#allocation31_spill] sm:$0xff] }
 0x25c   :  { %v923_v57 = vmul.f32 %v901_v44, %v4342_v30  ;;  %v910_v0 = vmul.f32 %v3269_v22, %v909_v63  ;;  %v4508_v30 = vld [vmem:[#allocation4 + $0x1f0] sm:$0xff]  ;;  %6153 = vst [vmem:[#allocation18_spill] sm:$0xff] %v4583_v29 }
 0x25d   :  { %v4526_v63 = vld [vmem:[#allocation4 + $0x190] sm:$0xff] }
 0x25e   :  { %v4503_v7 = vadd.f32 %v924_v15, %v923_v57  ;;  %v911_v36 = vadd.f32 %v3269_v22, %v910_v0  ;;  %v4514_v57 = vld [vmem:[#allocation4 + $0x1d0] sm:$0xff] }
 0x25f   :  { %v4520_v15 = vld [vmem:[#allocation4 + $0x1b0] sm:$0xff] }
 0x260   :  { %3272 = vtanh.f32 %v4503_v7  ;;  %v915_v8 = vsel %vm914_vm6, %v3269_v22, %v911_v36  ;;  %v4538_v22 = vld [vmem:[#allocation4 + $0x150] sm:$0xff]  ;;  %v4591_v36 = vld [vmem:[#allocation4 + $0x58] sm:$0xff] }
 0x261   :  { %v920_v21 = vsel %vm917_vm7, %v919_v54, %v915_v8  ;;  %v4562_v38 = vld [vmem:[#allocation4 + $0xd0] sm:$0xff]  ;;  %6157 = vst [vmem:[#allocation34_spill] sm:$0xff] %v4591_v36  ;;  %v4599_v54 = vld [vmem:[#allocation4 + $0x38] sm:$0xff] }
 0x262   :  { %6149 = vst [vmem:[#allocation17_spill] sm:$0xff] %v4562_v38  ;;  %v4568_v53 = vld [vmem:[#allocation4 + $0xb0] sm:$0xff] }
 0x263   :  { %6150 = vst [vmem:[#allocation23_spill] sm:$0xff] %v4568_v53  ;;  %v4574_v32 = vld [vmem:[#allocation4 + $0x90] sm:$0xff] }
 0x264   :  { %6151 = vst [vmem:[#allocation33_spill] sm:$0xff] %v4574_v32  ;;  %v4580_v49 = vld [vmem:[#allocation4 + $0x70] sm:$0xff] }
 0x265   :  { %6152 = vst [vmem:[#allocation27_spill] sm:$0xff] %v4580_v49  ;;  %v6155_v44 = vld [vmem:[#allocation25_spill] sm:$0xff] }
 0x266   :  { %v3273_v43 = vpop.eup %3272  ;;  %v4588_v0 = vld [vmem:[#allocation4 + $0x50] sm:$0xff]  ;;  %6161 = vst [vmem:[#allocation39_spill] sm:$0xff] %v4599_v54 }
 0x267   :  { %v927_v2 = vmul.f32 %v3273_v43, %v920_v21  ;;  %6156 = vst [vmem:[#allocation24_spill] sm:$0xff] %v4588_v0  ;;  %v6159_v26 = vld [vmem:[#allocation21_spill] sm:$0xff]  ;;  %v6162_v43 = vld [vmem:[#allocation32_spill] sm:$0xff]  ;;  %v6163_v21 = vld [vmem:[#allocation26_spill] sm:$0xff] }
 0x268   :  { %v4596_v8 = vld [vmem:[#allocation4 + $0x30] sm:$0xff] }
 0x269   :  { %951 = vmatmul.f32.vlgmr.msrb.gmra.mxu0 %v927_v2  ;;  %971 = vmatmul.f32.vlgmr.msrb.gmra.mxu1 %v927_v2  ;;  %6160 = vst [vmem:[#allocation28_spill] sm:$0xff] %v4596_v8 }
 0x26a   :  { %991 = vmatmul.f32.vlgmr.msrb.gmra.mxu2 %v927_v2  ;;  %1011 = vmatmul.f32.vlgmr.msrb.gmra.mxu3 %v927_v2  ;;  %v4604_v2 = vld [vmem:[#allocation4 + $0x10] sm:$0xff] }
 0x26b   :  { %1243 = vmatpush.msrb.mxu0 %v4345_v40  ;;  %1263 = vmatpush.msrb.mxu1 %v4348_v50  ;;  %6164 = vst [vmem:[#allocation46_spill] sm:$0xff] %v4604_v2 }
 0x26c   :  { %1283 = vmatpush.msrb.mxu2 %v4508_v30  ;;  %1303 = vmatpush.msrb.mxu3 %v4352_v18 }
 0x26d   :  { %1244 = vmatpush.msrb.mxu0 %v4355_v51  ;;  %1264 = vmatpush.msrb.mxu1 %v4358_v41 }
 0x26e   :  { %1284 = vmatpush.msrb.mxu2 %v4514_v57  ;;  %1304 = vmatpush.msrb.mxu3 %v4362_v31 }
 0x26f   :  { %1245 = vmatpush.msrb.mxu0 %v4365_v61  ;;  %1265 = vmatpush.msrb.mxu1 %v4368_v52 }
 0x270   :  { %1285 = vmatpush.msrb.mxu2 %v4520_v15  ;;  %1305 = vmatpush.msrb.mxu3 %v4372_v9 }
 0x271   :  { %1246 = vmatpush.msrb.mxu0 %v4375_v10  ;;  %1266 = vmatpush.msrb.mxu1 %v4378_v55 }
 0x272   :  { %1286 = vmatpush.msrb.mxu2 %v4526_v63  ;;  %1306 = vmatpush.msrb.mxu3 %v4382_v12 }
 0x273   :  { %1247 = vmatpush.msrb.mxu0 %v4385_v13  ;;  %1267 = vmatpush.msrb.mxu1 %v4388_v58 }
 0x274   :  { %1287 = vmatpush.msrb.mxu2 %v4532_v3  ;;  %1307 = vmatpush.msrb.mxu3 %v4392_v14 }
 0x275   :  { %1248 = vmatpush.msrb.mxu0 %v4395_v16  ;;  %1268 = vmatpush.msrb.mxu1 %v4398_v60 }
 0x276   :  { %1288 = vmatpush.msrb.mxu2 %v4538_v22  ;;  %1308 = vmatpush.msrb.mxu3 %v4402_v17 }
 0x277   :  { %1249 = vmatpush.msrb.mxu0 %v4405_v20  ;;  %1269 = vmatpush.msrb.mxu1 %v4408_v62 }
 0x278   :  { %1289 = vmatpush.msrb.mxu2 %v4544_v25  ;;  %1309 = vmatpush.msrb.mxu3 %v4412_v23 }
 0x279   :  { %1250 = vmatpush.msrb.mxu0 %v4415_v24  ;;  %1270 = vmatpush.msrb.mxu1 %v4418_v1 }
 0x27a   :  { %1290 = vmatpush.msrb.mxu2 %v4550_v35  ;;  %1310 = vmatpush.msrb.mxu3 %v4422_v27 }
 0x27b   :  { %1251 = vmatpush.msrb.mxu0 %v4425_v42  ;;  %1271 = vmatpush.msrb.mxu1 %v4428_v4 }
 0x27c   :  { %1291 = vmatpush.msrb.mxu2 %v4556_v39  ;;  %1311 = vmatpush.msrb.mxu3 %v4432_v28 }
 0x27d   :  { %1252 = vmatpush.msrb.mxu0 %v4435_v33  ;;  %1272 = vmatpush.msrb.mxu1 %v4438_v5 }
 0x27e   :  { %1292 = vmatpush.msrb.mxu2 %v4562_v38  ;;  %1312 = vmatpush.msrb.mxu3 %v4442_v34 }
 0x27f   :  { %1253 = vmatpush.msrb.mxu0 %v4445_v37  ;;  %1273 = vmatpush.msrb.mxu1 %v4448_v6 }
 0x280   :  { %1293 = vmatpush.msrb.mxu2 %v4568_v53  ;;  %1313 = vmatpush.msrb.mxu3 %v4452_v45 }
 0x281   :  { %1254 = vmatpush.msrb.mxu0 %v4455_v47  ;;  %1274 = vmatpush.msrb.mxu1 %v4458_v19 }
 0x282   :  { %1294 = vmatpush.msrb.mxu2 %v4574_v32  ;;  %1314 = vmatpush.msrb.mxu3 %v4462_v46 }
 0x283   :  { %1255 = vmatpush.msrb.mxu0 %v4465_v59  ;;  %1275 = vmatpush.msrb.mxu1 %v4468_v11  ;;  %v6169_v11 = vld [vmem:[#allocation52_spill] sm:$0xff] }
 0x284   :  { %1295 = vmatpush.msrb.mxu2 %v4580_v49  ;;  %1315 = vmatpush.msrb.mxu3 %v4583_v29  ;;  %v6168_v29 = vld [vmem:[#allocation44_spill] sm:$0xff] }
 0x285   :  { %1256 = vmatpush.msrb.mxu0 %v6154_v56  ;;  %1276 = vmatpush.msrb.mxu1 %v6155_v44 }
 0x286   :  { %1296 = vmatpush.msrb.mxu2 %v4588_v0  ;;  %1316 = vmatpush.msrb.mxu3 %v4591_v36  ;;  %v4607_v36 = vld [vmem:[#allocation4 + $0x18] sm:$0xff] }
 0x287   :  { %1257 = vmatpush.msrb.mxu0 %v6158_v48  ;;  %1277 = vmatpush.msrb.mxu1 %v6159_v26  ;;  %6165 = vst [vmem:[#allocation38_spill] sm:$0xff] %v4607_v36  ;;  %v6166_v26 = vld [vmem:[#allocation57_spill] sm:$0xff]  ;;  %v6167_v48 = vld [vmem:[#allocation11_spill] sm:$0xff] }
 0x288   :  { %1297 = vmatpush.msrb.mxu2 %v4596_v8  ;;  %1317 = vmatpush.msrb.mxu3 %v4599_v54  ;;  %v297_v0 = vadd.f32 %v6167_v48, %v6166_v26 }
 0x289   :  { %1258 = vmatpush.msrb.mxu0 %v6162_v43  ;;  %1278 = vmatpush.msrb.mxu1 %v6163_v21 }
 0x28a   :  { %1298 = vmatpush.msrb.mxu2 %v4604_v2  ;;  %1318 = vmatpush.msrb.mxu3 %v4607_v36 }
 0x2e6   :  { %v952_v8 = vpop.f32.mrf.mxu0  ;;  %v972_v44 = vpop.f32.mrf.mxu1 }
 0x2e7   :  { %v1015_v56 = vadd.f32 %v952_v8, %v297_v0  ;;  %v1016_v54 = vadd.f32 %v972_v44, %v6168_v29  ;;  %v6170_v29 = vld [vmem:[#allocation43_spill] sm:$0xff] }
 0x2e9   :  { %v3178_v49 = vmul.f32 -1.442695, %v1015_v56  ;;  %v3179_v43 = vmul.f32 -1.442695, %v1016_v54 }
 0x2eb   :  { %3274 = vpow2.f32 %v3178_v49 }
 0x2ec   :  { %3276 = vpow2.f32 %v3179_v43 }
 0x2ed   :  { %v1012_v21 = vpop.f32.mrf.mxu3  ;;  %v992_v48 = vpop.f32.mrf.mxu2 }
 0x2ee   :  { %v1018_v59 = vadd.f32 %v1012_v21, %v6169_v11  ;;  %v1017_v56 = vadd.f32 %v992_v48, %v6170_v29 }
 0x2f0   :  { %v3180_v2 = vmul.f32 -1.442695, %v1018_v59 }
 0x2f1   :  { %v3275_v46 = vpop.eup %3274 }
 0x2f2   :  { %v3277_v32 = vpop.eup %3276  ;;  %v1022_v19 = vadd.f32 1.0, %v3275_v46  ;;  %3278 = vpow2.f32 %v3180_v2 }
 0x2f3   :  { %v1041_v36 = vadd.f32 1.0, %v3277_v32 }
 0x2f4   :  { %3280 = vrcp.f32 %v1022_v19  ;;  %v1034_v59 = vand.u32 2147483648, %v1022_v19  ;;  %v1032_v32 = vand.u32 2147483647, %v1022_v19  ;;  %vm1028_vm10 = vweird.f32 %v1022_v19 }
 0x2f5   :  { %3282 = vrcp.f32 %v1041_v36  ;;  %v1053_v21 = vand.u32 2147483648, %v1041_v36  ;;  %v1051_v47 = vand.u32 2147483647, %v1041_v36  ;;  %vm1047_vm11 = vweird.f32 %v1041_v36 }
 0x2f6   :  { %v1035_v48 = vor.u32 1.1754944e-38, %v1034_v59  ;;  %vm1033_vm14 = vcmp.eq.f32.partialorder %v1032_v32, 8.507059e+37 }
 0x2f7   :  { %vm1052_vm15 = vcmp.eq.f32.partialorder %v1051_v47, 8.507059e+37 }
 0x2f8   :  { %v3279_v26 = vpop.eup %3278 }
 0x2f9   :  { %v1060_v0 = vadd.f32 1.0, %v3279_v26 }
 0x2fa   :  { %v3281_v8 = vpop.eup %3280 }
 0x2fb   :  { %v3283_v44 = vpop.eup %3282  ;;  %v1024_v49 = vmul.f32 %v3281_v8, %v1022_v19  ;;  %3284 = vrcp.f32 %v1060_v0  ;;  %vm1029_vm8 = vweird.f32 %v3281_v8  ;;  %v1072_v59 = vand.u32 2147483648, %v1060_v0 }
 0x2fc   :  { %v1043_v54 = vmul.f32 %v3283_v44, %v1041_v36  ;;  %3286 = vtanh.f32 %v1017_v56  ;;  %vm1048_vm9 = vweird.f32 %v3283_v44  ;;  %vm1030_vm12 = vmor %vm1028_vm10, %vm1029_vm8  ;;  %vm1066_vm2 = vweird.f32 %v1060_v0 }
 0x2fd   :  { %v1025_v43 = vsub.f32 1.0, %v1024_v49  ;;  %vm1049_vm13 = vmor %vm1047_vm11, %vm1048_vm9  ;;  %v1054_v49 = vor.u32 1.1754944e-38, %v1053_v21  ;;  %v1073_v32 = vor.u32 1.1754944e-38, %v1072_v59  ;;  %v6189_v59 = vld [vmem:[#allocation15_spill] sm:$0xff] }
 0x2fe   :  { %v1044_v11 = vsub.f32 1.0, %v1043_v54 }
 0x2ff   :  { %v1026_v46 = vmul.f32 %v3281_v8, %v1025_v43 }
 0x300   :  { %v1045_v2 = vmul.f32 %v3283_v44, %v1044_v11 }
 0x301   :  { %v3285_v45 = vpop.eup %3284  ;;  %v1027_v26 = vadd.f32 %v3281_v8, %v1026_v46 }
 0x302   :  { %v1046_v29 = vadd.f32 %v3283_v44, %v1045_v2  ;;  %v1062_v53 = vmul.f32 %v3285_v45, %v1060_v0  ;;  %v3287_v56 = vpop.eup %3286  ;;  %vm1067_vm0 = vweird.f32 %v3285_v45  ;;  %v6178_v2 = vld [vmem:[#allocation30_spill] sm:$0xff] }
 0x303   :  { %v1031_v54 = vsel %vm1030_vm12, %v3281_v8, %v1027_v26  ;;  %v1070_v8 = vand.u32 2147483647, %v1060_v0  ;;  %vm1068_vm3 = vmor %vm1066_vm2, %vm1067_vm0  ;;  %v6177_v0 = vld [vmem:[#allocation16_spill] sm:$0xff]  ;;  %v6179_v26 = vld [vmem:[#allocation33_spill] sm:$0xff] }
 0x304   :  { %v1036_v6 = vsel %vm1033_vm14, %v1035_v48, %v1031_v54  ;;  %v1050_v43 = vsel %vm1049_vm13, %v3283_v44, %v1046_v29  ;;  %v1063_v37 = vsub.f32 1.0, %v1062_v53  ;;  %v6180_v48 = vld [vmem:[#allocation22_spill] sm:$0xff]  ;;  %v6181_v29 = vld [vmem:[#allocation13_spill] sm:$0xff]  ;;  %v6183_v54 = vld [vmem:[#allocation27_spill] sm:$0xff] }
 0x305   :  { %v1055_v11 = vsel %vm1052_vm15, %v1054_v49, %v1050_v43  ;;  %v1078_v34 = vmul.f32 %v3287_v56, %v1036_v6  ;;  %vm1071_vm4 = vcmp.eq.f32.partialorder %v1070_v8, 8.507059e+37  ;;  %v6173_v6 = vld [vmem:[#allocation29_spill] sm:$0xff]  ;;  %v6182_v49 = vld [vmem:[#allocation20_spill] sm:$0xff]  ;;  %v6184_v56 = vld [vmem:[#allocation18_spill] sm:$0xff] }
 0x306   :  { %v1077_v38 = vmul.f32 %v1055_v11, %v4503_v7  ;;  %v1064_v46 = vmul.f32 %v3285_v45, %v1063_v37  ;;  %v6172_v37 = vld [vmem:[#allocation14_spill] sm:$0xff]  ;;  %v6175_v7 = vld [vmem:[#allocation23_spill] sm:$0xff]  ;;  %v6186_v11 = vld [vmem:[#allocation25_spill] sm:$0xff] }
 0x307   :  { %v6185_v43 = vld [vmem:[#allocation31_spill] sm:$0xff]  ;;  %v6190_v8 = vld [vmem:[#allocation21_spill] sm:$0xff] }
 0x308   :  { %v4616_v19 = vadd.f32 %v1078_v34, %v1077_v38  ;;  %v1065_v36 = vadd.f32 %v3285_v45, %v1064_v46  ;;  %v6171_v34 = vld [vmem:[#allocation17_spill] sm:$0xff]  ;;  %v6176_v38 = vld [vmem:[#allocation12_spill] sm:$0xff] }
 0x309   :  { %v6187_v46 = vld [vmem:[#allocation24_spill] sm:$0xff] }
 0x30a   :  { %3288 = vtanh.f32 %v4616_v19  ;;  %v1069_v21 = vsel %vm1068_vm3, %v3285_v45, %v1065_v36  ;;  %v6174_v45 = vld [vmem:[#allocation19_spill] sm:$0xff]  ;;  %v6188_v36 = vld [vmem:[#allocation34_spill] sm:$0xff] }
 0x30b   :  { %v1074_v53 = vsel %vm1071_vm4, %v1073_v32, %v1069_v21  ;;  %v6191_v21 = vld [vmem:[#allocation28_spill] sm:$0xff]  ;;  %v6192_v32 = vld [vmem:[#allocation39_spill] sm:$0xff] }
 0x310   :  { %v3289_v47 = vpop.eup %3288 }
 0x311   :  { %v1081_v44 = vmul.f32 %v3289_v47, %v1074_v53  ;;  %v6193_v47 = vld [vmem:[#allocation32_spill] sm:$0xff]  ;;  %v6194_v53 = vld [vmem:[#allocation26_spill] sm:$0xff] }
 0x313   :  { %1105 = vmatmul.f32.vlgmr.msra.gmra.mxu0 %v1081_v44  ;;  %1125 = vmatmul.f32.vlgmr.msra.gmra.mxu1 %v1081_v44 }
 0x314   :  { %1145 = vmatmul.f32.vlgmr.msra.gmra.mxu2 %v1081_v44  ;;  %1165 = vmatmul.f32.vlgmr.msra.gmra.mxu3 %v1081_v44  ;;  %v6195_v44 = vld [vmem:[#allocation46_spill] sm:$0xff] }
 0x315   :  { %1397 = vmatpush.msra.mxu0 %v4345_v40  ;;  %1417 = vmatpush.msra.mxu1 %v4348_v50 }
 0x316   :  { %1437 = vmatpush.msra.mxu2 %v4508_v30  ;;  %1457 = vmatpush.msra.mxu3 %v4352_v18 }
 0x317   :  { %1398 = vmatpush.msra.mxu0 %v4355_v51  ;;  %1418 = vmatpush.msra.mxu1 %v4358_v41 }
 0x318   :  { %1438 = vmatpush.msra.mxu2 %v4514_v57  ;;  %1458 = vmatpush.msra.mxu3 %v4362_v31 }
 0x319   :  { %1399 = vmatpush.msra.mxu0 %v4365_v61  ;;  %1419 = vmatpush.msra.mxu1 %v4368_v52 }
 0x31a   :  { %1439 = vmatpush.msra.mxu2 %v4520_v15  ;;  %1459 = vmatpush.msra.mxu3 %v4372_v9 }
 0x31b   :  { %1400 = vmatpush.msra.mxu0 %v4375_v10  ;;  %1420 = vmatpush.msra.mxu1 %v4378_v55 }
 0x31c   :  { %1440 = vmatpush.msra.mxu2 %v4526_v63  ;;  %1460 = vmatpush.msra.mxu3 %v4382_v12 }
 0x31d   :  { %1401 = vmatpush.msra.mxu0 %v4385_v13  ;;  %1421 = vmatpush.msra.mxu1 %v4388_v58 }
 0x31e   :  { %1441 = vmatpush.msra.mxu2 %v4532_v3  ;;  %1461 = vmatpush.msra.mxu3 %v4392_v14 }
 0x31f   :  { %1402 = vmatpush.msra.mxu0 %v4395_v16  ;;  %1422 = vmatpush.msra.mxu1 %v4398_v60 }
 0x320   :  { %1442 = vmatpush.msra.mxu2 %v4538_v22  ;;  %1462 = vmatpush.msra.mxu3 %v4402_v17 }
 0x321   :  { %1403 = vmatpush.msra.mxu0 %v4405_v20  ;;  %1423 = vmatpush.msra.mxu1 %v4408_v62 }
 0x322   :  { %1443 = vmatpush.msra.mxu2 %v4544_v25  ;;  %1463 = vmatpush.msra.mxu3 %v4412_v23 }
 0x323   :  { %1404 = vmatpush.msra.mxu0 %v4415_v24  ;;  %1424 = vmatpush.msra.mxu1 %v4418_v1 }
 0x324   :  { %1444 = vmatpush.msra.mxu2 %v4550_v35  ;;  %1464 = vmatpush.msra.mxu3 %v4422_v27 }
 0x325   :  { %1405 = vmatpush.msra.mxu0 %v4425_v42  ;;  %1425 = vmatpush.msra.mxu1 %v4428_v4 }
 0x326   :  { %1445 = vmatpush.msra.mxu2 %v4556_v39  ;;  %1465 = vmatpush.msra.mxu3 %v4432_v28 }
 0x327   :  { %1406 = vmatpush.msra.mxu0 %v4435_v33  ;;  %1426 = vmatpush.msra.mxu1 %v4438_v5 }
 0x328   :  { %1446 = vmatpush.msra.mxu2 %v6171_v34  ;;  %1466 = vmatpush.msra.mxu3 %v6172_v37 }
 0x329   :  { %1407 = vmatpush.msra.mxu0 %v6173_v6  ;;  %1427 = vmatpush.msra.mxu1 %v6174_v45 }
 0x32a   :  { %1447 = vmatpush.msra.mxu2 %v6175_v7  ;;  %1467 = vmatpush.msra.mxu3 %v6176_v38 }
 0x32b   :  { %1408 = vmatpush.msra.mxu0 %v6177_v0  ;;  %1428 = vmatpush.msra.mxu1 %v6178_v2 }
 0x32c   :  { %1448 = vmatpush.msra.mxu2 %v6179_v26  ;;  %1468 = vmatpush.msra.mxu3 %v6180_v48 }
 0x32d   :  { %1409 = vmatpush.msra.mxu0 %v6181_v29  ;;  %1429 = vmatpush.msra.mxu1 %v6182_v49  ;;  %v6199_v49 = vld [vmem:[#allocation47_spill] sm:$0xff] }
 0x32e   :  { %1449 = vmatpush.msra.mxu2 %v6183_v54  ;;  %1469 = vmatpush.msra.mxu3 %v6184_v56 }
 0x32f   :  { %1410 = vmatpush.msra.mxu0 %v6185_v43  ;;  %1430 = vmatpush.msra.mxu1 %v6186_v11  ;;  %v6196_v43 = vld [vmem:[#allocation38_spill] sm:$0xff]  ;;  %v6197_v11 = vld [vmem:[#allocation57_spill] sm:$0xff] }
 0x330   :  { %1450 = vmatpush.msra.mxu2 %v6187_v46  ;;  %1470 = vmatpush.msra.mxu3 %v6188_v36  ;;  %v6198_v46 = vld [vmem:[#allocation35_spill] sm:$0xff] }
 0x331   :  { %1411 = vmatpush.msra.mxu0 %v6189_v59  ;;  %1431 = vmatpush.msra.mxu1 %v6190_v8  ;;  %v300_v56 = vadd.f32 %v6198_v46, %v6197_v11 }
 0x332   :  { %1451 = vmatpush.msra.mxu2 %v6191_v21  ;;  %1471 = vmatpush.msra.mxu3 %v6192_v32 }
 0x333   :  { %1412 = vmatpush.msra.mxu0 %v6193_v47  ;;  %1432 = vmatpush.msra.mxu1 %v6194_v53  ;;  %v6200_v47 = vld [vmem:[#allocation55_spill] sm:$0xff] }
 0x334   :  { %1452 = vmatpush.msra.mxu2 %v6195_v44  ;;  %1472 = vmatpush.msra.mxu3 %v6196_v43 }
 0x390   :  { %v1106_v36 = vpop.f32.mrf.mxu0  ;;  %v1126_v54 = vpop.f32.mrf.mxu1 }
 0x391   :  { %v1169_v59 = vadd.f32 %v1106_v36, %v300_v56  ;;  %v1170_v8 = vadd.f32 %v1126_v54, %v6199_v49  ;;  %v6201_v49 = vld [vmem:[#allocation45_spill] sm:$0xff] }
 0x393   :  { %v3181_v29 = vmul.f32 -1.442695, %v1169_v59  ;;  %v3182_v21 = vmul.f32 -1.442695, %v1170_v8 }
 0x395   :  { %3290 = vpow2.f32 %v3181_v29 }
 0x396   :  { %3292 = vpow2.f32 %v3182_v21 }
 0x397   :  { %v1166_v32 = vpop.f32.mrf.mxu3  ;;  %v1146_v46 = vpop.f32.mrf.mxu2 }
 0x398   :  { %v1172_v48 = vadd.f32 %v1166_v32, %v6200_v47  ;;  %v1171_v54 = vadd.f32 %v1146_v46, %v6201_v49 }
 0x39a   :  { %v3183_v53 = vmul.f32 -1.442695, %v1172_v48 }
 0x39b   :  { %v3291_v26 = vpop.eup %3290 }
 0x39c   :  { %v3293_v44 = vpop.eup %3292  ;;  %v1176_v2 = vadd.f32 1.0, %v3291_v26  ;;  %3294 = vpow2.f32 %v3183_v53 }
 0x39d   :  { %v1195_v43 = vadd.f32 1.0, %v3293_v44 }
 0x39e   :  { %3296 = vrcp.f32 %v1176_v2  ;;  %v1188_v48 = vand.u32 2147483648, %v1176_v2  ;;  %v1186_v53 = vand.u32 2147483647, %v1176_v2  ;;  %vm1182_vm7 = vweird.f32 %v1176_v2 }
 0x39f   :  { %3298 = vrcp.f32 %v1195_v43  ;;  %v1207_v47 = vand.u32 2147483648, %v1195_v43  ;;  %v1205_v0 = vand.u32 2147483647, %v1195_v43  ;;  %vm1201_vm8 = vweird.f32 %v1195_v43 }
 0x3a0   :  { %v1189_v46 = vor.u32 1.1754944e-38, %v1188_v48  ;;  %vm1187_vm11 = vcmp.eq.f32.partialorder %v1186_v53, 8.507059e+37 }
 0x3a1   :  { %vm1206_vm12 = vcmp.eq.f32.partialorder %v1205_v0, 8.507059e+37 }
 0x3a2   :  { %v3295_v11 = vpop.eup %3294 }
 0x3a3   :  { %v1214_v56 = vadd.f32 1.0, %v3295_v11 }
 0x3a4   :  { %v3297_v36 = vpop.eup %3296 }
 0x3a5   :  { %v3299_v59 = vpop.eup %3298  ;;  %v1178_v29 = vmul.f32 %v3297_v36, %v1176_v2  ;;  %3300 = vrcp.f32 %v1214_v56  ;;  %vm1183_vm5 = vweird.f32 %v3297_v36  ;;  %v1226_v48 = vand.u32 2147483648, %v1214_v56 }
 0x3a6   :  { %v1197_v8 = vmul.f32 %v3299_v59, %v1195_v43  ;;  %3302 = vtanh.f32 %v1171_v54  ;;  %vm1202_vm6 = vweird.f32 %v3299_v59  ;;  %vm1184_vm9 = vmor %vm1182_vm7, %vm1183_vm5  ;;  %vm1220_vm14 = vweird.f32 %v1214_v56 }
 0x3a7   :  { %v1179_v21 = vsub.f32 1.0, %v1178_v29  ;;  %vm1203_vm10 = vmor %vm1201_vm8, %vm1202_vm6  ;;  %v1208_v29 = vor.u32 1.1754944e-38, %v1207_v47  ;;  %v1227_v53 = vor.u32 1.1754944e-38, %v1226_v48 }
 0x3a8   :  { %v1198_v32 = vsub.f32 1.0, %v1197_v8 }
 0x3a9   :  { %v1180_v26 = vmul.f32 %v3297_v36, %v1179_v21 }
 0x3aa   :  { %v1199_v44 = vmul.f32 %v3299_v59, %v1198_v32 }
 0x3ab   :  { %v3301_v38 = vpop.eup %3300  ;;  %v1181_v11 = vadd.f32 %v3297_v36, %v1180_v26 }
 0x3ac   :  { %v1200_v49 = vadd.f32 %v3299_v59, %v1199_v44  ;;  %v1216_v7 = vmul.f32 %v3301_v38, %v1214_v56  ;;  %v3303_v54 = vpop.eup %3302  ;;  %vm1221_vm13 = vweird.f32 %v3301_v38 }
 0x3ad   :  { %v1185_v8 = vsel %vm1184_vm9, %v3297_v36, %v1181_v11  ;;  %v1224_v36 = vand.u32 2147483647, %v1214_v56  ;;  %vm1222_vm15 = vmor %vm1220_vm14, %vm1221_vm13 }
 0x3ae   :  { %v1190_v45 = vsel %vm1187_vm11, %v1189_v46, %v1185_v8  ;;  %v1204_v21 = vsel %vm1203_vm10, %v3299_v59, %v1200_v49  ;;  %v1217_v6 = vsub.f32 1.0, %v1216_v7  ;;  %v6232_v49 = vld [vmem:[#allocation48_spill] sm:$0xff] }
 0x3af   :  { %v1209_v32 = vsel %vm1206_vm12, %v1208_v29, %v1204_v21  ;;  %v1232_v37 = vmul.f32 %v3303_v54, %v1190_v45  ;;  %vm1225_vm0 = vcmp.eq.f32.partialorder %v1224_v36, 8.507059e+37 }
 0x3b0   :  { %v1231_v34 = vmul.f32 %v1209_v32, %v4616_v19  ;;  %v1218_v26 = vmul.f32 %v3301_v38, %v1217_v6 }
 0x3b2   :  { %v4689_v2 = vadd.f32 %v1232_v37, %v1231_v34  ;;  %v1219_v43 = vadd.f32 %v3301_v38, %v1218_v26 }
 0x3b4   :  { %3304 = vtanh.f32 %v4689_v2  ;;  %v1223_v47 = vsel %vm1222_vm15, %v3301_v38, %v1219_v43 }
 0x3b5   :  { %v1228_v7 = vsel %vm1225_vm0, %v1227_v53, %v1223_v47 }
 0x3ba   :  { %v3305_v0 = vpop.eup %3304 }
 0x3bb   :  { %v1235_v59 = vmul.f32 %v3305_v0, %v1228_v7 }
 0x3bd   :  { %1259 = vmatmul.f32.vlgmr.msrb.gmra.mxu0 %v1235_v59  ;;  %1279 = vmatmul.f32.vlgmr.msrb.gmra.mxu1 %v1235_v59 }
 0x3be   :  { %1299 = vmatmul.f32.vlgmr.msrb.gmra.mxu2 %v1235_v59  ;;  %1319 = vmatmul.f32.vlgmr.msrb.gmra.mxu3 %v1235_v59 }
 0x3bf   :  { %1551 = vmatpush.msrb.mxu0 %v4345_v40  ;;  %1571 = vmatpush.msrb.mxu1 %v4348_v50  ;;  %v6202_v40 = vld [vmem:[#allocation17_spill] sm:$0xff]  ;;  %v6203_v50 = vld [vmem:[#allocation14_spill] sm:$0xff] }
 0x3c0   :  { %1591 = vmatpush.msrb.mxu2 %v4508_v30  ;;  %1611 = vmatpush.msrb.mxu3 %v4352_v18  ;;  %v6204_v18 = vld [vmem:[#allocation29_spill] sm:$0xff] }
 0x3c1   :  { %1552 = vmatpush.msrb.mxu0 %v4355_v51  ;;  %1572 = vmatpush.msrb.mxu1 %v4358_v41  ;;  %v6205_v51 = vld [vmem:[#allocation19_spill] sm:$0xff] }
 0x3c2   :  { %1592 = vmatpush.msrb.mxu2 %v4514_v57  ;;  %1612 = vmatpush.msrb.mxu3 %v4362_v31  ;;  %v6206_v41 = vld [vmem:[#allocation23_spill] sm:$0xff]  ;;  %v6207_v31 = vld [vmem:[#allocation12_spill] sm:$0xff] }
 0x3c3   :  { %1553 = vmatpush.msrb.mxu0 %v4365_v61  ;;  %1573 = vmatpush.msrb.mxu1 %v4368_v52  ;;  %v6208_v61 = vld [vmem:[#allocation16_spill] sm:$0xff]  ;;  %v6209_v52 = vld [vmem:[#allocation30_spill] sm:$0xff] }
 0x3c4   :  { %1593 = vmatpush.msrb.mxu2 %v4520_v15  ;;  %1613 = vmatpush.msrb.mxu3 %v4372_v9  ;;  %v6210_v9 = vld [vmem:[#allocation33_spill] sm:$0xff] }
 0x3c5   :  { %1554 = vmatpush.msrb.mxu0 %v4375_v10  ;;  %1574 = vmatpush.msrb.mxu1 %v4378_v55  ;;  %v6211_v10 = vld [vmem:[#allocation22_spill] sm:$0xff]  ;;  %v6212_v55 = vld [vmem:[#allocation13_spill] sm:$0xff] }
 0x3c6   :  { %1594 = vmatpush.msrb.mxu2 %v4526_v63  ;;  %1614 = vmatpush.msrb.mxu3 %v4382_v12  ;;  %v6213_v12 = vld [vmem:[#allocation20_spill] sm:$0xff]  ;;  %v6230_v63 = vld [vmem:[#allocation50_spill] sm:$0xff] }
 0x3c7   :  { %1555 = vmatpush.msrb.mxu0 %v4385_v13  ;;  %1575 = vmatpush.msrb.mxu1 %v4388_v58  ;;  %v6214_v13 = vld [vmem:[#allocation27_spill] sm:$0xff]  ;;  %v6215_v58 = vld [vmem:[#allocation18_spill] sm:$0xff] }
 0x3c8   :  { %1595 = vmatpush.msrb.mxu2 %v4532_v3  ;;  %1615 = vmatpush.msrb.mxu3 %v4392_v14  ;;  %v6216_v14 = vld [vmem:[#allocation31_spill] sm:$0xff] }
 0x3c9   :  { %1556 = vmatpush.msrb.mxu0 %v4395_v16  ;;  %1576 = vmatpush.msrb.mxu1 %v4398_v60  ;;  %v6217_v16 = vld [vmem:[#allocation25_spill] sm:$0xff]  ;;  %v6218_v60 = vld [vmem:[#allocation24_spill] sm:$0xff] }
 0x3ca   :  { %1596 = vmatpush.msrb.mxu2 %v4538_v22  ;;  %1616 = vmatpush.msrb.mxu3 %v4402_v17  ;;  %v6219_v17 = vld [vmem:[#allocation34_spill] sm:$0xff] }
 0x3cb   :  { %1557 = vmatpush.msrb.mxu0 %v4405_v20  ;;  %1577 = vmatpush.msrb.mxu1 %v4408_v62  ;;  %v6220_v20 = vld [vmem:[#allocation15_spill] sm:$0xff]  ;;  %v6221_v62 = vld [vmem:[#allocation21_spill] sm:$0xff] }
 0x3cc   :  { %1597 = vmatpush.msrb.mxu2 %v4544_v25  ;;  %1617 = vmatpush.msrb.mxu3 %v4412_v23  ;;  %v6222_v23 = vld [vmem:[#allocation28_spill] sm:$0xff] }
 0x3cd   :  { %1558 = vmatpush.msrb.mxu0 %v4415_v24  ;;  %1578 = vmatpush.msrb.mxu1 %v4418_v1  ;;  %v6223_v24 = vld [vmem:[#allocation39_spill] sm:$0xff]  ;;  %v6224_v1 = vld [vmem:[#allocation32_spill] sm:$0xff] }
 0x3ce   :  { %1598 = vmatpush.msrb.mxu2 %v4550_v35  ;;  %1618 = vmatpush.msrb.mxu3 %v4422_v27  ;;  %v6225_v27 = vld [vmem:[#allocation26_spill] sm:$0xff] }
 0x3cf   :  { %1559 = vmatpush.msrb.mxu0 %v4425_v42  ;;  %1579 = vmatpush.msrb.mxu1 %v4428_v4  ;;  %v6226_v42 = vld [vmem:[#allocation46_spill] sm:$0xff] }
 0x3d0   :  { %1599 = vmatpush.msrb.mxu2 %v4556_v39  ;;  %1619 = vmatpush.msrb.mxu3 %v4432_v28  ;;  %v6227_v4 = vld [vmem:[#allocation38_spill] sm:$0xff]  ;;  %v6228_v28 = vld [vmem:[#allocation57_spill] sm:$0xff] }
 0x3d1   :  { %1560 = vmatpush.msrb.mxu0 %v4435_v33  ;;  %1580 = vmatpush.msrb.mxu1 %v4438_v5  ;;  %v6229_v33 = vld [vmem:[#allocation36_spill] sm:$0xff]  ;;  %v6231_v39 = vld [vmem:[#allocation58_spill] sm:$0xff] }
 0x3d2   :  { %1600 = vmatpush.msrb.mxu2 %v6202_v40  ;;  %1620 = vmatpush.msrb.mxu3 %v6203_v50  ;;  %v303_v5 = vadd.f32 %v6229_v33, %v6228_v28  ;;  %v6234_v33 = vld [vmem:[#allocation53_spill] sm:$0xff] }
 0x3d3   :  { %1561 = vmatpush.msrb.mxu0 %v6204_v18  ;;  %1581 = vmatpush.msrb.mxu1 %v6205_v51 }
 0x3d4   :  { %1601 = vmatpush.msrb.mxu2 %v6206_v41  ;;  %1621 = vmatpush.msrb.mxu3 %v6207_v31 }
 0x3d5   :  { %1562 = vmatpush.msrb.mxu0 %v6208_v61  ;;  %1582 = vmatpush.msrb.mxu1 %v6209_v52 }
 0x3d6   :  { %1602 = vmatpush.msrb.mxu2 %v6210_v9  ;;  %1622 = vmatpush.msrb.mxu3 %v6211_v10 }
 0x3d7   :  { %1563 = vmatpush.msrb.mxu0 %v6212_v55  ;;  %1583 = vmatpush.msrb.mxu1 %v6213_v12 }
 0x3d8   :  { %1603 = vmatpush.msrb.mxu2 %v6214_v13  ;;  %1623 = vmatpush.msrb.mxu3 %v6215_v58 }
 0x3d9   :  { %1564 = vmatpush.msrb.mxu0 %v6216_v14  ;;  %1584 = vmatpush.msrb.mxu1 %v6217_v16 }
 0x3da   :  { %1604 = vmatpush.msrb.mxu2 %v6218_v60  ;;  %1624 = vmatpush.msrb.mxu3 %v6219_v17 }
 0x3db   :  { %1565 = vmatpush.msrb.mxu0 %v6220_v20  ;;  %1585 = vmatpush.msrb.mxu1 %v6221_v62 }
 0x3dc   :  { %1605 = vmatpush.msrb.mxu2 %v6222_v23  ;;  %1625 = vmatpush.msrb.mxu3 %v6223_v24 }
 0x3dd   :  { %1566 = vmatpush.msrb.mxu0 %v6224_v1  ;;  %1586 = vmatpush.msrb.mxu1 %v6225_v27 }
 0x3de   :  { %1606 = vmatpush.msrb.mxu2 %v6226_v42  ;;  %1626 = vmatpush.msrb.mxu3 %v6227_v4 }
 0x43a   :  { %v1260_v30 = vpop.f32.mrf.mxu0  ;;  %v1280_v57 = vpop.f32.mrf.mxu1 }
 0x43b   :  { %v1323_v15 = vadd.f32 %v1260_v30, %v303_v5  ;;  %v1324_v3 = vadd.f32 %v1280_v57, %v6230_v63  ;;  %v6235_v63 = vld [vmem:[#allocation59_spill] sm:$0xff] }
 0x43d   :  { %v3184_v22 = vmul.f32 -1.442695, %v1323_v15  ;;  %v3185_v25 = vmul.f32 -1.442695, %v1324_v3 }
 0x43f   :  { %3306 = vpow2.f32 %v3184_v22 }
 0x440   :  { %3308 = vpow2.f32 %v3185_v25 }
 0x441   :  { %v1320_v35 = vpop.f32.mrf.mxu3  ;;  %v1300_v56 = vpop.f32.mrf.mxu2 }
 0x442   :  { %v1326_v19 = vadd.f32 %v1320_v35, %v6231_v39  ;;  %v1325_v29 = vadd.f32 %v1300_v56, %v6232_v49  ;;  %v1755_v56 = vld [vmem:[#allocation6 + $0x1c8] sm:$0xff] }
 0x444   :  { %v3186_v34 = vmul.f32 -1.442695, %v1326_v19 }
 0x445   :  { %v3307_v37 = vpop.eup %3306 }
 0x446   :  { %v3309_v6 = vpop.eup %3308  ;;  %v1330_v45 = vadd.f32 1.0, %v3307_v37  ;;  %3310 = vpow2.f32 %v3186_v34  ;;  %v1758_v34 = vld [vmem:[#allocation6 + $0x1e0] sm:$0xff]  ;;  %v1759_v37 = vld [vmem:[#allocation6 + $0x1e8] sm:$0xff] }
 0x447   :  { %v1349_v38 = vadd.f32 1.0, %v3309_v6  ;;  %v1760_v6 = vld [vmem:[#allocation6 + $0x1f0] sm:$0xff] }
 0x448   :  { %3312 = vrcp.f32 %v1330_v45  ;;  %v1342_v43 = vand.u32 2147483648, %v1330_v45  ;;  %v1340_v47 = vand.u32 2147483647, %v1330_v45  ;;  %vm1336_vm4 = vweird.f32 %v1330_v45 }
 0x449   :  { %3314 = vrcp.f32 %v1349_v38  ;;  %v1361_v48 = vand.u32 2147483648, %v1349_v38  ;;  %v1359_v0 = vand.u32 2147483647, %v1349_v38  ;;  %vm1355_vm5 = vweird.f32 %v1349_v38 }
 0x44a   :  { %v1343_v40 = vor.u32 1.1754944e-38, %v1342_v43  ;;  %vm1341_vm8 = vcmp.eq.f32.partialorder %v1340_v47, 8.507059e+37 }
 0x44b   :  { %v1362_v51 = vor.u32 1.1754944e-38, %v1361_v48  ;;  %vm1360_vm9 = vcmp.eq.f32.partialorder %v1359_v0, 8.507059e+37  ;;  %v1748_v48 = vld [vmem:[#allocation6 + $0x190] sm:$0xff] }
 0x44c   :  { %v3311_v44 = vpop.eup %3310 }
 0x44d   :  { %v1368_v11 = vadd.f32 1.0, %v3311_v44  ;;  %v1756_v44 = vld [vmem:[#allocation6 + $0x1d0] sm:$0xff] }
 0x44e   :  { %v3313_v46 = vpop.eup %3312 }
 0x44f   :  { %v3315_v8 = vpop.eup %3314  ;;  %v1332_v54 = vmul.f32 %v3313_v46, %v1330_v45  ;;  %3316 = vrcp.f32 %v1368_v11  ;;  %vm1337_vm2 = vweird.f32 %v3313_v46  ;;  %v1380_v16 = vand.u32 2147483648, %v1368_v11  ;;  %v1761_v45 = vld [vmem:[#allocation6 + $0x1f8] sm:$0xff] }
 0x450   :  { %v1351_v21 = vmul.f32 %v3315_v8, %v1349_v38  ;;  %3318 = vtanh.f32 %v1325_v29  ;;  %vm1356_vm3 = vweird.f32 %v3315_v8  ;;  %vm1338_vm6 = vmor %vm1336_vm4, %vm1337_vm2  ;;  %vm1374_vm11 = vweird.f32 %v1368_v11  ;;  %v1754_v38 = vld [vmem:[#allocation6 + $0x1c0] sm:$0xff]  ;;  %v1751_v29 = vld [vmem:[#allocation6 + $0x1a8] sm:$0xff] }
 0x451   :  { %v1333_v32 = vsub.f32 1.0, %v1332_v54  ;;  %vm1357_vm7 = vmor %vm1355_vm5, %vm1356_vm3  ;;  %v1378_v60 = vand.u32 2147483647, %v1368_v11  ;;  %v1381_v20 = vor.u32 1.1754944e-38, %v1380_v16  ;;  %v1753_v54 = vld [vmem:[#allocation6 + $0x1b8] sm:$0xff] }
 0x452   :  { %v1352_v26 = vsub.f32 1.0, %v1351_v21 }
 0x453   :  { %v1334_v36 = vmul.f32 %v3313_v46, %v1333_v32  ;;  %vm1379_vm13 = vcmp.eq.f32.partialorder %v1378_v60, 8.507059e+37  ;;  %v1746_v32 = vld [vmem:[#allocation6 + $0x180] sm:$0xff] }
 0x454   :  { %v1353_v53 = vmul.f32 %v3315_v8, %v1352_v26  ;;  %v1747_v26 = vld [vmem:[#allocation6 + $0x188] sm:$0xff] }
 0x455   :  { %v3317_v7 = vpop.eup %3316  ;;  %v1335_v59 = vadd.f32 %v3313_v46, %v1334_v36  ;;  %v1749_v36 = vld [vmem:[#allocation6 + $0x198] sm:$0xff] }
 0x456   :  { %v1354_v50 = vadd.f32 %v3315_v8, %v1353_v53  ;;  %v1370_v18 = vmul.f32 %v3317_v7, %v1368_v11  ;;  %v3319_v31 = vpop.eup %3318  ;;  %vm1375_vm10 = vweird.f32 %v3317_v7  ;;  %v1757_v11 = vld [vmem:[#allocation6 + $0x1d8] sm:$0xff]  ;;  %v6236_v53 = vld [vmem:[#allocation51_spill] sm:$0xff] }
 0x457   :  { %v1339_v41 = vsel %vm1338_vm6, %v3313_v46, %v1335_v59  ;;  %vm1376_vm12 = vmor %vm1374_vm11, %vm1375_vm10  ;;  %v1750_v46 = vld [vmem:[#allocation6 + $0x1a0] sm:$0xff]  ;;  %v1743_v59 = vld [vmem:[#allocation6 + $0x168] sm:$0xff] }
 0x458   :  { %v1344_v61 = vsel %vm1341_vm8, %v1343_v40, %v1339_v41  ;;  %v1358_v52 = vsel %vm1357_vm7, %v3315_v8, %v1354_v50  ;;  %v1371_v9 = vsub.f32 1.0, %v1370_v18  ;;  %v1752_v8 = vld [vmem:[#allocation6 + $0x1b0] sm:$0xff] }
 0x459   :  { %v1363_v10 = vsel %vm1360_vm9, %v1362_v51, %v1358_v52  ;;  %v1386_v55 = vmul.f32 %v3319_v31, %v1344_v61  ;;  %v1744_v18 = vld [vmem:[#allocation6 + $0x170] sm:$0xff]  ;;  %v1745_v51 = vld [vmem:[#allocation6 + $0x178] sm:$0xff] }
 0x45a   :  { %v1385_v12 = vmul.f32 %v1363_v10, %v4689_v2  ;;  %v1372_v13 = vmul.f32 %v3317_v7, %v1371_v9  ;;  %v6233_v2 = vld [vmem:[#allocation37_spill] sm:$0xff] }
 0x45b   :  { %v306_v1 = vadd.f32 %v6233_v2, %v6228_v28 }
 0x45c   :  { %v4762_v58 = vadd.f32 %v1386_v55, %v1385_v12  ;;  %v1373_v14 = vadd.f32 %v3317_v7, %v1372_v13 }
 0x45e   :  { %3320 = vtanh.f32 %v4762_v58  ;;  %v1377_v17 = vsel %vm1376_vm12, %v3317_v7, %v1373_v14  ;;  %v1742_v7 = vld [vmem:[#allocation6 + $0x160] sm:$0xff] }
 0x45f   :  { %v1382_v23 = vsel %vm1379_vm13, %v1381_v20, %v1377_v17 }
 0x464   :  { %v3321_v62 = vpop.eup %3320 }
 0x465   :  { %v1389_v24 = vmul.f32 %v3321_v62, %v1382_v23 }
 0x467   :  { %1413 = vmatmul.f32.vlgmr.msra.gmra.mxu0 %v1389_v24  ;;  %1433 = vmatmul.f32.vlgmr.msra.gmra.mxu1 %v1389_v24 }
 0x468   :  { %1453 = vmatmul.f32.vlgmr.msra.gmra.mxu2 %v1389_v24  ;;  %1473 = vmatmul.f32.vlgmr.msra.gmra.mxu3 %v1389_v24 }
 0x469   :  { %1772 = vmatpush.msra.mxu0 %v1758_v34  ;;  %1792 = vmatpush.msra.mxu1 %v1759_v37  ;;  %v1740_v34 = vld [vmem:[#allocation6 + $0x150] sm:$0xff]  ;;  %v1741_v37 = vld [vmem:[#allocation6 + $0x158] sm:$0xff] }
 0x46a   :  { %1812 = vmatpush.msra.mxu2 %v1760_v6  ;;  %1832 = vmatpush.msra.mxu3 %v1761_v45  ;;  %v1734_v6 = vld [vmem:[#allocation6 + $0x120] sm:$0xff]  ;;  %v1735_v45 = vld [vmem:[#allocation6 + $0x128] sm:$0xff] }
 0x46b   :  { %1773 = vmatpush.msra.mxu0 %v1754_v38  ;;  %1793 = vmatpush.msra.mxu1 %v1755_v56  ;;  %v1736_v38 = vld [vmem:[#allocation6 + $0x130] sm:$0xff]  ;;  %v1737_v56 = vld [vmem:[#allocation6 + $0x138] sm:$0xff] }
 0x46c   :  { %1813 = vmatpush.msra.mxu2 %v1756_v44  ;;  %1833 = vmatpush.msra.mxu3 %v1757_v11  ;;  %v1730_v44 = vld [vmem:[#allocation6 + $0x100] sm:$0xff]  ;;  %v1731_v11 = vld [vmem:[#allocation6 + $0x108] sm:$0xff] }
 0x46d   :  { %1774 = vmatpush.msra.mxu0 %v1750_v46  ;;  %1794 = vmatpush.msra.mxu1 %v1751_v29  ;;  %v1732_v46 = vld [vmem:[#allocation6 + $0x110] sm:$0xff]  ;;  %v1726_v29 = vld [vmem:[#allocation6 + $0xe0] sm:$0xff] }
 0x46e   :  { %1814 = vmatpush.msra.mxu2 %v1752_v8  ;;  %1834 = vmatpush.msra.mxu3 %v1753_v54  ;;  %v1727_v8 = vld [vmem:[#allocation6 + $0xe8] sm:$0xff]  ;;  %v1728_v54 = vld [vmem:[#allocation6 + $0xf0] sm:$0xff] }
 0x46f   :  { %1775 = vmatpush.msra.mxu0 %v1746_v32  ;;  %1795 = vmatpush.msra.mxu1 %v1747_v26  ;;  %v1722_v32 = vld [vmem:[#allocation6 + $0xc0] sm:$0xff]  ;;  %v1723_v26 = vld [vmem:[#allocation6 + $0xc8] sm:$0xff] }
 0x470   :  { %1815 = vmatpush.msra.mxu2 %v1748_v48  ;;  %1835 = vmatpush.msra.mxu3 %v1749_v36  ;;  %v1725_v48 = vld [vmem:[#allocation6 + $0xd8] sm:$0xff]  ;;  %v1718_v36 = vld [vmem:[#allocation6 + $0xa0] sm:$0xff] }
 0x471   :  { %1776 = vmatpush.msra.mxu0 %v1742_v7  ;;  %1796 = vmatpush.msra.mxu1 %v1743_v59  ;;  %v1714_v7 = vld [vmem:[#allocation6 + $0x80] sm:$0xff]  ;;  %v1715_v59 = vld [vmem:[#allocation6 + $0x88] sm:$0xff] }
 0x472   :  { %1816 = vmatpush.msra.mxu2 %v1744_v18  ;;  %1836 = vmatpush.msra.mxu3 %v1745_v51  ;;  %v1710_v18 = vld [vmem:[#allocation6 + $0x60] sm:$0xff]  ;;  %v1711_v51 = vld [vmem:[#allocation6 + $0x68] sm:$0xff] }
 0x474   :  { %1817 = vmatpush.msra.mxu2 %v1740_v34  ;;  %1837 = vmatpush.msra.mxu3 %v1741_v37  ;;  %v6237_v34 = vld [vmem:[#allocation40_spill] sm:$0xff] }
 0x475   :  { %v309_v37 = vadd.f32 %v6237_v34, %v6228_v28  ;;  %v6238_v28 = vld [vmem:[#allocation56_spill] sm:$0xff] }
 0x476   :  { %1818 = vmatpush.msra.mxu2 %v1736_v38  ;;  %1838 = vmatpush.msra.mxu3 %v1737_v56  ;;  %v4859_v38 = vld [vmem:[#allocation8 + $0x150] sm:$0xff] }
 0x478   :  { %1819 = vmatpush.msra.mxu2 %v1732_v46 }
 0x47a   :  { %1820 = vmatpush.msra.mxu2 %v1728_v54  ;;  %v4872_v54 = vld [vmem:[#allocation8 + $0x130] sm:$0xff] }
 0x4e4   :  { %v1414_v27 = vpop.f32.mrf.mxu0  ;;  %v1434_v42 = vpop.f32.mrf.mxu1 }
 0x4e5   :  { %v1477_v4 = vadd.f32 %v1414_v27, %v306_v1  ;;  %v1478_v5 = vadd.f32 %v1434_v42, %v6234_v33 }
 0x4e7   :  { %v3187_v30 = vmul.f32 -1.442695, %v1477_v4  ;;  %v3188_v57 = vmul.f32 -1.442695, %v1478_v5 }
 0x4e9   :  { %3322 = vpow2.f32 %v3187_v30 }
 0x4ea   :  { %3324 = vpow2.f32 %v3188_v57 }
 0x4eb   :  { %v1474_v15 = vpop.f32.mrf.mxu3  ;;  %v1454_v49 = vpop.f32.mrf.mxu2 }
 0x4ec   :  { %v1480_v3 = vadd.f32 %v1474_v15, %v6235_v63  ;;  %v1479_v0 = vadd.f32 %v1454_v49, %v6236_v53  ;;  %v1733_v49 = vld [vmem:[#allocation6 + $0x118] sm:$0xff]  ;;  %v1720_v53 = vld [vmem:[#allocation6 + $0xb0] sm:$0xff] }
 0x4ed   :  { %1839 = vmatpush.msra.mxu3 %v1733_v49 }
 0x4ee   :  { %v3189_v22 = vmul.f32 -1.442695, %v1480_v3 }
 0x4ef   :  { %v3323_v25 = vpop.eup %3322 }
 0x4f0   :  { %v3325_v35 = vpop.eup %3324  ;;  %v4769_v39 = vadd.f32 1.0, %v3323_v25  ;;  %3326 = vpow2.f32 %v3189_v22 }
 0x4f1   :  { %v4771_v19 = vadd.f32 1.0, %v3325_v35 }
 0x4f2   :  { %3328 = vrcp.f32 %v4769_v39  ;;  %v1496_v52 = vand.u32 2147483648, %v4769_v39  ;;  %v1494_v55 = vand.u32 2147483647, %v4769_v39  ;;  %vm1490_vm0 = vweird.f32 %v4769_v39 }
 0x4f3   :  { %3330 = vrcp.f32 %v4771_v19  ;;  %v1515_v9 = vand.u32 2147483648, %v4771_v19  ;;  %v1513_v13 = vand.u32 2147483647, %v4771_v19  ;;  %vm1509_vm2 = vweird.f32 %v4771_v19 }
 0x4f4   :  { %v1497_v60 = vor.u32 1.1754944e-38, %v1496_v52  ;;  %vm1495_vm5 = vcmp.eq.f32.partialorder %v1494_v55, 8.507059e+37  ;;  %v1707_v52 = vld [vmem:[#allocation6 + $0x48] sm:$0xff]  ;;  %v1702_v55 = vld [vmem:[#allocation6 + $0x20] sm:$0xff] }
 0x4f5   :  { %v1516_v62 = vor.u32 1.1754944e-38, %v1515_v9  ;;  %vm1514_vm6 = vcmp.eq.f32.partialorder %v1513_v13, 8.507059e+37  ;;  %v1708_v9 = vld [vmem:[#allocation6 + $0x50] sm:$0xff] }
 0x4f6   :  { %v3327_v21 = vpop.eup %3326  ;;  %v1704_v13 = vld [vmem:[#allocation6 + $0x30] sm:$0xff] }
 0x4f7   :  { %v4775_v43 = vadd.f32 1.0, %v3327_v21  ;;  %v1729_v21 = vld [vmem:[#allocation6 + $0xf8] sm:$0xff] }
 0x4f8   :  { %v3329_v47 = vpop.eup %3328  ;;  %1840 = vmatpush.msra.mxu3 %v1729_v21  ;;  %v4876_v21 = vld [vmem:[#allocation8 + $0x138] sm:$0xff] }
 0x4f9   :  { %v3331_v40 = vpop.eup %3330  ;;  %v1486_v50 = vmul.f32 %v3329_v47, %v4769_v39  ;;  %3332 = vrcp.f32 %v4775_v43  ;;  %vm1491_vm14 = vweird.f32 %v3329_v47  ;;  %v1534_v15 = vand.u32 2147483648, %v4775_v43  ;;  %v1738_v39 = vld [vmem:[#allocation6 + $0x140] sm:$0xff] }
 0x4fa   :  { %v1505_v41 = vmul.f32 %v3331_v40, %v4771_v19  ;;  %3334 = vtanh.f32 %v1479_v0  ;;  %vm1510_vm15 = vweird.f32 %v3331_v40  ;;  %vm1492_vm3 = vmor %vm1490_vm0, %vm1491_vm14  ;;  %vm1528_vm8 = vweird.f32 %v4775_v43  ;;  %v1739_v19 = vld [vmem:[#allocation6 + $0x148] sm:$0xff]  ;;  %1777 = vmatpush.msra.mxu0 %v1738_v39  ;;  %1841 = vmatpush.msra.mxu3 %v1725_v48  ;;  %v1721_v0 = vld [vmem:[#allocation6 + $0xb8] sm:$0xff] }
 0x4fb   :  { %v1487_v31 = vsub.f32 1.0, %v1486_v50  ;;  %vm1511_vm4 = vmor %vm1509_vm2, %vm1510_vm15  ;;  %v1532_v63 = vand.u32 2147483647, %v4775_v43  ;;  %v1535_v22 = vor.u32 1.1754944e-38, %v1534_v15  ;;  %1797 = vmatpush.msra.mxu1 %v1739_v19  ;;  %v1717_v50 = vld [vmem:[#allocation6 + $0x98] sm:$0xff]  ;;  %v4845_v39 = vld [vmem:[#allocation8 + $0x170] sm:$0xff] }
 0x4fc   :  { %v1506_v61 = vsub.f32 1.0, %v1505_v41  ;;  %1778 = vmatpush.msra.mxu0 %v1734_v6  ;;  %1842 = vmatpush.msra.mxu3 %v1721_v0  ;;  %v1712_v41 = vld [vmem:[#allocation6 + $0x70] sm:$0xff]  ;;  %v4825_v15 = vld [vmem:[#allocation8 + $0x1b8] sm:$0xff]  ;;  %v4855_v6 = vld [vmem:[#allocation8 + $0x140] sm:$0xff] }
 0x4fd   :  { %v1488_v10 = vmul.f32 %v3329_v47, %v1487_v31  ;;  %vm1533_vm10 = vcmp.eq.f32.partialorder %v1532_v63, 8.507059e+37  ;;  %1798 = vmatpush.msra.mxu1 %v1735_v45  ;;  %v1713_v31 = vld [vmem:[#allocation6 + $0x78] sm:$0xff]  ;;  %v4829_v63 = vld [vmem:[#allocation8 + $0x180] sm:$0xff]  ;;  %v4857_v45 = vld [vmem:[#allocation8 + $0x148] sm:$0xff] }
 0x4fe   :  { %v1507_v12 = vmul.f32 %v3331_v40, %v1506_v61  ;;  %1779 = vmatpush.msra.mxu0 %v1730_v44  ;;  %1843 = vmatpush.msra.mxu3 %v1717_v50  ;;  %v1706_v61 = vld [vmem:[#allocation6 + $0x40] sm:$0xff]  ;;  %v4849_v19 = vld [vmem:[#allocation8 + $0x178] sm:$0xff]  ;;  %v4882_v48 = vld [vmem:[#allocation8 + $0x108] sm:$0xff] }
 0x4ff   :  { %v3333_v14 = vpop.eup %3332  ;;  %v1489_v16 = vadd.f32 %v3329_v47, %v1488_v10  ;;  %1799 = vmatpush.msra.mxu1 %v1731_v11  ;;  %v1709_v10 = vld [vmem:[#allocation6 + $0x58] sm:$0xff]  ;;  %v4894_v0 = vld [vmem:[#allocation8 + $0xe8] sm:$0xff] }
 0x500   :  { %v1508_v17 = vadd.f32 %v3331_v40, %v1507_v12  ;;  %v1524_v20 = vmul.f32 %v3333_v14, %v4775_v43  ;;  %v3335_v24 = vpop.eup %3334  ;;  %vm1529_vm7 = vweird.f32 %v3333_v14  ;;  %1780 = vmatpush.msra.mxu0 %v1726_v29  ;;  %v1724_v43 = vld [vmem:[#allocation6 + $0xd0] sm:$0xff]  ;;  %1844 = vmatpush.msra.mxu3 %v1713_v31  ;;  %v1703_v12 = vld [vmem:[#allocation6 + $0x28] sm:$0xff]  ;;  %v4863_v11 = vld [vmem:[#allocation8 + $0x158] sm:$0xff] }
 0x501   :  { %v1493_v23 = vsel %vm1492_vm3, %v3329_v47, %v1489_v16  ;;  %vm1530_vm9 = vmor %vm1528_vm8, %vm1529_vm7  ;;  %1800 = vmatpush.msra.mxu1 %v1727_v8  ;;  %1821 = vmatpush.msra.mxu2 %v1724_v43  ;;  %v1719_v47 = vld [vmem:[#allocation6 + $0xa8] sm:$0xff]  ;;  %v1698_v16 = vld [vmem:[#allocation6] sm:$0xff] }
 0x502   :  { %v1498_v2 = vsel %vm1495_vm5, %v1497_v60, %v1493_v23  ;;  %v1512_v1 = vsel %vm1511_vm4, %v3331_v40, %v1508_v17  ;;  %v1525_v27 = vsub.f32 1.0, %v1524_v20  ;;  %1781 = vmatpush.msra.mxu0 %v1722_v32  ;;  %v1716_v40 = vld [vmem:[#allocation6 + $0x90] sm:$0xff]  ;;  %1845 = vmatpush.msra.mxu3 %v1709_v10  ;;  %v1699_v60 = vld [vmem:[#allocation6 + $0x8] sm:$0xff]  ;;  %v1701_v20 = vld [vmem:[#allocation6 + $0x18] sm:$0xff] }
 0x503   :  { %v1517_v42 = vsel %vm1514_vm6, %v1516_v62, %v1512_v1  ;;  %v1540_v4 = vmul.f32 %v3335_v24, %v1498_v2  ;;  %1801 = vmatpush.msra.mxu1 %v1723_v26  ;;  %1822 = vmatpush.msra.mxu2 %v1720_v53  ;;  %v1700_v17 = vld [vmem:[#allocation6 + $0x10] sm:$0xff]  ;;  %v4795_v62 = vld [vmem:[#allocation8 + $0x1e0] sm:$0xff]  ;;  %v4797_v23 = vld [vmem:[#allocation8 + $0x1e8] sm:$0xff] }
 0x504   :  { %v1539_v33 = vmul.f32 %v1517_v42, %v4762_v58  ;;  %v1526_v5 = vmul.f32 %v3333_v14, %v1525_v27  ;;  %1782 = vmatpush.msra.mxu0 %v1718_v36  ;;  %v4799_v24 = vld [vmem:[#allocation8 + $0x1f0] sm:$0xff]  ;;  %v4801_v2 = vld [vmem:[#allocation8 + $0x1f8] sm:$0xff]  ;;  %v4805_v1 = vld [vmem:[#allocation8 + $0x1c0] sm:$0xff] }
 0x505   :  { %1802 = vmatpush.msra.mxu1 %v1719_v47  ;;  %1823 = vmatpush.msra.mxu2 %v1716_v40  ;;  %v4807_v27 = vld [vmem:[#allocation8 + $0x1c8] sm:$0xff]  ;;  %v4809_v42 = vld [vmem:[#allocation8 + $0x1d0] sm:$0xff]  ;;  %v4868_v29 = vld [vmem:[#allocation8 + $0x120] sm:$0xff] }
 0x506   :  { %v4789_v30 = vadd.f32 %v1540_v4, %v1539_v33  ;;  %v1527_v57 = vadd.f32 %v3333_v14, %v1526_v5  ;;  %1783 = vmatpush.msra.mxu0 %v1714_v7  ;;  %v4813_v4 = vld [vmem:[#allocation8 + $0x1d8] sm:$0xff]  ;;  %v4817_v33 = vld [vmem:[#allocation8 + $0x1a0] sm:$0xff]  ;;  %v4819_v5 = vld [vmem:[#allocation8 + $0x1a8] sm:$0xff] }
 0x507   :  { %1803 = vmatpush.msra.mxu1 %v1715_v59  ;;  %1824 = vmatpush.msra.mxu2 %v1712_v41  ;;  %v4870_v8 = vld [vmem:[#allocation8 + $0x128] sm:$0xff]  ;;  %v4880_v43 = vld [vmem:[#allocation8 + $0x100] sm:$0xff]  ;;  %v4886_v36 = vld [vmem:[#allocation8 + $0x110] sm:$0xff] }
 0x508   :  { %3336 = vtanh.f32 %v4789_v30  ;;  %v1531_v3 = vsel %vm1530_vm9, %v3333_v14, %v1527_v57  ;;  %1784 = vmatpush.msra.mxu0 %v1710_v18  ;;  %v1705_v14 = vld [vmem:[#allocation6 + $0x38] sm:$0xff]  ;;  %v4821_v57 = vld [vmem:[#allocation8 + $0x1b0] sm:$0xff]  ;;  %v4890_v53 = vld [vmem:[#allocation8 + $0xe0] sm:$0xff] }
 0x509   :  { %v1536_v35 = vsel %vm1533_vm10, %v1535_v22, %v1531_v3  ;;  %1804 = vmatpush.msra.mxu1 %v1711_v51  ;;  %1825 = vmatpush.msra.mxu2 %v1708_v9  ;;  %v4831_v3 = vld [vmem:[#allocation8 + $0x188] sm:$0xff]  ;;  %v4833_v22 = vld [vmem:[#allocation8 + $0x190] sm:$0xff]  ;;  %v4888_v47 = vld [vmem:[#allocation8 + $0x118] sm:$0xff] }
 0x50a   :  { %1785 = vmatpush.msra.mxu0 %v1706_v61  ;;  %1846 = vmatpush.msra.mxu3 %v1705_v14  ;;  %v4896_v7 = vld [vmem:[#allocation8 + $0xf0] sm:$0xff]  ;;  %v4898_v59 = vld [vmem:[#allocation8 + $0xf8] sm:$0xff]  ;;  %v4902_v40 = vld [vmem:[#allocation8 + $0xc0] sm:$0xff] }
 0x50b   :  { %1805 = vmatpush.msra.mxu1 %v1707_v52  ;;  %1826 = vmatpush.msra.mxu2 %v1704_v13  ;;  %v4904_v50 = vld [vmem:[#allocation8 + $0xc8] sm:$0xff]  ;;  %v4908_v51 = vld [vmem:[#allocation8 + $0xd0] sm:$0xff]  ;;  %v4910_v41 = vld [vmem:[#allocation8 + $0xd8] sm:$0xff] }
 0x50c   :  { %1786 = vmatpush.msra.mxu0 %v1702_v55  ;;  %1847 = vmatpush.msra.mxu3 %v1701_v20  ;;  %6239 = vst [vmem:[#allocation42_spill] sm:$0xff] %v4908_v51  ;;  %v6241_v31 = vld [vmem:[#allocation60_spill] sm:$0xff]  ;;  %v4915_v52 = vld [vmem:[#allocation8 + $0xa0] sm:$0xff]  ;;  %v4921_v10 = vld [vmem:[#allocation8 + $0xb0] sm:$0xff] }
 0x50d   :  { %1806 = vmatpush.msra.mxu1 %v1703_v12  ;;  %1827 = vmatpush.msra.mxu2 %v1700_v17  ;;  %6240 = vst [vmem:[#allocation49_spill] sm:$0xff] %v4910_v41  ;;  %v4917_v9 = vld [vmem:[#allocation8 + $0xa8] sm:$0xff]  ;;  %v4923_v55 = vld [vmem:[#allocation8 + $0xb8] sm:$0xff]  ;;  %v4927_v13 = vld [vmem:[#allocation8 + $0x80] sm:$0xff] }
 0x50e   :  { %v3337_v25 = vpop.eup %3336  ;;  %1787 = vmatpush.msra.mxu0 %v1698_v16  ;;  %6242 = vst [vmem:[#allocation41_spill] sm:$0xff] %v4915_v52  ;;  %v4929_v14 = vld [vmem:[#allocation8 + $0x88] sm:$0xff]  ;;  %v4935_v17 = vld [vmem:[#allocation8 + $0x98] sm:$0xff] }
 0x50f   :  { %v1543_v58 = vmul.f32 %v3337_v25, %v1536_v35  ;;  %1807 = vmatpush.msra.mxu1 %v1699_v60  ;;  %v4837_v25 = vld [vmem:[#allocation8 + $0x198] sm:$0xff]  ;;  %v4841_v35 = vld [vmem:[#allocation8 + $0x160] sm:$0xff]  ;;  %6243 = vst [vmem:[#allocation11_spill] sm:$0xff] %v4917_v9  ;;  %v4933_v60 = vld [vmem:[#allocation8 + $0x90] sm:$0xff] }
 0x510   :  { %6244 = vst [vmem:[#allocation44_spill] sm:$0xff] %v4921_v10 }
 0x511   :  { %1567 = vmatmul.f32.vlgmr.msrb.gmra.mxu0 %v1543_v58  ;;  %1587 = vmatmul.f32.vlgmr.msrb.gmra.mxu1 %v1543_v58  ;;  %6245 = vst [vmem:[#allocation52_spill] sm:$0xff] %v4923_v55 }
 0x512   :  { %1607 = vmatmul.f32.vlgmr.msrb.gmra.mxu2 %v1543_v58  ;;  %1627 = vmatmul.f32.vlgmr.msrb.gmra.mxu3 %v1543_v58  ;;  %v4843_v58 = vld [vmem:[#allocation8 + $0x168] sm:$0xff]  ;;  %6246 = vst [vmem:[#allocation43_spill] sm:$0xff] %v4927_v13 }
 0x513   :  { %1852 = vmatpush.msrb.mxu0 %v4795_v62  ;;  %1872 = vmatpush.msrb.mxu1 %v4797_v23  ;;  %6247 = vst [vmem:[#allocation35_spill] sm:$0xff] %v4929_v14 }
 0x514   :  { %1892 = vmatpush.msrb.mxu2 %v4799_v24  ;;  %1912 = vmatpush.msrb.mxu3 %v4801_v2  ;;  %6248 = vst [vmem:[#allocation47_spill] sm:$0xff] %v4933_v60 }
 0x515   :  { %1853 = vmatpush.msrb.mxu0 %v4805_v1  ;;  %1873 = vmatpush.msrb.mxu1 %v4807_v27  ;;  %6249 = vst [vmem:[#allocation55_spill] sm:$0xff] %v4935_v17 }
 0x516   :  { %1893 = vmatpush.msrb.mxu2 %v4809_v42  ;;  %1913 = vmatpush.msrb.mxu3 %v4813_v4 }
 0x517   :  { %1854 = vmatpush.msrb.mxu0 %v4817_v33  ;;  %1874 = vmatpush.msrb.mxu1 %v4819_v5 }
 0x518   :  { %1894 = vmatpush.msrb.mxu2 %v4821_v57  ;;  %1914 = vmatpush.msrb.mxu3 %v4825_v15 }
 0x519   :  { %1855 = vmatpush.msrb.mxu0 %v4829_v63  ;;  %1875 = vmatpush.msrb.mxu1 %v4831_v3 }
 0x51a   :  { %1895 = vmatpush.msrb.mxu2 %v4833_v22  ;;  %1915 = vmatpush.msrb.mxu3 %v4837_v25 }
 0x51b   :  { %1856 = vmatpush.msrb.mxu0 %v4841_v35  ;;  %1876 = vmatpush.msrb.mxu1 %v4843_v58 }
 0x51c   :  { %1896 = vmatpush.msrb.mxu2 %v4845_v39  ;;  %1916 = vmatpush.msrb.mxu3 %v4849_v19 }
 0x51d   :  { %1857 = vmatpush.msrb.mxu0 %v4855_v6  ;;  %1877 = vmatpush.msrb.mxu1 %v4857_v45 }
 0x51e   :  { %1897 = vmatpush.msrb.mxu2 %v4859_v38  ;;  %1917 = vmatpush.msrb.mxu3 %v4863_v11 }
 0x51f   :  { %1858 = vmatpush.msrb.mxu0 %v4868_v29  ;;  %1878 = vmatpush.msrb.mxu1 %v4870_v8 }
 0x520   :  { %1898 = vmatpush.msrb.mxu2 %v4872_v54  ;;  %1918 = vmatpush.msrb.mxu3 %v4876_v21 }
 0x521   :  { %1859 = vmatpush.msrb.mxu0 %v4880_v43  ;;  %1879 = vmatpush.msrb.mxu1 %v4882_v48 }
 0x522   :  { %1899 = vmatpush.msrb.mxu2 %v4886_v36  ;;  %1919 = vmatpush.msrb.mxu3 %v4888_v47 }
 0x523   :  { %1860 = vmatpush.msrb.mxu0 %v4890_v53  ;;  %1880 = vmatpush.msrb.mxu1 %v4894_v0 }
 0x524   :  { %1900 = vmatpush.msrb.mxu2 %v4896_v7  ;;  %1920 = vmatpush.msrb.mxu3 %v4898_v59 }
 0x525   :  { %1861 = vmatpush.msrb.mxu0 %v4902_v40  ;;  %1881 = vmatpush.msrb.mxu1 %v4904_v50 }
 0x526   :  { %1901 = vmatpush.msrb.mxu2 %v4908_v51  ;;  %1921 = vmatpush.msrb.mxu3 %v4910_v41 }
 0x527   :  { %1862 = vmatpush.msrb.mxu0 %v4915_v52  ;;  %1882 = vmatpush.msrb.mxu1 %v4917_v9 }
 0x528   :  { %1902 = vmatpush.msrb.mxu2 %v4921_v10  ;;  %1922 = vmatpush.msrb.mxu3 %v4923_v55 }
 0x529   :  { %1863 = vmatpush.msrb.mxu0 %v4927_v13  ;;  %1883 = vmatpush.msrb.mxu1 %v4929_v14 }
 0x52a   :  { %1903 = vmatpush.msrb.mxu2 %v4933_v60  ;;  %1923 = vmatpush.msrb.mxu3 %v4935_v17  ;;  %v6266_v60 = vld [vmem:[#allocation54_spill] sm:$0xff] }
 0x58e   :  { %v1568_v56 = vpop.f32.mrf.mxu0  ;;  %v1588_v44 = vpop.f32.mrf.mxu1 }
 0x58f   :  { %v1631_v46 = vadd.f32 %v1568_v56, %v309_v37  ;;  %v1632_v49 = vadd.f32 %v1588_v44, %v6238_v28  ;;  %v4948_v56 = vld [vmem:[#allocation8 + $0x60] sm:$0xff]  ;;  %v4950_v44 = vld [vmem:[#allocation8 + $0x68] sm:$0xff]  ;;  %v4957_v28 = vld [vmem:[#allocation8 + $0x78] sm:$0xff] }
 0x590   :  { %6250 = vst [vmem:[#allocation45_spill] sm:$0xff] %v4948_v56  ;;  %1864 = vmatpush.msrb.mxu0 %v4948_v56  ;;  %1884 = vmatpush.msrb.mxu1 %v4950_v44 }
 0x591   :  { %v3190_v32 = vmul.f32 -1.442695, %v1631_v46  ;;  %v3191_v26 = vmul.f32 -1.442695, %v1632_v49  ;;  %6251 = vst [vmem:[#allocation17_spill] sm:$0xff] %v4950_v44  ;;  %v4952_v46 = vld [vmem:[#allocation8 + $0x70] sm:$0xff]  ;;  %1924 = vmatpush.msrb.mxu3 %v4957_v28 }
 0x592   :  { %6252 = vst [vmem:[#allocation14_spill] sm:$0xff] %v4952_v46  ;;  %v4959_v49 = vld [vmem:[#allocation8 + $0x40] sm:$0xff]  ;;  %1904 = vmatpush.msrb.mxu2 %v4952_v46  ;;  %v4983_v44 = vld [vmem:[#allocation8 + $0x8] sm:$0xff] }
 0x593   :  { %3338 = vpow2.f32 %v3190_v32  ;;  %6253 = vst [vmem:[#allocation29_spill] sm:$0xff] %v4957_v28  ;;  %v4961_v32 = vld [vmem:[#allocation8 + $0x48] sm:$0xff]  ;;  %1865 = vmatpush.msrb.mxu0 %v4959_v49  ;;  %v4981_v28 = vld [vmem:[#allocation8] sm:$0xff] }
 0x594   :  { %3340 = vpow2.f32 %v3191_v26  ;;  %6254 = vst [vmem:[#allocation19_spill] sm:$0xff] %v4959_v49  ;;  %v4965_v26 = vld [vmem:[#allocation8 + $0x50] sm:$0xff]  ;;  %1885 = vmatpush.msrb.mxu1 %v4961_v32  ;;  %v4989_v49 = vld [vmem:[#allocation8 + $0x18] sm:$0xff] }
 0x595   :  { %v1628_v18 = vpop.f32.mrf.mxu3  ;;  %6255 = vst [vmem:[#allocation23_spill] sm:$0xff] %v4961_v32  ;;  %1905 = vmatpush.msrb.mxu2 %v4965_v26  ;;  %v4987_v32 = vld [vmem:[#allocation8 + $0x10] sm:$0xff] }
 0x596   :  { %v1634_v61 = vadd.f32 %v1628_v18, %v6241_v31  ;;  %6256 = vst [vmem:[#allocation12_spill] sm:$0xff] %v4965_v26  ;;  %v4967_v18 = vld [vmem:[#allocation8 + $0x58] sm:$0xff]  ;;  %v4969_v31 = vld [vmem:[#allocation8 + $0x20] sm:$0xff] }
 0x597   :  { %6257 = vst [vmem:[#allocation16_spill] sm:$0xff] %v4967_v18  ;;  %1925 = vmatpush.msrb.mxu3 %v4967_v18  ;;  %1866 = vmatpush.msrb.mxu0 %v4969_v31 }
 0x598   :  { %v3192_v12 = vmul.f32 -1.442695, %v1634_v61  ;;  %6258 = vst [vmem:[#allocation30_spill] sm:$0xff] %v4969_v31  ;;  %v1608_v61 = vpop.f32.mrf.mxu2 }
 0x599   :  { %v3339_v16 = vpop.eup %3338  ;;  %6262 = vst [vmem:[#allocation20_spill] sm:$0xff] %v4981_v28  ;;  %v1633_v14 = vadd.f32 %v1608_v61, %v6266_v60  ;;  %1867 = vmatpush.msrb.mxu0 %v4981_v28 }
 0x59a   :  { %v3341_v20 = vpop.eup %3340  ;;  %v4937_v34 = vadd.f32 1.0, %v3339_v16  ;;  %3342 = vpow2.f32 %v3192_v12  ;;  %v4973_v12 = vld [vmem:[#allocation8 + $0x28] sm:$0xff]  ;;  %v4975_v16 = vld [vmem:[#allocation8 + $0x30] sm:$0xff]  ;;  %6263 = vst [vmem:[#allocation27_spill] sm:$0xff] %v4983_v44 }
 0x59b   :  { %v4941_v37 = vadd.f32 1.0, %v3341_v20  ;;  %6259 = vst [vmem:[#allocation33_spill] sm:$0xff] %v4973_v12  ;;  %v4977_v20 = vld [vmem:[#allocation8 + $0x38] sm:$0xff]  ;;  %1886 = vmatpush.msrb.mxu1 %v4973_v12  ;;  %1906 = vmatpush.msrb.mxu2 %v4975_v16 }
 0x59c   :  { %3344 = vrcp.f32 %v4937_v34  ;;  %6260 = vst [vmem:[#allocation22_spill] sm:$0xff] %v4975_v16  ;;  %1926 = vmatpush.msrb.mxu3 %v4977_v20  ;;  %v1650_v61 = vand.u32 2147483648, %v4937_v34  ;;  %v1648_v31 = vand.u32 2147483647, %v4937_v34  ;;  %vm1644_vm13 = vweird.f32 %v4937_v34 }
 0x59d   :  { %3346 = vrcp.f32 %v4941_v37  ;;  %6261 = vst [vmem:[#allocation13_spill] sm:$0xff] %v4977_v20  ;;  %1887 = vmatpush.msrb.mxu1 %v4983_v44  ;;  %1907 = vmatpush.msrb.mxu2 %v4987_v32  ;;  %v1669_v20 = vand.u32 2147483648, %v4941_v37  ;;  %v1667_v44 = vand.u32 2147483647, %v4941_v37  ;;  %vm1663_vm14 = vweird.f32 %v4941_v37 }
 0x59e   :  { %6264 = vst [vmem:[#allocation18_spill] sm:$0xff] %v4987_v32  ;;  %1927 = vmatpush.msrb.mxu3 %v4989_v49  ;;  %vm1649_vm2 = vcmp.eq.f32.partialorder %v1648_v31, 8.507059e+37 }
 0x59f   :  { %6265 = vst [vmem:[#allocation31_spill] sm:$0xff] %v4989_v49  ;;  %v1670_v49 = vor.u32 1.1754944e-38, %v1669_v20  ;;  %vm1668_vm3 = vcmp.eq.f32.partialorder %v1667_v44, 8.507059e+37  ;;  %v6277_v20 = vld [vmem:[#allocation55_spill] sm:$0xff] }
 0x5a0   :  { %v3343_v46 = vpop.eup %3342 }
 0x5a1   :  { %v1676_v56 = vadd.f32 1.0, %v3343_v46 }
 0x5a2   :  { %v3345_v17 = vpop.eup %3344 }
 0x5a3   :  { %v3347_v18 = vpop.eup %3346  ;;  %v1640_v26 = vmul.f32 %v3345_v17, %v4937_v34  ;;  %3348 = vrcp.f32 %v1676_v56  ;;  %vm1645_vm11 = vweird.f32 %v3345_v17  ;;  %vm1682_vm5 = vweird.f32 %v1676_v56 }
 0x5a4   :  { %v1659_v46 = vmul.f32 %v3347_v18, %v4941_v37  ;;  %3350 = vtanh.f32 %v1633_v14  ;;  %vm1664_vm12 = vweird.f32 %v3347_v18  ;;  %vm1646_vm15 = vmor %vm1644_vm13, %vm1645_vm11 }
 0x5a5   :  { %v1641_v12 = vsub.f32 1.0, %v1640_v26  ;;  %v1651_v26 = vor.u32 1.1754944e-38, %v1650_v61  ;;  %vm1665_vm0 = vmor %vm1663_vm14, %vm1664_vm12  ;;  %v1686_v61 = vand.u32 2147483647, %v1676_v56 }
 0x5a6   :  { %v1660_v60 = vsub.f32 1.0, %v1659_v46 }
 0x5a7   :  { %v1642_v16 = vmul.f32 %v3345_v17, %v1641_v12  ;;  %vm1687_vm7 = vcmp.eq.f32.partialorder %v1686_v61, 8.507059e+37  ;;  %v6287_v61 = vld [vmem:[#allocation33_spill] sm:$0xff] }
 0x5a8   :  { %v1661_v28 = vmul.f32 %v3347_v18, %v1660_v60 }
 0x5a9   :  { %v3349_v13 = vpop.eup %3348  ;;  %v1643_v55 = vadd.f32 %v3345_v17, %v1642_v16 }
 0x5aa   :  { %v1662_v46 = vadd.f32 %v3347_v18, %v1661_v28  ;;  %v1678_v14 = vmul.f32 %v3349_v13, %v1676_v56  ;;  %v3351_v32 = vpop.eup %3350  ;;  %vm1683_vm4 = vweird.f32 %v3349_v13  ;;  %v1688_v28 = vand.u32 2147483648, %v1676_v56  ;;  %v6274_v56 = vld [vmem:[#allocation43_spill] sm:$0xff] }
 0x5ab   :  { %v1647_v12 = vsel %vm1646_vm15, %v3345_v17, %v1643_v55  ;;  %vm1684_vm6 = vmor %vm1682_vm5, %vm1683_vm4 }
 0x5ac   :  { %v1652_v10 = vsel %vm1649_vm2, %v1651_v26, %v1647_v12  ;;  %v1666_v60 = vsel %vm1665_vm0, %v3347_v18, %v1662_v46  ;;  %v1679_v9 = vsub.f32 1.0, %v1678_v14  ;;  %v1689_v17 = vor.u32 1.1754944e-38, %v1688_v28  ;;  %v6278_v26 = vld [vmem:[#allocation45_spill] sm:$0xff]  ;;  %v6280_v14 = vld [vmem:[#allocation14_spill] sm:$0xff] }
 0x5ad   :  { %v1671_v52 = vsel %vm1668_vm3, %v1670_v49, %v1666_v60  ;;  %v1694_v41 = vmul.f32 %v3351_v32, %v1652_v10  ;;  %v6272_v10 = vld [vmem:[#allocation44_spill] sm:$0xff]  ;;  %v6275_v49 = vld [vmem:[#allocation35_spill] sm:$0xff]  ;;  %v6279_v46 = vld [vmem:[#allocation17_spill] sm:$0xff] }
 0x5ae   :  { %v1693_v16 = vmul.f32 %v1671_v52, %v4789_v30  ;;  %v1680_v34 = vmul.f32 %v3349_v13, %v1679_v9  ;;  %v6267_v30 = vmov 0.0   ;;  %v6270_v52 = vld [vmem:[#allocation41_spill] sm:$0xff]  ;;  %v6271_v9 = vld [vmem:[#allocation11_spill] sm:$0xff]  ;;  %v6286_v28 = vld [vmem:[#allocation30_spill] sm:$0xff] }
 0x5af   :  { %v6276_v32 = vld [vmem:[#allocation47_spill] sm:$0xff]  ;;  %v6281_v12 = vld [vmem:[#allocation29_spill] sm:$0xff] }
 0x5b0   :  { %v1695_v51 = vadd.f32 %v1694_v41, %v1693_v16  ;;  %v1681_v37 = vadd.f32 %v3349_v13, %v1680_v34  ;;  %v6269_v41 = vld [vmem:[#allocation49_spill] sm:$0xff]  ;;  %v6282_v60 = vld [vmem:[#allocation19_spill] sm:$0xff]  ;;  %v6284_v34 = vld [vmem:[#allocation12_spill] sm:$0xff] }
 0x5b1   :  { %v6283_v16 = vld [vmem:[#allocation23_spill] sm:$0xff] }
 0x5b2   :  { %3352 = vtanh.f32 %v1695_v51  ;;  %v1685_v55 = vsel %vm1684_vm6, %v3349_v13, %v1681_v37  ;;  %v6268_v51 = vld [vmem:[#allocation42_spill] sm:$0xff]  ;;  %v6273_v13 = vld [vmem:[#allocation52_spill] sm:$0xff] }
 0x5b3   :  { %v1690_v18 = vsel %vm1687_vm7, %v1689_v17, %v1685_v55  ;;  %v6285_v37 = vld [vmem:[#allocation16_spill] sm:$0xff]  ;;  %v6288_v55 = vld [vmem:[#allocation22_spill] sm:$0xff]  ;;  %v6289_v17 = vld [vmem:[#allocation13_spill] sm:$0xff] }
 0x5b8   :  { %v3353_v31 = vpop.eup %3352 }
 0x5b9   :  { %v1697_v44 = vmul.f32 %v3353_v31, %v1690_v18  ;;  %v6290_v31 = vld [vmem:[#allocation20_spill] sm:$0xff]  ;;  %v6291_v18 = vld [vmem:[#allocation27_spill] sm:$0xff] }
 0x5bb   :  { %1788 = vmatmul.f32.vlgmr.msra.gmra.mxu0 %v1697_v44  ;;  %1808 = vmatmul.f32.vlgmr.msra.gmra.mxu1 %v1697_v44 }
 0x5bc   :  { %1828 = vmatmul.f32.vlgmr.msra.gmra.mxu2 %v1697_v44  ;;  %1848 = vmatmul.f32.vlgmr.msra.gmra.mxu3 %v1697_v44  ;;  %v6292_v44 = vld [vmem:[#allocation18_spill] sm:$0xff] }
 0x5bd   :  { %2000 = vmatpush.msra.mxu0 %v4795_v62  ;;  %2020 = vmatpush.msra.mxu1 %v4797_v23 }
 0x5be   :  { %2040 = vmatpush.msra.mxu2 %v4799_v24  ;;  %2060 = vmatpush.msra.mxu3 %v4801_v2 }
 0x5bf   :  { %2001 = vmatpush.msra.mxu0 %v4805_v1  ;;  %2021 = vmatpush.msra.mxu1 %v4807_v27 }
 0x5c0   :  { %2041 = vmatpush.msra.mxu2 %v4809_v42  ;;  %2061 = vmatpush.msra.mxu3 %v4813_v4 }
 0x5c1   :  { %2002 = vmatpush.msra.mxu0 %v4817_v33  ;;  %2022 = vmatpush.msra.mxu1 %v4819_v5 }
 0x5c2   :  { %2042 = vmatpush.msra.mxu2 %v4821_v57  ;;  %2062 = vmatpush.msra.mxu3 %v4825_v15 }
 0x5c3   :  { %1868 = vmatmul.f32.vlgmr.msrb.gmra.mxu0 %v6267_v30  ;;  %1888 = vmatmul.f32.vlgmr.msrb.gmra.mxu1 %v6267_v30 }
 0x5c4   :  { %1908 = vmatmul.f32.vlgmr.msrb.gmra.mxu2 %v6267_v30  ;;  %1928 = vmatmul.f32.vlgmr.msrb.gmra.mxu3 %v6267_v30  ;;  %v6293_v30 = vld [vmem:[#allocation31_spill] sm:$0xff] }
 0x5c5   :  { %2003 = vmatpush.msra.mxu0 %v4829_v63  ;;  %2023 = vmatpush.msra.mxu1 %v4831_v3 }
 0x5c6   :  { %2043 = vmatpush.msra.mxu2 %v4833_v22  ;;  %2063 = vmatpush.msra.mxu3 %v4837_v25 }
 0x5c7   :  { %2004 = vmatpush.msra.mxu0 %v4841_v35  ;;  %2024 = vmatpush.msra.mxu1 %v4843_v58 }
 0x5c8   :  { %2044 = vmatpush.msra.mxu2 %v4845_v39  ;;  %2064 = vmatpush.msra.mxu3 %v4849_v19 }
 0x5c9   :  { %2005 = vmatpush.msra.mxu0 %v4855_v6  ;;  %2025 = vmatpush.msra.mxu1 %v4857_v45 }
 0x5ca   :  { %2045 = vmatpush.msra.mxu2 %v4859_v38  ;;  %2065 = vmatpush.msra.mxu3 %v4863_v11 }
 0x5cb   :  { %2006 = vmatpush.msra.mxu0 %v4868_v29  ;;  %2026 = vmatpush.msra.mxu1 %v4870_v8 }
 0x5cc   :  { %2046 = vmatpush.msra.mxu2 %v4872_v54  ;;  %2066 = vmatpush.msra.mxu3 %v4876_v21 }
 0x5cd   :  { %2007 = vmatpush.msra.mxu0 %v4880_v43  ;;  %2027 = vmatpush.msra.mxu1 %v4882_v48 }
 0x5ce   :  { %2047 = vmatpush.msra.mxu2 %v4886_v36  ;;  %2067 = vmatpush.msra.mxu3 %v4888_v47 }
 0x5cf   :  { %2008 = vmatpush.msra.mxu0 %v4890_v53  ;;  %2028 = vmatpush.msra.mxu1 %v4894_v0 }
 0x5d0   :  { %2048 = vmatpush.msra.mxu2 %v4896_v7  ;;  %2068 = vmatpush.msra.mxu3 %v4898_v59 }
 0x5d1   :  { %2009 = vmatpush.msra.mxu0 %v4902_v40  ;;  %2029 = vmatpush.msra.mxu1 %v4904_v50 }
 0x5d2   :  { %2049 = vmatpush.msra.mxu2 %v6268_v51  ;;  %2069 = vmatpush.msra.mxu3 %v6269_v41 }
 0x5d3   :  { %2010 = vmatpush.msra.mxu0 %v6270_v52  ;;  %2030 = vmatpush.msra.mxu1 %v6271_v9 }
 0x5d4   :  { %2050 = vmatpush.msra.mxu2 %v6272_v10  ;;  %2070 = vmatpush.msra.mxu3 %v6273_v13 }
 0x5d5   :  { %2011 = vmatpush.msra.mxu0 %v6274_v56  ;;  %2031 = vmatpush.msra.mxu1 %v6275_v49 }
 0x5d6   :  { %2051 = vmatpush.msra.mxu2 %v6276_v32  ;;  %2071 = vmatpush.msra.mxu3 %v6277_v20 }
 0x5d7   :  { %2012 = vmatpush.msra.mxu0 %v6278_v26  ;;  %2032 = vmatpush.msra.mxu1 %v6279_v46 }
 0x5d8   :  { %2052 = vmatpush.msra.mxu2 %v6280_v14  ;;  %2072 = vmatpush.msra.mxu3 %v6281_v12 }
 0x5d9   :  { %2013 = vmatpush.msra.mxu0 %v6282_v60  ;;  %2033 = vmatpush.msra.mxu1 %v6283_v16 }
 0x5da   :  { %2053 = vmatpush.msra.mxu2 %v6284_v34  ;;  %2073 = vmatpush.msra.mxu3 %v6285_v37 }
 0x5db   :  { %2014 = vmatpush.msra.mxu0 %v6286_v28  ;;  %2034 = vmatpush.msra.mxu1 %v6287_v61 }
 0x5dc   :  { %2054 = vmatpush.msra.mxu2 %v6288_v55  ;;  %2074 = vmatpush.msra.mxu3 %v6289_v17 }
 0x5dd   :  { %2015 = vmatpush.msra.mxu0 %v6290_v31  ;;  %2035 = vmatpush.msra.mxu1 %v6291_v18 }
 0x5de   :  { %2055 = vmatpush.msra.mxu2 %v6292_v44  ;;  %2075 = vmatpush.msra.mxu3 %v6293_v30 }
 0x5df   :  { %2149 = vmatpush.msrb.mxu0 %v4795_v62  ;;  %2169 = vmatpush.msrb.mxu1 %v4797_v23 }
 0x5e0   :  { %2189 = vmatpush.msrb.mxu2 %v4799_v24  ;;  %2209 = vmatpush.msrb.mxu3 %v4801_v2 }
 0x5e1   :  { %2150 = vmatpush.msrb.mxu0 %v4805_v1  ;;  %2170 = vmatpush.msrb.mxu1 %v4807_v27 }
 0x5e2   :  { %2190 = vmatpush.msrb.mxu2 %v4809_v42  ;;  %2210 = vmatpush.msrb.mxu3 %v4813_v4 }
 0x5e3   :  { %2151 = vmatpush.msrb.mxu0 %v4817_v33  ;;  %2171 = vmatpush.msrb.mxu1 %v4819_v5 }
 0x5e4   :  { %2191 = vmatpush.msrb.mxu2 %v4821_v57  ;;  %2211 = vmatpush.msrb.mxu3 %v4825_v15 }
 0x5e5   :  { %2152 = vmatpush.msrb.mxu0 %v4829_v63  ;;  %2172 = vmatpush.msrb.mxu1 %v4831_v3 }
 0x5e6   :  { %2192 = vmatpush.msrb.mxu2 %v4833_v22  ;;  %2212 = vmatpush.msrb.mxu3 %v4837_v25 }
 0x5e7   :  { %2153 = vmatpush.msrb.mxu0 %v4841_v35  ;;  %2173 = vmatpush.msrb.mxu1 %v4843_v58 }
 0x5e8   :  { %2193 = vmatpush.msrb.mxu2 %v4845_v39  ;;  %2213 = vmatpush.msrb.mxu3 %v4849_v19 }
 0x5e9   :  { %2154 = vmatpush.msrb.mxu0 %v4855_v6  ;;  %2174 = vmatpush.msrb.mxu1 %v4857_v45 }
 0x5ea   :  { %2194 = vmatpush.msrb.mxu2 %v4859_v38  ;;  %2214 = vmatpush.msrb.mxu3 %v4863_v11 }
 0x5eb   :  { %2155 = vmatpush.msrb.mxu0 %v4868_v29  ;;  %2175 = vmatpush.msrb.mxu1 %v4870_v8 }
 0x5ec   :  { %2195 = vmatpush.msrb.mxu2 %v4872_v54  ;;  %2215 = vmatpush.msrb.mxu3 %v4876_v21 }
 0x5ed   :  { %2156 = vmatpush.msrb.mxu0 %v4880_v43  ;;  %2176 = vmatpush.msrb.mxu1 %v4882_v48 }
 0x5ee   :  { %2196 = vmatpush.msrb.mxu2 %v4886_v36  ;;  %2216 = vmatpush.msrb.mxu3 %v4888_v47 }
 0x5ef   :  { %2157 = vmatpush.msrb.mxu0 %v4890_v53  ;;  %2177 = vmatpush.msrb.mxu1 %v4894_v0 }
 0x5f0   :  { %2197 = vmatpush.msrb.mxu2 %v4896_v7  ;;  %2217 = vmatpush.msrb.mxu3 %v4898_v59 }
 0x5f1   :  { %2158 = vmatpush.msrb.mxu0 %v4902_v40  ;;  %2178 = vmatpush.msrb.mxu1 %v4904_v50 }
 0x5f2   :  { %2198 = vmatpush.msrb.mxu2 %v6268_v51  ;;  %2218 = vmatpush.msrb.mxu3 %v6269_v41 }
 0x5f3   :  { %2159 = vmatpush.msrb.mxu0 %v6270_v52  ;;  %2179 = vmatpush.msrb.mxu1 %v6271_v9 }
 0x5f4   :  { %2199 = vmatpush.msrb.mxu2 %v6272_v10  ;;  %2219 = vmatpush.msrb.mxu3 %v6273_v13 }
 0x5f5   :  { %2160 = vmatpush.msrb.mxu0 %v6274_v56  ;;  %2180 = vmatpush.msrb.mxu1 %v6275_v49 }
 0x5f6   :  { %2200 = vmatpush.msrb.mxu2 %v6276_v32  ;;  %2220 = vmatpush.msrb.mxu3 %v6277_v20 }
 0x5f7   :  { %2161 = vmatpush.msrb.mxu0 %v6278_v26  ;;  %2181 = vmatpush.msrb.mxu1 %v6279_v46 }
 0x5f8   :  { %2201 = vmatpush.msrb.mxu2 %v6280_v14  ;;  %2221 = vmatpush.msrb.mxu3 %v6281_v12 }
 0x5f9   :  { %2162 = vmatpush.msrb.mxu0 %v6282_v60  ;;  %2182 = vmatpush.msrb.mxu1 %v6283_v16 }
 0x5fa   :  { %2202 = vmatpush.msrb.mxu2 %v6284_v34  ;;  %2222 = vmatpush.msrb.mxu3 %v6285_v37  ;;  %v1762_v37 = vld [vmem:[%s5799_s6] sm:$0xf] }
 0x5fb   :  { %2163 = vmatpush.msrb.mxu0 %v6286_v28  ;;  %2183 = vmatpush.msrb.mxu1 %v6287_v61  ;;  %v1764_v16 = vperm.slane %v1762_v37, 0  ;;  %v1765_v61 = vperm.slane %v1762_v37, 1 }
 0x5fc   :  { %2203 = vmatpush.msrb.mxu2 %v6288_v55  ;;  %2223 = vmatpush.msrb.mxu3 %v6289_v17 }
 0x5fd   :  { %2164 = vmatpush.msrb.mxu0 %v6290_v31  ;;  %2184 = vmatpush.msrb.mxu1 %v6291_v18 }
 0x5fe   :  { %2204 = vmatpush.msrb.mxu2 %v6292_v44  ;;  %2224 = vmatpush.msrb.mxu3 %v6293_v30  ;;  %v1767_v30 = vperm.slane %v1762_v37, 3 }
 0x638   :  { %v1789_v34 = vpop.f32.mrf.mxu0  ;;  %v1809_v28 = vpop.f32.mrf.mxu1 }
 0x639   :  { %v5142_v60 = vadd.f32 %v1789_v34, %v1764_v16  ;;  %v5144_v55 = vadd.f32 %v1809_v28, %v1765_v61 }
 0x63b   :  { %6294 = vst [vmem:[#allocation25_spill] sm:$0xff] %v5142_v60 }
 0x63c   :  { %6295 = vst [vmem:[#allocation24_spill] sm:$0xff] %v5144_v55 }
 0x63f   :  { %v1849_v17 = vpop.f32.mrf.mxu3  ;;  %v1829_v20 = vpop.f32.mrf.mxu2 }
 0x640   :  { %v1869_v31 = vpop.f32.mrf.mxu0  ;;  %v1889_v12 = vpop.f32.mrf.mxu1  ;;  %v5148_v26 = vadd.f32 %v1849_v17, %v1767_v30 }
 0x641   :  { %v1932_v18 = vadd.f32 %v1869_v31, %v5142_v60  ;;  %v1933_v44 = vadd.f32 %v1889_v12, %v5144_v55  ;;  %v1766_v31 = vperm.slane %v1762_v37, 2 }
 0x642   :  { %6296 = vst [vmem:[#allocation34_spill] sm:$0xff] %v5148_v26 }
 0x643   :  { %v3193_v14 = vmul.f32 -1.442695, %v1932_v18  ;;  %v3194_v46 = vmul.f32 -1.442695, %v1933_v44  ;;  %v5151_v44 = vadd.f32 %v1829_v20, %v1766_v31 }
 0x645   :  { %3354 = vpow2.f32 %v3193_v14  ;;  %6297 = vst [vmem:[#allocation15_spill] sm:$0xff] %v5151_v44 }
 0x646   :  { %3356 = vpow2.f32 %v3194_v46 }
 0x647   :  { %v1929_v32 = vpop.f32.mrf.mxu3  ;;  %v1909_v12 = vpop.f32.mrf.mxu2 }
 0x648   :  { %v1935_v16 = vadd.f32 %v1929_v32, %v5148_v26  ;;  %v1934_v46 = vadd.f32 %v1909_v12, %v5151_v44 }
 0x64a   :  { %v3195_v34 = vmul.f32 -1.442695, %v1935_v16 }
 0x64b   :  { %v3355_v28 = vpop.eup %3354 }
 0x64c   :  { %v3357_v61 = vpop.eup %3356  ;;  %v1939_v49 = vadd.f32 1.0, %v3355_v28  ;;  %3358 = vpow2.f32 %v3195_v34 }
 0x64d   :  { %v1958_v56 = vadd.f32 1.0, %v3357_v61 }
 0x64e   :  { %3360 = vrcp.f32 %v1939_v49  ;;  %v1951_v28 = vand.u32 2147483648, %v1939_v49  ;;  %v1949_v61 = vand.u32 2147483647, %v1939_v49  ;;  %vm1945_vm10 = vweird.f32 %v1939_v49 }
 0x64f   :  { %3362 = vrcp.f32 %v1958_v56  ;;  %v1970_v34 = vand.u32 2147483648, %v1958_v56  ;;  %v1968_v20 = vand.u32 2147483647, %v1958_v56  ;;  %vm1964_vm11 = vweird.f32 %v1958_v56 }
 0x650   :  { %v1952_v12 = vor.u32 1.1754944e-38, %v1951_v28  ;;  %vm1950_vm13 = vcmp.eq.f32.partialorder %v1949_v61, 8.507059e+37 }
 0x651   :  { %v1971_v10 = vor.u32 1.1754944e-38, %v1970_v34  ;;  %vm1969_vm15 = vcmp.eq.f32.partialorder %v1968_v20, 8.507059e+37  ;;  %v6328_v20 = vld [vmem:[#allocation15_spill] sm:$0xff] }
 0x652   :  { %v3359_v18 = vpop.eup %3358 }
 0x653   :  { %v1977_v14 = vadd.f32 1.0, %v3359_v18 }
 0x654   :  { %v3361_v17 = vpop.eup %3360 }
 0x655   :  { %v3363_v30 = vpop.eup %3362  ;;  %v1941_v55 = vmul.f32 %v3361_v17, %v1939_v49  ;;  %3364 = vrcp.f32 %v1977_v14  ;;  %vm1946_vm8 = vweird.f32 %v3361_v17  ;;  %v1989_v49 = vand.u32 2147483648, %v1977_v14 }
 0x656   :  { %v1960_v32 = vmul.f32 %v3363_v30, %v1958_v56  ;;  %3366 = vtanh.f32 %v1934_v46  ;;  %vm1965_vm9 = vweird.f32 %v3363_v30  ;;  %vm1947_vm12 = vmor %vm1945_vm10, %vm1946_vm8  ;;  %vm1983_vm2 = vweird.f32 %v1977_v14 }
 0x657   :  { %v1942_v16 = vsub.f32 1.0, %v1941_v55  ;;  %vm1966_vm14 = vmor %vm1964_vm11, %vm1965_vm9  ;;  %v1990_v28 = vor.u32 1.1754944e-38, %v1989_v49 }
 0x658   :  { %v1961_v26 = vsub.f32 1.0, %v1960_v32 }
 0x659   :  { %v1943_v37 = vmul.f32 %v3361_v17, %v1942_v16 }
 0x65a   :  { %v1962_v60 = vmul.f32 %v3363_v30, %v1961_v26 }
 0x65b   :  { %v3365_v31 = vpop.eup %3364  ;;  %v1944_v18 = vadd.f32 %v3361_v17, %v1943_v37 }
 0x65c   :  { %v1963_v44 = vadd.f32 %v3363_v30, %v1962_v60  ;;  %v1979_v13 = vmul.f32 %v3365_v31, %v1977_v14  ;;  %v3367_v46 = vpop.eup %3366  ;;  %vm1984_vm0 = vweird.f32 %v3365_v31  ;;  %v1987_v60 = vand.u32 2147483647, %v1977_v14 }
 0x65d   :  { %v1948_v55 = vsel %vm1947_vm12, %v3361_v17, %v1944_v18  ;;  %vm1985_vm3 = vmor %vm1983_vm2, %vm1984_vm0 }
 0x65e   :  { %v1953_v32 = vsel %vm1950_vm13, %v1952_v12, %v1948_v55  ;;  %v1967_v16 = vsel %vm1966_vm14, %v3363_v30, %v1963_v44  ;;  %v1980_v9 = vsub.f32 1.0, %v1979_v13  ;;  %vm1988_vm4 = vcmp.eq.f32.partialorder %v1987_v60, 8.507059e+37 }
 0x65f   :  { %v1972_v26 = vsel %vm1969_vm15, %v1971_v10, %v1967_v16  ;;  %v1995_v52 = vmul.f32 %v3367_v46, %v1953_v32 }
 0x660   :  { %v1994_v41 = vmul.f32 0.0, %v1972_v26  ;;  %v1981_v51 = vmul.f32 %v3365_v31, %v1980_v9 }
 0x662   :  { %v5154_v37 = vadd.f32 %v1995_v52, %v1994_v41  ;;  %v1982_v56 = vadd.f32 %v3365_v31, %v1981_v51 }
 0x664   :  { %3368 = vtanh.f32 %v5154_v37  ;;  %v1986_v17 = vsel %vm1985_vm3, %v3365_v31, %v1982_v56 }
 0x665   :  { %v1991_v30 = vsel %vm1988_vm4, %v1990_v28, %v1986_v17 }
 0x66a   :  { %v3369_v44 = vpop.eup %3368 }
 0x66b   :  { %v5157_v13 = vmul.f32 %v3369_v44, %v1991_v30 }
 0x66d   :  { %6298 = vst [vmem:[#allocation21_spill] sm:$0xff] %v5157_v13  ;;  %2016 = vmatmul.f32.vlgmr.msra.gmra.mxu0 %v5157_v13  ;;  %2036 = vmatmul.f32.vlgmr.msra.gmra.mxu1 %v5157_v13 }
 0x66e   :  { %2056 = vmatmul.f32.vlgmr.msra.gmra.mxu2 %v5157_v13  ;;  %2076 = vmatmul.f32.vlgmr.msra.gmra.mxu3 %v5157_v13  ;;  %v5367_v13 = vld [vmem:[#allocation8 + $0xb0] sm:$0xff] }
 0x66f   :  { %2298 = vmatpush.msra.mxu0 %v4795_v62  ;;  %2318 = vmatpush.msra.mxu1 %v4797_v23  ;;  %v6299_v62 = vld [vmem:[#allocation42_spill] sm:$0xff]  ;;  %v6300_v23 = vld [vmem:[#allocation49_spill] sm:$0xff]  ;;  %6335 = vst [vmem:[#allocation57_spill] sm:$0xff] %v5367_v13 }
 0x670   :  { %2338 = vmatpush.msra.mxu2 %v4799_v24  ;;  %2358 = vmatpush.msra.mxu3 %v4801_v2  ;;  %v6301_v24 = vld [vmem:[#allocation41_spill] sm:$0xff]  ;;  %v6302_v2 = vld [vmem:[#allocation11_spill] sm:$0xff] }
 0x671   :  { %2299 = vmatpush.msra.mxu0 %v4805_v1  ;;  %2319 = vmatpush.msra.mxu1 %v4807_v27  ;;  %v6303_v1 = vld [vmem:[#allocation44_spill] sm:$0xff] }
 0x672   :  { %2339 = vmatpush.msra.mxu2 %v4809_v42  ;;  %2359 = vmatpush.msra.mxu3 %v4813_v4  ;;  %v6304_v27 = vld [vmem:[#allocation52_spill] sm:$0xff]  ;;  %v6305_v42 = vld [vmem:[#allocation43_spill] sm:$0xff] }
 0x673   :  { %2300 = vmatpush.msra.mxu0 %v4817_v33  ;;  %2320 = vmatpush.msra.mxu1 %v4819_v5  ;;  %v6306_v4 = vld [vmem:[#allocation35_spill] sm:$0xff] }
 0x674   :  { %2340 = vmatpush.msra.mxu2 %v4821_v57  ;;  %2360 = vmatpush.msra.mxu3 %v4825_v15  ;;  %v6307_v33 = vld [vmem:[#allocation47_spill] sm:$0xff]  ;;  %v6309_v57 = vld [vmem:[#allocation45_spill] sm:$0xff] }
 0x675   :  { %2301 = vmatpush.msra.mxu0 %v4829_v63  ;;  %2321 = vmatpush.msra.mxu1 %v4831_v3  ;;  %v6308_v5 = vld [vmem:[#allocation55_spill] sm:$0xff]  ;;  %v6310_v15 = vld [vmem:[#allocation17_spill] sm:$0xff]  ;;  %v6311_v63 = vld [vmem:[#allocation14_spill] sm:$0xff] }
 0x676   :  { %2341 = vmatpush.msra.mxu2 %v4833_v22  ;;  %2361 = vmatpush.msra.mxu3 %v4837_v25  ;;  %v6312_v3 = vld [vmem:[#allocation29_spill] sm:$0xff]  ;;  %v6313_v22 = vld [vmem:[#allocation19_spill] sm:$0xff] }
 0x677   :  { %2302 = vmatpush.msra.mxu0 %v4841_v35  ;;  %2322 = vmatpush.msra.mxu1 %v4843_v58  ;;  %v6314_v25 = vld [vmem:[#allocation23_spill] sm:$0xff]  ;;  %v6315_v35 = vld [vmem:[#allocation12_spill] sm:$0xff] }
 0x678   :  { %2342 = vmatpush.msra.mxu2 %v4845_v39  ;;  %2362 = vmatpush.msra.mxu3 %v4849_v19  ;;  %v6316_v58 = vld [vmem:[#allocation16_spill] sm:$0xff]  ;;  %v6317_v39 = vld [vmem:[#allocation30_spill] sm:$0xff]  ;;  %v6318_v19 = vld [vmem:[#allocation33_spill] sm:$0xff] }
 0x679   :  { %2303 = vmatpush.msra.mxu0 %v4855_v6  ;;  %2323 = vmatpush.msra.mxu1 %v4857_v45  ;;  %v6319_v6 = vld [vmem:[#allocation22_spill] sm:$0xff]  ;;  %v6320_v45 = vld [vmem:[#allocation13_spill] sm:$0xff] }
 0x67a   :  { %2343 = vmatpush.msra.mxu2 %v4859_v38  ;;  %2363 = vmatpush.msra.mxu3 %v4863_v11  ;;  %v6321_v38 = vld [vmem:[#allocation20_spill] sm:$0xff]  ;;  %v6322_v11 = vld [vmem:[#allocation27_spill] sm:$0xff] }
 0x67b   :  { %2304 = vmatpush.msra.mxu0 %v4868_v29  ;;  %2324 = vmatpush.msra.mxu1 %v4870_v8  ;;  %v6323_v29 = vld [vmem:[#allocation18_spill] sm:$0xff]  ;;  %v6324_v8 = vld [vmem:[#allocation31_spill] sm:$0xff] }
 0x67c   :  { %2344 = vmatpush.msra.mxu2 %v4872_v54  ;;  %2364 = vmatpush.msra.mxu3 %v4876_v21 }
 0x67d   :  { %2305 = vmatpush.msra.mxu0 %v4880_v43  ;;  %2325 = vmatpush.msra.mxu1 %v4882_v48  ;;  %v6325_v43 = vld [vmem:[#allocation25_spill] sm:$0xff] }
 0x67e   :  { %2345 = vmatpush.msra.mxu2 %v4886_v36  ;;  %2365 = vmatpush.msra.mxu3 %v4888_v47  ;;  %v6326_v36 = vld [vmem:[#allocation24_spill] sm:$0xff] }
 0x67f   :  { %2306 = vmatpush.msra.mxu0 %v4890_v53  ;;  %2326 = vmatpush.msra.mxu1 %v4894_v0 }
 0x680   :  { %2346 = vmatpush.msra.mxu2 %v4896_v7  ;;  %2366 = vmatpush.msra.mxu3 %v4898_v59  ;;  %v6327_v59 = vld [vmem:[#allocation34_spill] sm:$0xff] }
 0x681   :  { %2307 = vmatpush.msra.mxu0 %v4902_v40  ;;  %2327 = vmatpush.msra.mxu1 %v4904_v50 }
 0x682   :  { %2347 = vmatpush.msra.mxu2 %v6299_v62  ;;  %2367 = vmatpush.msra.mxu3 %v6300_v23 }
 0x683   :  { %2308 = vmatpush.msra.mxu0 %v6301_v24  ;;  %2328 = vmatpush.msra.mxu1 %v6302_v2 }
 0x684   :  { %2348 = vmatpush.msra.mxu2 %v6303_v1  ;;  %2368 = vmatpush.msra.mxu3 %v6304_v27 }
 0x685   :  { %2309 = vmatpush.msra.mxu0 %v6305_v42  ;;  %2329 = vmatpush.msra.mxu1 %v6306_v4 }
 0x686   :  { %2349 = vmatpush.msra.mxu2 %v6307_v33  ;;  %2369 = vmatpush.msra.mxu3 %v6308_v5 }
 0x687   :  { %2310 = vmatpush.msra.mxu0 %v6309_v57  ;;  %2330 = vmatpush.msra.mxu1 %v6310_v15 }
 0x688   :  { %2350 = vmatpush.msra.mxu2 %v6311_v63  ;;  %2370 = vmatpush.msra.mxu3 %v6312_v3 }
 0x689   :  { %2311 = vmatpush.msra.mxu0 %v6313_v22  ;;  %2331 = vmatpush.msra.mxu1 %v6314_v25 }
 0x68a   :  { %2351 = vmatpush.msra.mxu2 %v6315_v35  ;;  %2371 = vmatpush.msra.mxu3 %v6316_v58 }
 0x68b   :  { %2312 = vmatpush.msra.mxu0 %v6317_v39  ;;  %2332 = vmatpush.msra.mxu1 %v6318_v19 }
 0x68c   :  { %2352 = vmatpush.msra.mxu2 %v6319_v6  ;;  %2372 = vmatpush.msra.mxu3 %v6320_v45 }
 0x68d   :  { %2313 = vmatpush.msra.mxu0 %v6321_v38  ;;  %2333 = vmatpush.msra.mxu1 %v6322_v11 }
 0x68e   :  { %2353 = vmatpush.msra.mxu2 %v6323_v29  ;;  %2373 = vmatpush.msra.mxu3 %v6324_v8 }
 0x6ea   :  { %v2017_v54 = vpop.f32.mrf.mxu0  ;;  %v2037_v21 = vpop.f32.mrf.mxu1 }
 0x6eb   :  { %v2080_v48 = vadd.f32 %v2017_v54, %v6325_v43  ;;  %v2081_v47 = vadd.f32 %v2037_v21, %v6326_v36 }
 0x6ed   :  { %v3196_v53 = vmul.f32 -1.442695, %v2080_v48  ;;  %v3197_v0 = vmul.f32 -1.442695, %v2081_v47 }
 0x6ef   :  { %3370 = vpow2.f32 %v3196_v53 }
 0x6f0   :  { %3372 = vpow2.f32 %v3197_v0 }
 0x6f1   :  { %v2077_v7 = vpop.f32.mrf.mxu3  ;;  %v2057_v10 = vpop.f32.mrf.mxu2 }
 0x6f2   :  { %v2083_v40 = vadd.f32 %v2077_v7, %v6327_v59  ;;  %v2082_v31 = vadd.f32 %v2057_v10, %v6328_v20  ;;  %v5250_v10 = vld [vmem:[#allocation8 + $0x1f8] sm:$0xff] }
 0x6f4   :  { %v3198_v50 = vmul.f32 -1.442695, %v2083_v40 }
 0x6f5   :  { %v3371_v51 = vpop.eup %3370 }
 0x6f6   :  { %v3373_v41 = vpop.eup %3372  ;;  %v2087_v52 = vadd.f32 1.0, %v3371_v51  ;;  %3374 = vpow2.f32 %v3198_v50 }
 0x6f7   :  { %v2106_v9 = vadd.f32 1.0, %v3373_v41 }
 0x6f8   :  { %3376 = vrcp.f32 %v2087_v52  ;;  %v2099_v16 = vand.u32 2147483648, %v2087_v52  ;;  %v2097_v49 = vand.u32 2147483647, %v2087_v52  ;;  %vm2093_vm7 = vweird.f32 %v2087_v52 }
 0x6f9   :  { %3378 = vrcp.f32 %v2106_v9  ;;  %v2118_v26 = vand.u32 2147483648, %v2106_v9  ;;  %v2116_v17 = vand.u32 2147483647, %v2106_v9  ;;  %vm2112_vm8 = vweird.f32 %v2106_v9 }
 0x6fa   :  { %v2100_v30 = vor.u32 1.1754944e-38, %v2099_v16  ;;  %vm2098_vm11 = vcmp.eq.f32.partialorder %v2097_v49, 8.507059e+37  ;;  %v5280_v16 = vld [vmem:[#allocation8 + $0x188] sm:$0xff]  ;;  %v5289_v49 = vld [vmem:[#allocation8 + $0x160] sm:$0xff] }
 0x6fb   :  { %v2119_v24 = vor.u32 1.1754944e-38, %v2118_v26  ;;  %vm2117_vm12 = vcmp.eq.f32.partialorder %v2116_v17, 8.507059e+37  ;;  %v5283_v26 = vld [vmem:[#allocation8 + $0x190] sm:$0xff] }
 0x6fc   :  { %v3375_v14 = vpop.eup %3374  ;;  %v5295_v17 = vld [vmem:[#allocation8 + $0x170] sm:$0xff] }
 0x6fd   :  { %v2125_v34 = vadd.f32 1.0, %v3375_v14  ;;  %v5253_v14 = vld [vmem:[#allocation8 + $0x1c0] sm:$0xff] }
 0x6fe   :  { %v3377_v61 = vpop.eup %3376 }
 0x6ff   :  { %v3379_v18 = vpop.eup %3378  ;;  %v2089_v12 = vmul.f32 %v3377_v61, %v2087_v52  ;;  %3380 = vrcp.f32 %v2125_v34  ;;  %vm2094_vm5 = vweird.f32 %v3377_v61  ;;  %v2137_v53 = vand.u32 2147483648, %v2125_v34  ;;  %v5244_v52 = vld [vmem:[#allocation8 + $0x1e8] sm:$0xff] }
 0x700   :  { %v2108_v55 = vmul.f32 %v3379_v18, %v2106_v9  ;;  %3382 = vtanh.f32 %v2082_v31  ;;  %vm2113_vm6 = vweird.f32 %v3379_v18  ;;  %vm2095_vm9 = vmor %vm2093_vm7, %vm2094_vm5  ;;  %vm2131_vm14 = vweird.f32 %v2125_v34  ;;  %v5247_v9 = vld [vmem:[#allocation8 + $0x1f0] sm:$0xff]  ;;  %v5262_v31 = vld [vmem:[#allocation8 + $0x1d8] sm:$0xff] }
 0x701   :  { %v2090_v46 = vsub.f32 1.0, %v2089_v12  ;;  %vm2114_vm10 = vmor %vm2112_vm8, %vm2113_vm6  ;;  %v2135_v0 = vand.u32 2147483647, %v2125_v34  ;;  %v2138_v40 = vor.u32 1.1754944e-38, %v2137_v53  ;;  %v5268_v12 = vld [vmem:[#allocation8 + $0x1a8] sm:$0xff]  ;;  %v5346_v53 = vld [vmem:[#allocation8 + $0xf8] sm:$0xff] }
 0x702   :  { %v2109_v32 = vsub.f32 1.0, %v2108_v55  ;;  %v5271_v55 = vld [vmem:[#allocation8 + $0x1b0] sm:$0xff] }
 0x703   :  { %v2091_v56 = vmul.f32 %v3377_v61, %v2090_v46  ;;  %vm2136_vm0 = vcmp.eq.f32.partialorder %v2135_v0, 8.507059e+37  ;;  %v5274_v46 = vld [vmem:[#allocation8 + $0x1b8] sm:$0xff]  ;;  %v5349_v0 = vld [vmem:[#allocation8 + $0xc0] sm:$0xff] }
 0x704   :  { %v2110_v60 = vmul.f32 %v3379_v18, %v2109_v32  ;;  %v5277_v32 = vld [vmem:[#allocation8 + $0x180] sm:$0xff] }
 0x705   :  { %v3381_v28 = vpop.eup %3380  ;;  %v2092_v44 = vadd.f32 %v3377_v61, %v2091_v56  ;;  %v5286_v56 = vld [vmem:[#allocation8 + $0x198] sm:$0xff] }
 0x706   :  { %v2111_v62 = vadd.f32 %v3379_v18, %v2110_v60  ;;  %v2127_v23 = vmul.f32 %v3381_v28, %v2125_v34  ;;  %v3383_v1 = vpop.eup %3382  ;;  %vm2132_vm13 = vweird.f32 %v3381_v28  ;;  %v5256_v34 = vld [vmem:[#allocation8 + $0x1c8] sm:$0xff] }
 0x707   :  { %v2096_v2 = vsel %vm2095_vm9, %v3377_v61, %v2092_v44  ;;  %vm2133_vm15 = vmor %vm2131_vm14, %vm2132_vm13  ;;  %v5259_v61 = vld [vmem:[#allocation8 + $0x1d0] sm:$0xff]  ;;  %v5292_v60 = vld [vmem:[#allocation8 + $0x168] sm:$0xff] }
 0x708   :  { %v2101_v27 = vsel %vm2098_vm11, %v2100_v30, %v2096_v2  ;;  %v2115_v42 = vsel %vm2114_vm10, %v3379_v18, %v2111_v62  ;;  %v2128_v4 = vsub.f32 1.0, %v2127_v23  ;;  %v5265_v18 = vld [vmem:[#allocation8 + $0x1a0] sm:$0xff]  ;;  %v5304_v30 = vld [vmem:[#allocation8 + $0x148] sm:$0xff]  ;;  %v5307_v62 = vld [vmem:[#allocation8 + $0x150] sm:$0xff] }
 0x709   :  { %v2120_v33 = vsel %vm2117_vm12, %v2119_v24, %v2115_v42  ;;  %v2143_v5 = vmul.f32 %v3383_v1, %v2101_v27  ;;  %v5301_v44 = vld [vmem:[#allocation8 + $0x140] sm:$0xff]  ;;  %v5310_v23 = vld [vmem:[#allocation8 + $0x158] sm:$0xff]  ;;  %v5316_v2 = vld [vmem:[#allocation8 + $0x128] sm:$0xff] }
 0x70a   :  { %v2142_v54 = vmul.f32 %v2120_v33, %v5154_v37  ;;  %v2129_v21 = vmul.f32 %v3381_v28, %v2128_v4  ;;  %v5241_v37 = vld [vmem:[#allocation8 + $0x1e0] sm:$0xff]  ;;  %v5319_v1 = vld [vmem:[#allocation8 + $0x130] sm:$0xff]  ;;  %v5322_v27 = vld [vmem:[#allocation8 + $0x138] sm:$0xff] }
 0x70b   :  { %v5313_v24 = vld [vmem:[#allocation8 + $0x120] sm:$0xff]  ;;  %v5328_v4 = vld [vmem:[#allocation8 + $0x108] sm:$0xff]  ;;  %v5331_v33 = vld [vmem:[#allocation8 + $0x110] sm:$0xff] }
 0x70c   :  { %v5232_v48 = vadd.f32 %v2143_v5, %v2142_v54  ;;  %v2130_v47 = vadd.f32 %v3381_v28, %v2129_v21  ;;  %v5325_v42 = vld [vmem:[#allocation8 + $0x100] sm:$0xff]  ;;  %v5334_v5 = vld [vmem:[#allocation8 + $0x118] sm:$0xff]  ;;  %v5340_v21 = vld [vmem:[#allocation8 + $0xe8] sm:$0xff] }
 0x70d   :  { %v5337_v54 = vld [vmem:[#allocation8 + $0xe0] sm:$0xff] }
 0x70e   :  { %3384 = vtanh.f32 %v5232_v48  ;;  %v2134_v7 = vsel %vm2133_vm15, %v3381_v28, %v2130_v47  ;;  %v5298_v28 = vld [vmem:[#allocation8 + $0x178] sm:$0xff]  ;;  %v5343_v47 = vld [vmem:[#allocation8 + $0xf0] sm:$0xff] }
 0x70f   :  { %v2139_v51 = vsel %vm2136_vm0, %v2138_v40, %v2134_v7  ;;  %v5352_v7 = vld [vmem:[#allocation8 + $0xc8] sm:$0xff]  ;;  %v5355_v40 = vld [vmem:[#allocation8 + $0xd0] sm:$0xff] }
 0x710   :  { %6330 = vst [vmem:[#allocation39_spill] sm:$0xff] %v5352_v7 }
 0x711   :  { %6331 = vst [vmem:[#allocation32_spill] sm:$0xff] %v5355_v40 }
 0x714   :  { %v3385_v50 = vpop.eup %3384 }
 0x715   :  { %v5235_v41 = vmul.f32 %v3385_v50, %v2139_v51  ;;  %v5358_v50 = vld [vmem:[#allocation8 + $0xd8] sm:$0xff]  ;;  %v5361_v51 = vld [vmem:[#allocation8 + $0xa0] sm:$0xff] }
 0x716   :  { %6332 = vst [vmem:[#allocation26_spill] sm:$0xff] %v5358_v50 }
 0x717   :  { %6329 = vst [vmem:[#allocation28_spill] sm:$0xff] %v5235_v41  ;;  %2165 = vmatmul.f32.vlgmr.msrb.gmra.mxu0 %v5235_v41  ;;  %2185 = vmatmul.f32.vlgmr.msrb.gmra.mxu1 %v5235_v41 }
 0x718   :  { %2205 = vmatmul.f32.vlgmr.msrb.gmra.mxu2 %v5235_v41  ;;  %2225 = vmatmul.f32.vlgmr.msrb.gmra.mxu3 %v5235_v41  ;;  %6333 = vst [vmem:[#allocation46_spill] sm:$0xff] %v5361_v51  ;;  %v5364_v41 = vld [vmem:[#allocation8 + $0xa8] sm:$0xff] }
 0x719   :  { %2447 = vmatpush.msrb.mxu0 %v5241_v37  ;;  %2467 = vmatpush.msrb.mxu1 %v5244_v52  ;;  %6334 = vst [vmem:[#allocation38_spill] sm:$0xff] %v5364_v41 }
 0x71a   :  { %2487 = vmatpush.msrb.mxu2 %v5247_v9  ;;  %2507 = vmatpush.msrb.mxu3 %v5250_v10 }
 0x71b   :  { %2448 = vmatpush.msrb.mxu0 %v5253_v14  ;;  %2468 = vmatpush.msrb.mxu1 %v5256_v34 }
 0x71c   :  { %2488 = vmatpush.msrb.mxu2 %v5259_v61  ;;  %2508 = vmatpush.msrb.mxu3 %v5262_v31 }
 0x71d   :  { %2449 = vmatpush.msrb.mxu0 %v5265_v18  ;;  %2469 = vmatpush.msrb.mxu1 %v5268_v12 }
 0x71e   :  { %2489 = vmatpush.msrb.mxu2 %v5271_v55  ;;  %2509 = vmatpush.msrb.mxu3 %v5274_v46 }
 0x71f   :  { %2450 = vmatpush.msrb.mxu0 %v5277_v32  ;;  %2470 = vmatpush.msrb.mxu1 %v5280_v16 }
 0x720   :  { %2490 = vmatpush.msrb.mxu2 %v5283_v26  ;;  %2510 = vmatpush.msrb.mxu3 %v5286_v56 }
 0x721   :  { %2451 = vmatpush.msrb.mxu0 %v5289_v49  ;;  %2471 = vmatpush.msrb.mxu1 %v5292_v60 }
 0x722   :  { %2491 = vmatpush.msrb.mxu2 %v5295_v17  ;;  %2511 = vmatpush.msrb.mxu3 %v5298_v28 }
 0x723   :  { %2452 = vmatpush.msrb.mxu0 %v5301_v44  ;;  %2472 = vmatpush.msrb.mxu1 %v5304_v30 }
 0x724   :  { %2492 = vmatpush.msrb.mxu2 %v5307_v62  ;;  %2512 = vmatpush.msrb.mxu3 %v5310_v23 }
 0x725   :  { %2453 = vmatpush.msrb.mxu0 %v5313_v24  ;;  %2473 = vmatpush.msrb.mxu1 %v5316_v2 }
 0x726   :  { %2493 = vmatpush.msrb.mxu2 %v5319_v1  ;;  %2513 = vmatpush.msrb.mxu3 %v5322_v27 }
 0x727   :  { %2454 = vmatpush.msrb.mxu0 %v5325_v42  ;;  %2474 = vmatpush.msrb.mxu1 %v5328_v4 }
 0x728   :  { %2494 = vmatpush.msrb.mxu2 %v5331_v33  ;;  %2514 = vmatpush.msrb.mxu3 %v5334_v5 }
 0x729   :  { %2455 = vmatpush.msrb.mxu0 %v5337_v54  ;;  %2475 = vmatpush.msrb.mxu1 %v5340_v21 }
 0x72a   :  { %2495 = vmatpush.msrb.mxu2 %v5343_v47  ;;  %2515 = vmatpush.msrb.mxu3 %v5346_v53 }
 0x72b   :  { %2456 = vmatpush.msrb.mxu0 %v5349_v0  ;;  %2476 = vmatpush.msrb.mxu1 %v5352_v7  ;;  %v5370_v7 = vld [vmem:[#allocation8 + $0xb8] sm:$0xff] }
 0x72c   :  { %2496 = vmatpush.msrb.mxu2 %v5355_v40  ;;  %2516 = vmatpush.msrb.mxu3 %v5358_v50  ;;  %6336 = vst [vmem:[#allocation36_spill] sm:$0xff] %v5370_v7  ;;  %v5373_v40 = vld [vmem:[#allocation8 + $0x80] sm:$0xff]  ;;  %v5376_v50 = vld [vmem:[#allocation8 + $0x88] sm:$0xff] }
 0x72d   :  { %2457 = vmatpush.msrb.mxu0 %v5361_v51  ;;  %2477 = vmatpush.msrb.mxu1 %v5364_v41  ;;  %6337 = vst [vmem:[#allocation50_spill] sm:$0xff] %v5373_v40  ;;  %v5379_v51 = vld [vmem:[#allocation8 + $0x90] sm:$0xff]  ;;  %v5382_v41 = vld [vmem:[#allocation8 + $0x98] sm:$0xff] }
 0x72e   :  { %2497 = vmatpush.msrb.mxu2 %v5367_v13  ;;  %2517 = vmatpush.msrb.mxu3 %v5370_v7  ;;  %6338 = vst [vmem:[#allocation58_spill] sm:$0xff] %v5376_v50 }
 0x72f   :  { %2458 = vmatpush.msrb.mxu0 %v5373_v40  ;;  %2478 = vmatpush.msrb.mxu1 %v5376_v50  ;;  %6339 = vst [vmem:[#allocation48_spill] sm:$0xff] %v5379_v51 }
 0x730   :  { %2498 = vmatpush.msrb.mxu2 %v5379_v51  ;;  %6340 = vst [vmem:[#allocation37_spill] sm:$0xff] %v5382_v41  ;;  %2518 = vmatpush.msrb.mxu3 %v5382_v41 }
 0x731   :  { %2459 = vmatpush.msrb.mxu0 %v6309_v57  ;;  %2479 = vmatpush.msrb.mxu1 %v6310_v15 }
 0x732   :  { %2499 = vmatpush.msrb.mxu2 %v6311_v63  ;;  %2519 = vmatpush.msrb.mxu3 %v6312_v3 }
 0x733   :  { %2460 = vmatpush.msrb.mxu0 %v6313_v22  ;;  %2480 = vmatpush.msrb.mxu1 %v6314_v25 }
 0x734   :  { %2500 = vmatpush.msrb.mxu2 %v6315_v35  ;;  %2520 = vmatpush.msrb.mxu3 %v6316_v58 }
 0x735   :  { %2461 = vmatpush.msrb.mxu0 %v6317_v39  ;;  %2481 = vmatpush.msrb.mxu1 %v6318_v19 }
 0x736   :  { %2501 = vmatpush.msrb.mxu2 %v6319_v6  ;;  %2521 = vmatpush.msrb.mxu3 %v6320_v45 }
 0x737   :  { %2462 = vmatpush.msrb.mxu0 %v6321_v38  ;;  %2482 = vmatpush.msrb.mxu1 %v6322_v11 }
 0x738   :  { %2502 = vmatpush.msrb.mxu2 %v6323_v29  ;;  %2522 = vmatpush.msrb.mxu3 %v6324_v8 }
 0x794   :  { %v2166_v57 = vpop.f32.mrf.mxu0  ;;  %v2186_v15 = vpop.f32.mrf.mxu1 }
 0x795   :  { %v2229_v63 = vadd.f32 %v2166_v57, %v6325_v43  ;;  %v2230_v3 = vadd.f32 %v2186_v15, %v6326_v36 }
 0x797   :  { %v3199_v22 = vmul.f32 -1.442695, %v2229_v63  ;;  %v3200_v25 = vmul.f32 -1.442695, %v2230_v3 }
 0x799   :  { %3386 = vpow2.f32 %v3199_v22 }
 0x79a   :  { %3388 = vpow2.f32 %v3200_v25 }
 0x79b   :  { %v2226_v35 = vpop.f32.mrf.mxu3  ;;  %v2206_v11 = vpop.f32.mrf.mxu2 }
 0x79c   :  { %v2232_v58 = vadd.f32 %v2226_v35, %v6327_v59  ;;  %v2231_v15 = vadd.f32 %v2206_v11, %v6328_v20 }
 0x79e   :  { %v3201_v39 = vmul.f32 -1.442695, %v2232_v58 }
 0x79f   :  { %v3387_v19 = vpop.eup %3386 }
 0x7a0   :  { %v3389_v6 = vpop.eup %3388  ;;  %v2236_v45 = vadd.f32 1.0, %v3387_v19  ;;  %3390 = vpow2.f32 %v3201_v39 }
 0x7a1   :  { %v2255_v38 = vadd.f32 1.0, %v3389_v6 }
 0x7a2   :  { %3392 = vrcp.f32 %v2236_v45  ;;  %v2248_v58 = vand.u32 2147483648, %v2236_v45  ;;  %v2246_v39 = vand.u32 2147483647, %v2236_v45  ;;  %vm2242_vm4 = vweird.f32 %v2236_v45 }
 0x7a3   :  { %3394 = vrcp.f32 %v2255_v38  ;;  %v2267_v59 = vand.u32 2147483648, %v2255_v38  ;;  %v2265_v36 = vand.u32 2147483647, %v2255_v38  ;;  %vm2261_vm5 = vweird.f32 %v2255_v38 }
 0x7a4   :  { %v2249_v11 = vor.u32 1.1754944e-38, %v2248_v58  ;;  %vm2247_vm8 = vcmp.eq.f32.partialorder %v2246_v39, 8.507059e+37 }
 0x7a5   :  { %vm2266_vm9 = vcmp.eq.f32.partialorder %v2265_v36, 8.507059e+37 }
 0x7a6   :  { %v3391_v29 = vpop.eup %3390 }
 0x7a7   :  { %v2274_v8 = vadd.f32 1.0, %v3391_v29 }
 0x7a8   :  { %v3393_v57 = vpop.eup %3392 }
 0x7a9   :  { %v3395_v63 = vpop.eup %3394  ;;  %v2238_v3 = vmul.f32 %v3393_v57, %v2236_v45  ;;  %3396 = vrcp.f32 %v2274_v8  ;;  %vm2243_vm2 = vweird.f32 %v3393_v57  ;;  %v2286_v58 = vand.u32 2147483648, %v2274_v8 }
 0x7aa   :  { %v2257_v22 = vmul.f32 %v3395_v63, %v2255_v38  ;;  %3398 = vtanh.f32 %v2231_v15  ;;  %vm2262_vm3 = vweird.f32 %v3395_v63  ;;  %vm2244_vm6 = vmor %vm2242_vm4, %vm2243_vm2  ;;  %vm2280_vm11 = vweird.f32 %v2274_v8 }
 0x7ab   :  { %v2239_v25 = vsub.f32 1.0, %v2238_v3  ;;  %vm2263_vm7 = vmor %vm2261_vm5, %vm2262_vm3  ;;  %v2268_v3 = vor.u32 1.1754944e-38, %v2267_v59  ;;  %v2284_v59 = vand.u32 2147483647, %v2274_v8  ;;  %v2287_v39 = vor.u32 1.1754944e-38, %v2286_v58  ;;  %v5487_v58 = vld [vmem:[#allocation8 + $0x20] sm:$0xff] }
 0x7ac   :  { %v2258_v35 = vsub.f32 1.0, %v2257_v22  ;;  %6360 = vst [vmem:[#allocation41_spill] sm:$0xff] %v5487_v58 }
 0x7ad   :  { %v2240_v19 = vmul.f32 %v3393_v57, %v2239_v25  ;;  %vm2285_vm13 = vcmp.eq.f32.partialorder %v2284_v59, 8.507059e+37  ;;  %v5490_v59 = vld [vmem:[#allocation8 + $0x28] sm:$0xff] }
 0x7ae   :  { %v2259_v6 = vmul.f32 %v3395_v63, %v2258_v35  ;;  %6361 = vst [vmem:[#allocation11_spill] sm:$0xff] %v5490_v59 }
 0x7af   :  { %v3397_v43 = vpop.eup %3396  ;;  %v2241_v29 = vadd.f32 %v3393_v57, %v2240_v19 }
 0x7b0   :  { %v2260_v20 = vadd.f32 %v3395_v63, %v2259_v6  ;;  %v2276_v41 = vmul.f32 %v3397_v43, %v2274_v8  ;;  %v3399_v15 = vpop.eup %3398  ;;  %vm2281_vm10 = vweird.f32 %v3397_v43  ;;  %v6348_v8 = vld [vmem:[#allocation50_spill] sm:$0xff]  ;;  %v6350_v6 = vld [vmem:[#allocation48_spill] sm:$0xff] }
 0x7b1   :  { %v2245_v22 = vsel %vm2244_vm6, %v3393_v57, %v2241_v29  ;;  %vm2282_vm12 = vmor %vm2280_vm11, %vm2281_vm10  ;;  %v6351_v29 = vld [vmem:[#allocation37_spill] sm:$0xff] }
 0x7b2   :  { %v2250_v51 = vsel %vm2247_vm8, %v2249_v11, %v2245_v22  ;;  %v2264_v25 = vsel %vm2263_vm7, %v3395_v63, %v2260_v20  ;;  %v2277_v50 = vsub.f32 1.0, %v2276_v41  ;;  %v6349_v63 = vld [vmem:[#allocation58_spill] sm:$0xff]  ;;  %v5463_v11 = vld [vmem:[#allocation8 + $0x60] sm:$0xff]  ;;  %v5469_v22 = vld [vmem:[#allocation8 + $0x70] sm:$0xff] }
 0x7b3   :  { %v2269_v35 = vsel %vm2266_vm9, %v2268_v3, %v2264_v25  ;;  %v2292_v40 = vmul.f32 %v3399_v15, %v2250_v51  ;;  %v6347_v51 = vld [vmem:[#allocation36_spill] sm:$0xff]  ;;  %6352 = vst [vmem:[#allocation59_spill] sm:$0xff] %v5463_v11  ;;  %v5472_v15 = vld [vmem:[#allocation8 + $0x78] sm:$0xff]  ;;  %v5475_v25 = vld [vmem:[#allocation8 + $0x40] sm:$0xff] }
 0x7b4   :  { %v2291_v7 = vmul.f32 %v2269_v35, %v5232_v48  ;;  %v2278_v19 = vmul.f32 %v3397_v43, %v2277_v50  ;;  %v6343_v48 = vld [vmem:[#allocation32_spill] sm:$0xff]  ;;  %v6346_v50 = vld [vmem:[#allocation38_spill] sm:$0xff]  ;;  %6354 = vst [vmem:[#allocation40_spill] sm:$0xff] %v5469_v22 }
 0x7b5   :  { %v5466_v3 = vld [vmem:[#allocation8 + $0x68] sm:$0xff]  ;;  %6355 = vst [vmem:[#allocation56_spill] sm:$0xff] %v5472_v15 }
 0x7b6   :  { %v5406_v45 = vadd.f32 %v2292_v40, %v2291_v7  ;;  %v2279_v38 = vadd.f32 %v3397_v43, %v2278_v19  ;;  %v6344_v7 = vld [vmem:[#allocation26_spill] sm:$0xff]  ;;  %6353 = vst [vmem:[#allocation51_spill] sm:$0xff] %v5466_v3  ;;  %v5478_v35 = vld [vmem:[#allocation8 + $0x48] sm:$0xff]  ;;  %v5481_v19 = vld [vmem:[#allocation8 + $0x50] sm:$0xff] }
 0x7b7   :  { %v6345_v40 = vld [vmem:[#allocation46_spill] sm:$0xff]  ;;  %6356 = vst [vmem:[#allocation60_spill] sm:$0xff] %v5475_v25 }
 0x7b8   :  { %3400 = vtanh.f32 %v5406_v45  ;;  %v2283_v57 = vsel %vm2282_vm12, %v3397_v43, %v2279_v38  ;;  %v6342_v43 = vld [vmem:[#allocation39_spill] sm:$0xff]  ;;  %6357 = vst [vmem:[#allocation54_spill] sm:$0xff] %v5478_v35  ;;  %v5484_v38 = vld [vmem:[#allocation8 + $0x58] sm:$0xff] }
 0x7b9   :  { %v2288_v20 = vsel %vm2285_vm13, %v2287_v39, %v2283_v57  ;;  %6358 = vst [vmem:[#allocation42_spill] sm:$0xff] %v5481_v19  ;;  %v5493_v57 = vld [vmem:[#allocation8 + $0x30] sm:$0xff]  ;;  %v5496_v39 = vld [vmem:[#allocation8 + $0x38] sm:$0xff] }
 0x7ba   :  { %6359 = vst [vmem:[#allocation49_spill] sm:$0xff] %v5484_v38 }
 0x7bb   :  { %6362 = vst [vmem:[#allocation44_spill] sm:$0xff] %v5493_v57 }
 0x7bc   :  { %6363 = vst [vmem:[#allocation52_spill] sm:$0xff] %v5496_v39 }
 0x7be   :  { %v3401_v36 = vpop.eup %3400 }
 0x7bf   :  { %v5409_v41 = vmul.f32 %v3401_v36, %v2288_v20  ;;  %v5499_v36 = vld [vmem:[#allocation8] sm:$0xff]  ;;  %v5502_v20 = vld [vmem:[#allocation8 + $0x8] sm:$0xff] }
 0x7c0   :  { %6364 = vst [vmem:[#allocation43_spill] sm:$0xff] %v5499_v36 }
 0x7c1   :  { %6341 = vst [vmem:[#allocation53_spill] sm:$0xff] %v5409_v41  ;;  %2314 = vmatmul.f32.vlgmr.msra.gmra.mxu0 %v5409_v41  ;;  %2334 = vmatmul.f32.vlgmr.msra.gmra.mxu1 %v5409_v41 }
 0x7c2   :  { %2354 = vmatmul.f32.vlgmr.msra.gmra.mxu2 %v5409_v41  ;;  %2374 = vmatmul.f32.vlgmr.msra.gmra.mxu3 %v5409_v41  ;;  %6365 = vst [vmem:[#allocation35_spill] sm:$0xff] %v5502_v20  ;;  %v5505_v41 = vld [vmem:[#allocation8 + $0x10] sm:$0xff] }
 0x7c3   :  { %2596 = vmatpush.msra.mxu0 %v5241_v37  ;;  %2616 = vmatpush.msra.mxu1 %v5244_v52  ;;  %6366 = vst [vmem:[#allocation47_spill] sm:$0xff] %v5505_v41 }
 0x7c4   :  { %2636 = vmatpush.msra.mxu2 %v5247_v9  ;;  %2656 = vmatpush.msra.mxu3 %v5250_v10 }
 0x7c5   :  { %2597 = vmatpush.msra.mxu0 %v5253_v14  ;;  %2617 = vmatpush.msra.mxu1 %v5256_v34 }
 0x7c6   :  { %2637 = vmatpush.msra.mxu2 %v5259_v61  ;;  %2657 = vmatpush.msra.mxu3 %v5262_v31 }
 0x7c7   :  { %2598 = vmatpush.msra.mxu0 %v5265_v18  ;;  %2618 = vmatpush.msra.mxu1 %v5268_v12 }
 0x7c8   :  { %2638 = vmatpush.msra.mxu2 %v5271_v55  ;;  %2658 = vmatpush.msra.mxu3 %v5274_v46 }
 0x7c9   :  { %2599 = vmatpush.msra.mxu0 %v5277_v32  ;;  %2619 = vmatpush.msra.mxu1 %v5280_v16 }
 0x7ca   :  { %2639 = vmatpush.msra.mxu2 %v5283_v26  ;;  %2659 = vmatpush.msra.mxu3 %v5286_v56 }
 0x7cb   :  { %2600 = vmatpush.msra.mxu0 %v5289_v49  ;;  %2620 = vmatpush.msra.mxu1 %v5292_v60 }
 0x7cc   :  { %2640 = vmatpush.msra.mxu2 %v5295_v17  ;;  %2660 = vmatpush.msra.mxu3 %v5298_v28 }
 0x7cd   :  { %2601 = vmatpush.msra.mxu0 %v5301_v44  ;;  %2621 = vmatpush.msra.mxu1 %v5304_v30 }
 0x7ce   :  { %2641 = vmatpush.msra.mxu2 %v5307_v62  ;;  %2661 = vmatpush.msra.mxu3 %v5310_v23 }
 0x7cf   :  { %2602 = vmatpush.msra.mxu0 %v5313_v24  ;;  %2622 = vmatpush.msra.mxu1 %v5316_v2 }
 0x7d0   :  { %2642 = vmatpush.msra.mxu2 %v5319_v1  ;;  %2662 = vmatpush.msra.mxu3 %v5322_v27 }
 0x7d1   :  { %2603 = vmatpush.msra.mxu0 %v5325_v42  ;;  %2623 = vmatpush.msra.mxu1 %v5328_v4 }
 0x7d2   :  { %2643 = vmatpush.msra.mxu2 %v5331_v33  ;;  %2663 = vmatpush.msra.mxu3 %v5334_v5 }
 0x7d3   :  { %2604 = vmatpush.msra.mxu0 %v5337_v54  ;;  %2624 = vmatpush.msra.mxu1 %v5340_v21 }
 0x7d4   :  { %2644 = vmatpush.msra.mxu2 %v5343_v47  ;;  %2664 = vmatpush.msra.mxu3 %v5346_v53 }
 0x7d5   :  { %2605 = vmatpush.msra.mxu0 %v5349_v0  ;;  %2625 = vmatpush.msra.mxu1 %v6342_v43 }
 0x7d6   :  { %2645 = vmatpush.msra.mxu2 %v6343_v48  ;;  %2665 = vmatpush.msra.mxu3 %v6344_v7 }
 0x7d7   :  { %2606 = vmatpush.msra.mxu0 %v6345_v40  ;;  %2626 = vmatpush.msra.mxu1 %v6346_v50 }
 0x7d8   :  { %2646 = vmatpush.msra.mxu2 %v5367_v13  ;;  %2666 = vmatpush.msra.mxu3 %v6347_v51 }
 0x7d9   :  { %2607 = vmatpush.msra.mxu0 %v6348_v8  ;;  %2627 = vmatpush.msra.mxu1 %v6349_v63 }
 0x7da   :  { %2647 = vmatpush.msra.mxu2 %v6350_v6  ;;  %2667 = vmatpush.msra.mxu3 %v6351_v29 }
 0x7db   :  { %2608 = vmatpush.msra.mxu0 %v5463_v11  ;;  %2628 = vmatpush.msra.mxu1 %v5466_v3 }
 0x7dc   :  { %2648 = vmatpush.msra.mxu2 %v5469_v22  ;;  %2668 = vmatpush.msra.mxu3 %v5472_v15 }
 0x7dd   :  { %2609 = vmatpush.msra.mxu0 %v5475_v25  ;;  %2629 = vmatpush.msra.mxu1 %v5478_v35 }
 0x7de   :  { %2649 = vmatpush.msra.mxu2 %v5481_v19  ;;  %2669 = vmatpush.msra.mxu3 %v5484_v38  ;;  %v6368_v38 = vld [vmem:[#allocation25_spill] sm:$0xff]  ;;  %v6369_v19 = vld [vmem:[#allocation24_spill] sm:$0xff] }
 0x7df   :  { %2610 = vmatpush.msra.mxu0 %v5487_v58  ;;  %2630 = vmatpush.msra.mxu1 %v5490_v59  ;;  %v5508_v59 = vld [vmem:[#allocation8 + $0x18] sm:$0xff] }
 0x7e0   :  { %2650 = vmatpush.msra.mxu2 %v5493_v57  ;;  %2670 = vmatpush.msra.mxu3 %v5496_v39  ;;  %6367 = vst [vmem:[#allocation55_spill] sm:$0xff] %v5508_v59 }
 0x7e1   :  { %2611 = vmatpush.msra.mxu0 %v5499_v36  ;;  %2631 = vmatpush.msra.mxu1 %v5502_v20  ;;  %v6370_v20 = vld [vmem:[#allocation34_spill] sm:$0xff] }
 0x7e2   :  { %2651 = vmatpush.msra.mxu2 %v5505_v41  ;;  %2671 = vmatpush.msra.mxu3 %v5508_v59 }
 0x83e   :  { %v2315_v57 = vpop.f32.mrf.mxu0  ;;  %v2335_v58 = vpop.f32.mrf.mxu1 }
 0x83f   :  { %v2378_v39 = vadd.f32 %v2315_v57, %v6368_v38  ;;  %v2379_v35 = vadd.f32 %v2335_v58, %v6369_v19  ;;  %v6371_v58 = vld [vmem:[#allocation15_spill] sm:$0xff] }
 0x841   :  { %v3202_v25 = vmul.f32 -1.442695, %v2378_v39  ;;  %v3203_v36 = vmul.f32 -1.442695, %v2379_v35 }
 0x843   :  { %3402 = vpow2.f32 %v3202_v25 }
 0x844   :  { %3404 = vpow2.f32 %v3203_v36 }
 0x845   :  { %v2375_v15 = vpop.f32.mrf.mxu3  ;;  %v2355_v59 = vpop.f32.mrf.mxu2 }
 0x846   :  { %v2381_v22 = vadd.f32 %v2375_v15, %v6370_v20  ;;  %v2380_v39 = vadd.f32 %v2355_v59, %v6371_v58 }
 0x848   :  { %v3204_v3 = vmul.f32 -1.442695, %v2381_v22 }
 0x849   :  { %v3403_v11 = vpop.eup %3402 }
 0x84a   :  { %v3405_v41 = vpop.eup %3404  ;;  %v2385_v29 = vadd.f32 1.0, %v3403_v11  ;;  %3406 = vpow2.f32 %v3204_v3 }
 0x84b   :  { %v2404_v6 = vadd.f32 1.0, %v3405_v41 }
 0x84c   :  { %3408 = vrcp.f32 %v2385_v29  ;;  %v2397_v22 = vand.u32 2147483648, %v2385_v29  ;;  %v2395_v41 = vand.u32 2147483647, %v2385_v29  ;;  %vm2391_vm0 = vweird.f32 %v2385_v29 }
 0x84d   :  { %3410 = vrcp.f32 %v2404_v6  ;;  %v2416_v20 = vand.u32 2147483648, %v2404_v6  ;;  %v2414_v8 = vand.u32 2147483647, %v2404_v6  ;;  %vm2410_vm2 = vweird.f32 %v2404_v6 }
 0x84e   :  { %v2398_v59 = vor.u32 1.1754944e-38, %v2397_v22  ;;  %vm2396_vm5 = vcmp.eq.f32.partialorder %v2395_v41, 8.507059e+37 }
 0x84f   :  { %vm2415_vm6 = vcmp.eq.f32.partialorder %v2414_v8, 8.507059e+37 }
 0x850   :  { %v3407_v63 = vpop.eup %3406 }
 0x851   :  { %v2423_v57 = vadd.f32 1.0, %v3407_v63 }
 0x852   :  { %v3409_v38 = vpop.eup %3408 }
 0x853   :  { %v3411_v35 = vpop.eup %3410  ;;  %v2387_v25 = vmul.f32 %v3409_v38, %v2385_v29  ;;  %3412 = vrcp.f32 %v2423_v57  ;;  %vm2392_vm14 = vweird.f32 %v3409_v38  ;;  %v2435_v22 = vand.u32 2147483648, %v2423_v57 }
 0x854   :  { %v2406_v36 = vmul.f32 %v3411_v35, %v2404_v6  ;;  %3414 = vtanh.f32 %v2380_v39  ;;  %vm2411_vm15 = vweird.f32 %v3411_v35  ;;  %vm2393_vm3 = vmor %vm2391_vm0, %vm2392_vm14  ;;  %vm2429_vm8 = vweird.f32 %v2423_v57 }
 0x855   :  { %v2388_v19 = vsub.f32 1.0, %v2387_v25  ;;  %vm2412_vm4 = vmor %vm2410_vm2, %vm2411_vm15  ;;  %v2417_v25 = vor.u32 1.1754944e-38, %v2416_v20  ;;  %v2436_v41 = vor.u32 1.1754944e-38, %v2435_v22  ;;  %v6391_v22 = vld [vmem:[#allocation41_spill] sm:$0xff] }
 0x856   :  { %v2407_v15 = vsub.f32 1.0, %v2406_v36 }
 0x857   :  { %v2389_v11 = vmul.f32 %v3409_v38, %v2388_v19 }
 0x858   :  { %v2408_v3 = vmul.f32 %v3411_v35, %v2407_v15 }
 0x859   :  { %v3413_v51 = vpop.eup %3412  ;;  %v2390_v63 = vadd.f32 %v3409_v38, %v2389_v11 }
 0x85a   :  { %v2409_v58 = vadd.f32 %v3411_v35, %v2408_v3  ;;  %v2425_v13 = vmul.f32 %v3413_v51, %v2423_v57  ;;  %v3415_v39 = vpop.eup %3414  ;;  %vm2430_vm7 = vweird.f32 %v3413_v51  ;;  %v6381_v3 = vld [vmem:[#allocation48_spill] sm:$0xff] }
 0x85b   :  { %v2394_v36 = vsel %vm2393_vm3, %v3409_v38, %v2390_v63  ;;  %v2433_v38 = vand.u32 2147483647, %v2423_v57  ;;  %vm2431_vm9 = vmor %vm2429_vm8, %vm2430_vm7  ;;  %v6379_v57 = vld [vmem:[#allocation50_spill] sm:$0xff]  ;;  %v6382_v63 = vld [vmem:[#allocation37_spill] sm:$0xff] }
 0x85c   :  { %v2399_v50 = vsel %vm2396_vm5, %v2398_v59, %v2394_v36  ;;  %v2413_v19 = vsel %vm2412_vm4, %v3411_v35, %v2409_v58  ;;  %v2426_v40 = vsub.f32 1.0, %v2425_v13  ;;  %v6380_v35 = vld [vmem:[#allocation58_spill] sm:$0xff]  ;;  %v6383_v59 = vld [vmem:[#allocation59_spill] sm:$0xff]  ;;  %v6385_v36 = vld [vmem:[#allocation40_spill] sm:$0xff] }
 0x85d   :  { %v2418_v15 = vsel %vm2415_vm6, %v2417_v25, %v2413_v19  ;;  %v2441_v7 = vmul.f32 %v3415_v39, %v2399_v50  ;;  %vm2434_vm10 = vcmp.eq.f32.partialorder %v2433_v38, 8.507059e+37  ;;  %v6377_v50 = vld [vmem:[#allocation57_spill] sm:$0xff]  ;;  %v6384_v25 = vld [vmem:[#allocation51_spill] sm:$0xff]  ;;  %v6386_v39 = vld [vmem:[#allocation56_spill] sm:$0xff] }
 0x85e   :  { %v2440_v48 = vmul.f32 %v2418_v15, %v5406_v45  ;;  %v2427_v11 = vmul.f32 %v3413_v51, %v2426_v40  ;;  %v6373_v45 = vld [vmem:[#allocation32_spill] sm:$0xff]  ;;  %v6376_v40 = vld [vmem:[#allocation38_spill] sm:$0xff]  ;;  %v6392_v38 = vld [vmem:[#allocation11_spill] sm:$0xff] }
 0x85f   :  { %v6387_v19 = vld [vmem:[#allocation60_spill] sm:$0xff]  ;;  %v6388_v15 = vld [vmem:[#allocation54_spill] sm:$0xff] }
 0x860   :  { %v5516_v29 = vadd.f32 %v2441_v7, %v2440_v48  ;;  %v2428_v6 = vadd.f32 %v3413_v51, %v2427_v11  ;;  %v6374_v48 = vld [vmem:[#allocation26_spill] sm:$0xff] }
 0x861   :  { %v6375_v7 = vld [vmem:[#allocation46_spill] sm:$0xff] }
 0x862   :  { %3416 = vtanh.f32 %v5516_v29  ;;  %v2432_v20 = vsel %vm2431_vm9, %v3413_v51, %v2428_v6  ;;  %v6378_v51 = vld [vmem:[#allocation36_spill] sm:$0xff]  ;;  %v6389_v11 = vld [vmem:[#allocation42_spill] sm:$0xff]  ;;  %v6390_v6 = vld [vmem:[#allocation49_spill] sm:$0xff] }
 0x863   :  { %v2437_v13 = vsel %vm2434_vm10, %v2436_v41, %v2432_v20  ;;  %v6393_v20 = vld [vmem:[#allocation44_spill] sm:$0xff] }
 0x864   :  { %v6394_v41 = vld [vmem:[#allocation52_spill] sm:$0xff] }
 0x868   :  { %v3417_v8 = vpop.eup %3416 }
 0x869   :  { %v5519_v58 = vmul.f32 %v3417_v8, %v2437_v13  ;;  %v6395_v8 = vld [vmem:[#allocation43_spill] sm:$0xff] }
 0x86a   :  { %v6396_v13 = vld [vmem:[#allocation35_spill] sm:$0xff] }
 0x86b   :  { %6372 = vst [vmem:[#allocation45_spill] sm:$0xff] %v5519_v58  ;;  %2463 = vmatmul.f32.vlgmr.msrb.gmra.mxu0 %v5519_v58  ;;  %2483 = vmatmul.f32.vlgmr.msrb.gmra.mxu1 %v5519_v58 }
 0x86c   :  { %2503 = vmatmul.f32.vlgmr.msrb.gmra.mxu2 %v5519_v58  ;;  %2523 = vmatmul.f32.vlgmr.msrb.gmra.mxu3 %v5519_v58  ;;  %v6397_v58 = vld [vmem:[#allocation47_spill] sm:$0xff] }
 0x86d   :  { %2745 = vmatpush.msrb.mxu0 %v5241_v37  ;;  %2765 = vmatpush.msrb.mxu1 %v5244_v52 }
 0x86e   :  { %2785 = vmatpush.msrb.mxu2 %v5247_v9  ;;  %2805 = vmatpush.msrb.mxu3 %v5250_v10 }
 0x86f   :  { %2746 = vmatpush.msrb.mxu0 %v5253_v14  ;;  %2766 = vmatpush.msrb.mxu1 %v5256_v34 }
 0x870   :  { %2786 = vmatpush.msrb.mxu2 %v5259_v61  ;;  %2806 = vmatpush.msrb.mxu3 %v5262_v31 }
 0x871   :  { %2747 = vmatpush.msrb.mxu0 %v5265_v18  ;;  %2767 = vmatpush.msrb.mxu1 %v5268_v12 }
 0x872   :  { %2787 = vmatpush.msrb.mxu2 %v5271_v55  ;;  %2807 = vmatpush.msrb.mxu3 %v5274_v46 }
 0x873   :  { %2748 = vmatpush.msrb.mxu0 %v5277_v32  ;;  %2768 = vmatpush.msrb.mxu1 %v5280_v16 }
 0x874   :  { %2788 = vmatpush.msrb.mxu2 %v5283_v26  ;;  %2808 = vmatpush.msrb.mxu3 %v5286_v56 }
 0x875   :  { %2749 = vmatpush.msrb.mxu0 %v5289_v49  ;;  %2769 = vmatpush.msrb.mxu1 %v5292_v60 }
 0x876   :  { %2789 = vmatpush.msrb.mxu2 %v5295_v17  ;;  %2809 = vmatpush.msrb.mxu3 %v5298_v28 }
 0x877   :  { %2750 = vmatpush.msrb.mxu0 %v5301_v44  ;;  %2770 = vmatpush.msrb.mxu1 %v5304_v30 }
 0x878   :  { %2790 = vmatpush.msrb.mxu2 %v5307_v62  ;;  %2810 = vmatpush.msrb.mxu3 %v5310_v23 }
 0x879   :  { %2751 = vmatpush.msrb.mxu0 %v5313_v24  ;;  %2771 = vmatpush.msrb.mxu1 %v5316_v2 }
 0x87a   :  { %2791 = vmatpush.msrb.mxu2 %v5319_v1  ;;  %2811 = vmatpush.msrb.mxu3 %v5322_v27 }
 0x87b   :  { %2752 = vmatpush.msrb.mxu0 %v5325_v42  ;;  %2772 = vmatpush.msrb.mxu1 %v5328_v4 }
 0x87c   :  { %2792 = vmatpush.msrb.mxu2 %v5331_v33  ;;  %2812 = vmatpush.msrb.mxu3 %v5334_v5 }
 0x87d   :  { %2753 = vmatpush.msrb.mxu0 %v5337_v54  ;;  %2773 = vmatpush.msrb.mxu1 %v5340_v21 }
 0x87e   :  { %2793 = vmatpush.msrb.mxu2 %v5343_v47  ;;  %2813 = vmatpush.msrb.mxu3 %v5346_v53 }
 0x87f   :  { %2754 = vmatpush.msrb.mxu0 %v5349_v0  ;;  %2774 = vmatpush.msrb.mxu1 %v6342_v43 }
 0x880   :  { %2794 = vmatpush.msrb.mxu2 %v6373_v45  ;;  %2814 = vmatpush.msrb.mxu3 %v6374_v48 }
 0x881   :  { %2755 = vmatpush.msrb.mxu0 %v6375_v7  ;;  %2775 = vmatpush.msrb.mxu1 %v6376_v40 }
 0x882   :  { %2795 = vmatpush.msrb.mxu2 %v6377_v50  ;;  %2815 = vmatpush.msrb.mxu3 %v6378_v51 }
 0x883   :  { %2756 = vmatpush.msrb.mxu0 %v6379_v57  ;;  %2776 = vmatpush.msrb.mxu1 %v6380_v35 }
 0x884   :  { %2796 = vmatpush.msrb.mxu2 %v6381_v3  ;;  %2816 = vmatpush.msrb.mxu3 %v6382_v63 }
 0x885   :  { %2757 = vmatpush.msrb.mxu0 %v6383_v59  ;;  %2777 = vmatpush.msrb.mxu1 %v6384_v25 }
 0x886   :  { %2797 = vmatpush.msrb.mxu2 %v6385_v36  ;;  %2817 = vmatpush.msrb.mxu3 %v6386_v39  ;;  %v6399_v39 = vld [vmem:[#allocation25_spill] sm:$0xff]  ;;  %v6400_v36 = vld [vmem:[#allocation24_spill] sm:$0xff] }
 0x887   :  { %2758 = vmatpush.msrb.mxu0 %v6387_v19  ;;  %2778 = vmatpush.msrb.mxu1 %v6388_v15  ;;  %v6398_v19 = vld [vmem:[#allocation55_spill] sm:$0xff] }
 0x888   :  { %2798 = vmatpush.msrb.mxu2 %v6389_v11  ;;  %2818 = vmatpush.msrb.mxu3 %v6390_v6 }
 0x889   :  { %2759 = vmatpush.msrb.mxu0 %v6391_v22  ;;  %2779 = vmatpush.msrb.mxu1 %v6392_v38 }
 0x88a   :  { %2799 = vmatpush.msrb.mxu2 %v6393_v20  ;;  %2819 = vmatpush.msrb.mxu3 %v6394_v41  ;;  %v6401_v41 = vld [vmem:[#allocation34_spill] sm:$0xff] }
 0x88b   :  { %2760 = vmatpush.msrb.mxu0 %v6395_v8  ;;  %2780 = vmatpush.msrb.mxu1 %v6396_v13 }
 0x88c   :  { %2800 = vmatpush.msrb.mxu2 %v6397_v58  ;;  %2820 = vmatpush.msrb.mxu3 %v6398_v19 }
 0x8e8   :  { %v2464_v15 = vpop.f32.mrf.mxu0  ;;  %v2484_v11 = vpop.f32.mrf.mxu1 }
 0x8e9   :  { %v2527_v6 = vadd.f32 %v2464_v15, %v6399_v39  ;;  %v2528_v22 = vadd.f32 %v2484_v11, %v6400_v36  ;;  %v6402_v11 = vld [vmem:[#allocation15_spill] sm:$0xff] }
 0x8eb   :  { %v3205_v25 = vmul.f32 -1.442695, %v2527_v6  ;;  %v3206_v38 = vmul.f32 -1.442695, %v2528_v22 }
 0x8ed   :  { %3418 = vpow2.f32 %v3205_v25 }
 0x8ee   :  { %3420 = vpow2.f32 %v3206_v38 }
 0x8ef   :  { %v2524_v20 = vpop.f32.mrf.mxu3  ;;  %v2504_v19 = vpop.f32.mrf.mxu2 }
 0x8f0   :  { %v2530_v59 = vadd.f32 %v2524_v20, %v6401_v41  ;;  %v2529_v6 = vadd.f32 %v2504_v19, %v6402_v11 }
 0x8f2   :  { %v3207_v8 = vmul.f32 -1.442695, %v2530_v59 }
 0x8f3   :  { %v3419_v63 = vpop.eup %3418 }
 0x8f4   :  { %v3421_v13 = vpop.eup %3420  ;;  %v2534_v3 = vadd.f32 1.0, %v3419_v63  ;;  %3422 = vpow2.f32 %v3207_v8 }
 0x8f5   :  { %v2553_v58 = vadd.f32 1.0, %v3421_v13 }
 0x8f6   :  { %3424 = vrcp.f32 %v2534_v3  ;;  %v2546_v59 = vand.u32 2147483648, %v2534_v3  ;;  %v2544_v8 = vand.u32 2147483647, %v2534_v3  ;;  %vm2540_vm13 = vweird.f32 %v2534_v3 }
 0x8f7   :  { %3426 = vrcp.f32 %v2553_v58  ;;  %v2565_v41 = vand.u32 2147483648, %v2553_v58  ;;  %v2563_v57 = vand.u32 2147483647, %v2553_v58  ;;  %vm2559_vm14 = vweird.f32 %v2553_v58 }
 0x8f8   :  { %v2547_v19 = vor.u32 1.1754944e-38, %v2546_v59  ;;  %vm2545_vm2 = vcmp.eq.f32.partialorder %v2544_v8, 8.507059e+37 }
 0x8f9   :  { %vm2564_vm3 = vcmp.eq.f32.partialorder %v2563_v57, 8.507059e+37 }
 0x8fa   :  { %v3423_v35 = vpop.eup %3422 }
 0x8fb   :  { %v2572_v15 = vadd.f32 1.0, %v3423_v35 }
 0x8fc   :  { %v3425_v39 = vpop.eup %3424 }
 0x8fd   :  { %v3427_v22 = vpop.eup %3426  ;;  %v2536_v25 = vmul.f32 %v3425_v39, %v2534_v3  ;;  %3428 = vrcp.f32 %v2572_v15  ;;  %vm2541_vm11 = vweird.f32 %v3425_v39  ;;  %v2584_v59 = vand.u32 2147483648, %v2572_v15 }
 0x8fe   :  { %v2555_v38 = vmul.f32 %v3427_v22, %v2553_v58  ;;  %3430 = vtanh.f32 %v2529_v6  ;;  %vm2560_vm12 = vweird.f32 %v3427_v22  ;;  %vm2542_vm15 = vmor %vm2540_vm13, %vm2541_vm11  ;;  %vm2578_vm5 = vweird.f32 %v2572_v15 }
 0x8ff   :  { %v2537_v36 = vsub.f32 1.0, %v2536_v25  ;;  %vm2561_vm0 = vmor %vm2559_vm14, %vm2560_vm12  ;;  %v2566_v25 = vor.u32 1.1754944e-38, %v2565_v41  ;;  %v2585_v8 = vor.u32 1.1754944e-38, %v2584_v59 }
 0x900   :  { %v2556_v20 = vsub.f32 1.0, %v2555_v38 }
 0x901   :  { %v2538_v63 = vmul.f32 %v3425_v39, %v2537_v36 }
 0x902   :  { %v2557_v13 = vmul.f32 %v3427_v22, %v2556_v20 }
 0x903   :  { %v3429_v51 = vpop.eup %3428  ;;  %v2539_v35 = vadd.f32 %v3425_v39, %v2538_v63 }
 0x904   :  { %v2558_v11 = vadd.f32 %v3427_v22, %v2557_v13  ;;  %v2574_v50 = vmul.f32 %v3429_v51, %v2572_v15  ;;  %v3431_v6 = vpop.eup %3430  ;;  %vm2579_vm4 = vweird.f32 %v3429_v51  ;;  %v6432_v13 = vld [vmem:[#allocation15_spill] sm:$0xff] }
 0x905   :  { %v2543_v38 = vsel %vm2542_vm15, %v3425_v39, %v2539_v35  ;;  %v2582_v39 = vand.u32 2147483647, %v2572_v15  ;;  %vm2580_vm6 = vmor %vm2578_vm5, %vm2579_vm4 }
 0x906   :  { %v2548_v40 = vsel %vm2545_vm2, %v2547_v19, %v2543_v38  ;;  %v2562_v36 = vsel %vm2561_vm0, %v3427_v22, %v2558_v11  ;;  %v2575_v7 = vsub.f32 1.0, %v2574_v50 }
 0x907   :  { %v2567_v20 = vsel %vm2564_vm3, %v2566_v25, %v2562_v36  ;;  %v2590_v48 = vmul.f32 %v3431_v6, %v2548_v40  ;;  %vm2583_vm7 = vcmp.eq.f32.partialorder %v2582_v39, 8.507059e+37 }
 0x908   :  { %v2589_v45 = vmul.f32 %v2567_v20, %v5516_v29  ;;  %v2576_v63 = vmul.f32 %v3429_v51, %v2575_v7 }
 0x90a   :  { %v5594_v3 = vadd.f32 %v2590_v48, %v2589_v45  ;;  %v2577_v58 = vadd.f32 %v3429_v51, %v2576_v63 }
 0x90c   :  { %3432 = vtanh.f32 %v5594_v3  ;;  %v2581_v41 = vsel %vm2580_vm6, %v3429_v51, %v2577_v58 }
 0x90d   :  { %v2586_v50 = vsel %vm2583_vm7, %v2585_v8, %v2581_v41 }
 0x912   :  { %v3433_v57 = vpop.eup %3432 }
 0x913   :  { %v5597_v11 = vmul.f32 %v3433_v57, %v2586_v50 }
 0x915   :  { %2612 = vmatmul.f32.vlgmr.msra.gmra.mxu0 %v5597_v11  ;;  %2632 = vmatmul.f32.vlgmr.msra.gmra.mxu1 %v5597_v11 }
 0x916   :  { %2652 = vmatmul.f32.vlgmr.msra.gmra.mxu2 %v5597_v11  ;;  %2672 = vmatmul.f32.vlgmr.msra.gmra.mxu3 %v5597_v11 }
 0x917   :  { %2894 = vmatpush.msra.mxu0 %v5241_v37  ;;  %2914 = vmatpush.msra.mxu1 %v5244_v52  ;;  %v6403_v37 = vld [vmem:[#allocation32_spill] sm:$0xff]  ;;  %v6404_v52 = vld [vmem:[#allocation26_spill] sm:$0xff] }
 0x918   :  { %2934 = vmatpush.msra.mxu2 %v5247_v9  ;;  %2954 = vmatpush.msra.mxu3 %v5250_v10  ;;  %v6405_v9 = vld [vmem:[#allocation46_spill] sm:$0xff] }
 0x919   :  { %2895 = vmatpush.msra.mxu0 %v5253_v14  ;;  %2915 = vmatpush.msra.mxu1 %v5256_v34  ;;  %v6406_v10 = vld [vmem:[#allocation38_spill] sm:$0xff]  ;;  %v6407_v14 = vld [vmem:[#allocation57_spill] sm:$0xff]  ;;  %v6408_v34 = vld [vmem:[#allocation36_spill] sm:$0xff] }
 0x91a   :  { %2935 = vmatpush.msra.mxu2 %v5259_v61  ;;  %2955 = vmatpush.msra.mxu3 %v5262_v31  ;;  %v6409_v61 = vld [vmem:[#allocation50_spill] sm:$0xff] }
 0x91b   :  { %2896 = vmatpush.msra.mxu0 %v5265_v18  ;;  %2916 = vmatpush.msra.mxu1 %v5268_v12  ;;  %v6410_v31 = vld [vmem:[#allocation58_spill] sm:$0xff]  ;;  %v6411_v18 = vld [vmem:[#allocation48_spill] sm:$0xff]  ;;  %v6412_v12 = vld [vmem:[#allocation37_spill] sm:$0xff] }
 0x91c   :  { %2936 = vmatpush.msra.mxu2 %v5271_v55  ;;  %2956 = vmatpush.msra.mxu3 %v5274_v46  ;;  %v6413_v55 = vld [vmem:[#allocation59_spill] sm:$0xff] }
 0x91d   :  { %2897 = vmatpush.msra.mxu0 %v5277_v32  ;;  %2917 = vmatpush.msra.mxu1 %v5280_v16  ;;  %v6414_v46 = vld [vmem:[#allocation51_spill] sm:$0xff]  ;;  %v6415_v32 = vld [vmem:[#allocation40_spill] sm:$0xff] }
 0x91e   :  { %2937 = vmatpush.msra.mxu2 %v5283_v26  ;;  %2957 = vmatpush.msra.mxu3 %v5286_v56  ;;  %v6416_v16 = vld [vmem:[#allocation56_spill] sm:$0xff]  ;;  %v6418_v56 = vld [vmem:[#allocation54_spill] sm:$0xff] }
 0x91f   :  { %2898 = vmatpush.msra.mxu0 %v5289_v49  ;;  %2918 = vmatpush.msra.mxu1 %v5292_v60  ;;  %v6417_v26 = vld [vmem:[#allocation60_spill] sm:$0xff]  ;;  %v6419_v49 = vld [vmem:[#allocation42_spill] sm:$0xff]  ;;  %v6420_v60 = vld [vmem:[#allocation49_spill] sm:$0xff] }
 0x920   :  { %2938 = vmatpush.msra.mxu2 %v5295_v17  ;;  %2958 = vmatpush.msra.mxu3 %v5298_v28  ;;  %v6421_v17 = vld [vmem:[#allocation41_spill] sm:$0xff]  ;;  %v6422_v28 = vld [vmem:[#allocation11_spill] sm:$0xff] }
 0x921   :  { %2899 = vmatpush.msra.mxu0 %v5301_v44  ;;  %2919 = vmatpush.msra.mxu1 %v5304_v30  ;;  %v6423_v44 = vld [vmem:[#allocation44_spill] sm:$0xff] }
 0x922   :  { %2939 = vmatpush.msra.mxu2 %v5307_v62  ;;  %2959 = vmatpush.msra.mxu3 %v5310_v23  ;;  %v6424_v30 = vld [vmem:[#allocation52_spill] sm:$0xff]  ;;  %v6425_v62 = vld [vmem:[#allocation43_spill] sm:$0xff] }
 0x923   :  { %2900 = vmatpush.msra.mxu0 %v5313_v24  ;;  %2920 = vmatpush.msra.mxu1 %v5316_v2  ;;  %v6426_v23 = vld [vmem:[#allocation35_spill] sm:$0xff] }
 0x924   :  { %2940 = vmatpush.msra.mxu2 %v5319_v1  ;;  %2960 = vmatpush.msra.mxu3 %v5322_v27  ;;  %v6427_v24 = vld [vmem:[#allocation47_spill] sm:$0xff] }
 0x925   :  { %2901 = vmatpush.msra.mxu0 %v5325_v42  ;;  %2921 = vmatpush.msra.mxu1 %v5328_v4  ;;  %v6428_v2 = vld [vmem:[#allocation55_spill] sm:$0xff]  ;;  %v6429_v42 = vld [vmem:[#allocation25_spill] sm:$0xff] }
 0x926   :  { %2941 = vmatpush.msra.mxu2 %v5331_v33  ;;  %2961 = vmatpush.msra.mxu3 %v5334_v5  ;;  %v6430_v33 = vld [vmem:[#allocation24_spill] sm:$0xff] }
 0x927   :  { %2902 = vmatpush.msra.mxu0 %v5337_v54  ;;  %2922 = vmatpush.msra.mxu1 %v5340_v21 }
 0x928   :  { %2942 = vmatpush.msra.mxu2 %v5343_v47  ;;  %2962 = vmatpush.msra.mxu3 %v5346_v53  ;;  %v6431_v53 = vld [vmem:[#allocation34_spill] sm:$0xff] }
 0x929   :  { %2903 = vmatpush.msra.mxu0 %v5349_v0  ;;  %2923 = vmatpush.msra.mxu1 %v6342_v43 }
 0x92a   :  { %2943 = vmatpush.msra.mxu2 %v6403_v37  ;;  %2963 = vmatpush.msra.mxu3 %v6404_v52 }
 0x92b   :  { %2904 = vmatpush.msra.mxu0 %v6405_v9  ;;  %2924 = vmatpush.msra.mxu1 %v6406_v10 }
 0x92c   :  { %2944 = vmatpush.msra.mxu2 %v6407_v14  ;;  %2964 = vmatpush.msra.mxu3 %v6408_v34 }
 0x92d   :  { %2905 = vmatpush.msra.mxu0 %v6409_v61  ;;  %2925 = vmatpush.msra.mxu1 %v6410_v31 }
 0x92e   :  { %2945 = vmatpush.msra.mxu2 %v6411_v18  ;;  %2965 = vmatpush.msra.mxu3 %v6412_v12 }
 0x92f   :  { %2906 = vmatpush.msra.mxu0 %v6413_v55  ;;  %2926 = vmatpush.msra.mxu1 %v6414_v46 }
 0x930   :  { %2946 = vmatpush.msra.mxu2 %v6415_v32  ;;  %2966 = vmatpush.msra.mxu3 %v6416_v16 }
 0x931   :  { %2907 = vmatpush.msra.mxu0 %v6417_v26  ;;  %2927 = vmatpush.msra.mxu1 %v6418_v56 }
 0x932   :  { %2947 = vmatpush.msra.mxu2 %v6419_v49  ;;  %2967 = vmatpush.msra.mxu3 %v6420_v60 }
 0x933   :  { %2908 = vmatpush.msra.mxu0 %v6421_v17  ;;  %2928 = vmatpush.msra.mxu1 %v6422_v28 }
 0x934   :  { %2948 = vmatpush.msra.mxu2 %v6423_v44  ;;  %2968 = vmatpush.msra.mxu3 %v6424_v30  ;;  %v3065_v30 = vld [vmem:[%s5800_s7 + $0x70] sm:$0xff] }
 0x935   :  { %2909 = vmatpush.msra.mxu0 %v6425_v62  ;;  %2929 = vmatpush.msra.mxu1 %v6426_v23  ;;  %v3064_v62 = vld [vmem:[%s5800_s7 + $0x68] sm:$0xff]  ;;  %v3063_v23 = vld [vmem:[%s5800_s7 + $0x60] sm:$0xff] }
 0x936   :  { %2949 = vmatpush.msra.mxu2 %v6427_v24  ;;  %2969 = vmatpush.msra.mxu3 %v6428_v2  ;;  %v3062_v24 = vld [vmem:[%s5800_s7 + $0x58] sm:$0xff] }
 0x992   :  { %v2613_v1 = vpop.f32.mrf.mxu0  ;;  %v2633_v27 = vpop.f32.mrf.mxu1 }
 0x993   :  { %v2676_v4 = vadd.f32 %v2613_v1, %v6429_v42  ;;  %v2677_v5 = vadd.f32 %v2633_v27, %v6430_v33  ;;  %v3061_v27 = vld [vmem:[%s5800_s7 + $0x50] sm:$0xff] }
 0x995   :  { %v3208_v54 = vmul.f32 -1.442695, %v2676_v4  ;;  %v3209_v21 = vmul.f32 -1.442695, %v2677_v5 }
 0x997   :  { %3434 = vpow2.f32 %v3208_v54  ;;  %v3060_v54 = vld [vmem:[%s5800_s7 + $0x48] sm:$0xff] }
 0x998   :  { %3436 = vpow2.f32 %v3209_v21 }
 0x999   :  { %v2673_v47 = vpop.f32.mrf.mxu3  ;;  %v2653_v40 = vpop.f32.mrf.mxu2 }
 0x99a   :  { %v2679_v0 = vadd.f32 %v2673_v47, %v6431_v53  ;;  %v2678_v35 = vadd.f32 %v2653_v40, %v6432_v13 }
 0x99c   :  { %v3210_v43 = vmul.f32 -1.442695, %v2679_v0  ;;  %v3059_v0 = vld [vmem:[%s5800_s7 + $0x40] sm:$0xff] }
 0x99d   :  { %v3435_v29 = vpop.eup %3434 }
 0x99e   :  { %v3437_v45 = vpop.eup %3436  ;;  %v2683_v48 = vadd.f32 1.0, %v3435_v29  ;;  %3438 = vpow2.f32 %v3210_v43  ;;  %v3058_v43 = vld [vmem:[%s5800_s7 + $0x38] sm:$0xff]  ;;  %v3057_v29 = vld [vmem:[%s5800_s7 + $0x30] sm:$0xff] }
 0x99f   :  { %v2702_v7 = vadd.f32 1.0, %v3437_v45 }
 0x9a0   :  { %3440 = vrcp.f32 %v2683_v48  ;;  %v2695_v20 = vand.u32 2147483648, %v2683_v48  ;;  %v2693_v59 = vand.u32 2147483647, %v2683_v48  ;;  %vm2689_vm10 = vweird.f32 %v2683_v48 }
 0x9a1   :  { %3442 = vrcp.f32 %v2702_v7  ;;  %v2714_v63 = vand.u32 2147483648, %v2702_v7  ;;  %v2712_v41 = vand.u32 2147483647, %v2702_v7  ;;  %vm2708_vm11 = vweird.f32 %v2702_v7 }
 0x9a2   :  { %v2696_v50 = vor.u32 1.1754944e-38, %v2695_v20  ;;  %vm2694_vm14 = vcmp.eq.f32.partialorder %v2693_v59, 8.507059e+37 }
 0x9a3   :  { %v2715_v9 = vor.u32 1.1754944e-38, %v2714_v63  ;;  %vm2713_vm15 = vcmp.eq.f32.partialorder %v2712_v41, 8.507059e+37  ;;  %v3051_v63 = vld [vmem:[%s5800_s7] sm:$0xff] }
 0x9a4   :  { %v3439_v51 = vpop.eup %3438 }
 0x9a5   :  { %v2721_v15 = vadd.f32 1.0, %v3439_v51  ;;  %v3055_v51 = vld [vmem:[%s5800_s7 + $0x20] sm:$0xff] }
 0x9a6   :  { %v3441_v22 = vpop.eup %3440 }
 0x9a7   :  { %v3443_v19 = vpop.eup %3442  ;;  %v2685_v25 = vmul.f32 %v3441_v22, %v2683_v48  ;;  %3444 = vrcp.f32 %v2721_v15  ;;  %vm2690_vm8 = vweird.f32 %v3441_v22  ;;  %v2733_v26 = vand.u32 2147483648, %v2721_v15 }
 0x9a8   :  { %v2704_v38 = vmul.f32 %v3443_v19, %v2702_v7  ;;  %3446 = vtanh.f32 %v2678_v35  ;;  %vm2709_vm9 = vweird.f32 %v3443_v19  ;;  %vm2691_vm12 = vmor %vm2689_vm10, %vm2690_vm8  ;;  %vm2727_vm2 = vweird.f32 %v2721_v15  ;;  %v3056_v7 = vld [vmem:[%s5800_s7 + $0x28] sm:$0xff] }
 0x9a9   :  { %v2686_v6 = vsub.f32 1.0, %v2685_v25  ;;  %vm2710_vm13 = vmor %vm2708_vm11, %vm2709_vm9  ;;  %v2731_v56 = vand.u32 2147483647, %v2721_v15  ;;  %v2734_v60 = vor.u32 1.1754944e-38, %v2733_v26  ;;  %v3054_v25 = vld [vmem:[%s5800_s7 + $0x18] sm:$0xff] }
 0x9aa   :  { %v2705_v36 = vsub.f32 1.0, %v2704_v38  ;;  %v3053_v38 = vld [vmem:[%s5800_s7 + $0x10] sm:$0xff] }
 0x9ab   :  { %v2687_v58 = vmul.f32 %v3441_v22, %v2686_v6  ;;  %vm2732_vm4 = vcmp.eq.f32.partialorder %v2731_v56, 8.507059e+37  ;;  %v3052_v6 = vld [vmem:[%s5800_s7 + $0x8] sm:$0xff] }
 0x9ac   :  { %v2706_v39 = vmul.f32 %v3443_v19, %v2705_v36 }
 0x9ad   :  { %v3445_v8 = vpop.eup %3444  ;;  %v2688_v57 = vadd.f32 %v3441_v22, %v2687_v58 }
 0x9ae   :  { %v2707_v37 = vadd.f32 %v3443_v19, %v2706_v39  ;;  %v2723_v52 = vmul.f32 %v3445_v8, %v2721_v15  ;;  %v3447_v14 = vpop.eup %3446  ;;  %vm2728_vm0 = vweird.f32 %v3445_v8 }
 0x9af   :  { %v2692_v10 = vsel %vm2691_vm12, %v3441_v22, %v2688_v57  ;;  %vm2729_vm3 = vmor %vm2727_vm2, %vm2728_vm0 }
 0x9b0   :  { %v2697_v34 = vsel %vm2694_vm14, %v2696_v50, %v2692_v10  ;;  %v2711_v61 = vsel %vm2710_vm13, %v3443_v19, %v2707_v37  ;;  %v2724_v31 = vsub.f32 1.0, %v2723_v52 }
 0x9b1   :  { %v2716_v18 = vsel %vm2713_vm15, %v2715_v9, %v2711_v61  ;;  %v2739_v12 = vmul.f32 %v3447_v14, %v2697_v34 }
 0x9b2   :  { %v2738_v55 = vmul.f32 %v2716_v18, %v5594_v3  ;;  %v2725_v46 = vmul.f32 %v3445_v8, %v2724_v31  ;;  %v3066_v3 = vld [vmem:[%s5800_s7 + $0x78] sm:$0xff] }
 0x9b4   :  { %v5672_v32 = vadd.f32 %v2739_v12, %v2738_v55  ;;  %v2726_v16 = vadd.f32 %v3445_v8, %v2725_v46 }
 0x9b6   :  { %3448 = vtanh.f32 %v5672_v32  ;;  %v2730_v49 = vsel %vm2729_vm3, %v3445_v8, %v2726_v16 }
 0x9b7   :  { %v2735_v28 = vsel %vm2732_vm4, %v2734_v60, %v2730_v49 }
 0x9bc   :  { %v3449_v17 = vpop.eup %3448 }
 0x9bd   :  { %v5675_v44 = vmul.f32 %v3449_v17, %v2735_v28 }
 0x9bf   :  { %2761 = vmatmul.f32.vlgmr.msrb.gmra.mxu0 %v5675_v44  ;;  %2781 = vmatmul.f32.vlgmr.msrb.gmra.mxu1 %v5675_v44 }
 0x9c0   :  { %2801 = vmatmul.f32.vlgmr.msrb.gmra.mxu2 %v5675_v44  ;;  %2821 = vmatmul.f32.vlgmr.msrb.gmra.mxu3 %v5675_v44 }
 0x9c1   :  { %3071 = vmatpush.msrb.mxu0 %v3066_v3 }
 0x9c3   :  { %3072 = vmatpush.msrb.mxu0 %v3065_v30 }
 0x9c5   :  { %3073 = vmatpush.msrb.mxu0 %v3064_v62 }
 0x9c7   :  { %3074 = vmatpush.msrb.mxu0 %v3063_v23 }
 0x9c9   :  { %3075 = vmatpush.msrb.mxu0 %v3062_v24 }
 0x9cb   :  { %3076 = vmatpush.msrb.mxu0 %v3061_v27 }
 0x9cd   :  { %3077 = vmatpush.msrb.mxu0 %v3060_v54 }
 0x9cf   :  { %3078 = vmatpush.msrb.mxu0 %v3059_v0  ;;  %v6435_v0 = vld [vmem:[#allocation53_spill] sm:$0xff] }
 0x9d1   :  { %3079 = vmatpush.msrb.mxu0 %v3058_v43  ;;  %v6436_v43 = vld [vmem:[#allocation45_spill] sm:$0xff] }
 0x9d3   :  { %3080 = vmatpush.msrb.mxu0 %v3057_v29 }
 0x9d5   :  { %3081 = vmatpush.msrb.mxu0 %v3056_v7 }
 0x9d7   :  { %3082 = vmatpush.msrb.mxu0 %v3055_v51 }
 0x9d9   :  { %3083 = vmatpush.msrb.mxu0 %v3054_v25 }
 0x9db   :  { %3084 = vmatpush.msrb.mxu0 %v3053_v38 }
 0x9dd   :  { %3085 = vmatpush.msrb.mxu0 %v3052_v6 }
 0x9df   :  { %3086 = vmatpush.msrb.mxu0 %v3051_v63 }
 0xa3c   :  { %v2762_v2 = vpop.f32.mrf.mxu0  ;;  %v2782_v1 = vpop.f32.mrf.mxu1 }
 0xa3d   :  { %v2825_v4 = vadd.f32 %v2762_v2, %v6429_v42  ;;  %v2826_v5 = vadd.f32 %v2782_v1, %v6430_v33 }
 0xa3f   :  { %v3211_v21 = vmul.f32 -1.442695, %v2825_v4  ;;  %v3212_v47 = vmul.f32 -1.442695, %v2826_v5 }
 0xa41   :  { %3450 = vpow2.f32 %v3211_v21 }
 0xa42   :  { %3452 = vpow2.f32 %v3212_v47  ;;  %v6434_v47 = vld [vmem:[#allocation28_spill] sm:$0xff] }
 0xa43   :  { %v2822_v45 = vpop.f32.mrf.mxu3  ;;  %v2802_v36 = vpop.f32.mrf.mxu2 }
 0xa44   :  { %v2828_v48 = vadd.f32 %v2822_v45, %v6431_v53  ;;  %v2827_v39 = vadd.f32 %v2802_v36, %v6432_v13 }
 0xa46   :  { %v3213_v40 = vmul.f32 -1.442695, %v2828_v48 }
 0xa47   :  { %v3451_v15 = vpop.eup %3450 }
 0xa48   :  { %v3453_v22 = vpop.eup %3452  ;;  %v2832_v35 = vadd.f32 1.0, %v3451_v15  ;;  %3454 = vpow2.f32 %v3213_v40  ;;  %v5748_v15 = vld [vmem:[%s5801_s8] ss:$0 sm:$0xff] }
 0xa49   :  { %v2851_v19 = vadd.f32 1.0, %v3453_v22 }
 0xa4a   :  { %3456 = vrcp.f32 %v2832_v35  ;;  %v2844_v52 = vand.u32 2147483648, %v2832_v35  ;;  %v2842_v14 = vand.u32 2147483647, %v2832_v35  ;;  %vm2838_vm7 = vweird.f32 %v2832_v35 }
 0xa4b   :  { %3458 = vrcp.f32 %v2851_v19  ;;  %v2863_v9 = vand.u32 2147483648, %v2851_v19  ;;  %v2861_v61 = vand.u32 2147483647, %v2851_v19  ;;  %vm2857_vm8 = vweird.f32 %v2851_v19 }
 0xa4c   :  { %v2845_v12 = vor.u32 1.1754944e-38, %v2844_v52  ;;  %vm2843_vm11 = vcmp.eq.f32.partialorder %v2842_v14, 8.507059e+37 }
 0xa4d   :  { %v2864_v16 = vor.u32 1.1754944e-38, %v2863_v9  ;;  %vm2862_vm12 = vcmp.eq.f32.partialorder %v2861_v61, 8.507059e+37 }
 0xa4e   :  { %v3455_v20 = vpop.eup %3454 }
 0xa4f   :  { %v2870_v58 = vadd.f32 1.0, %v3455_v20 }
 0xa50   :  { %v3457_v59 = vpop.eup %3456 }
 0xa51   :  { %v3459_v41 = vpop.eup %3458  ;;  %v2834_v8 = vmul.f32 %v3457_v59, %v2832_v35  ;;  %3460 = vrcp.f32 %v2870_v58  ;;  %vm2839_vm5 = vweird.f32 %v3457_v59  ;;  %v2882_v2 = vand.u32 2147483648, %v2870_v58 }
 0xa52   :  { %v2853_v57 = vmul.f32 %v3459_v41, %v2851_v19  ;;  %3462 = vtanh.f32 %v2827_v39  ;;  %vm2858_vm6 = vweird.f32 %v3459_v41  ;;  %vm2840_vm9 = vmor %vm2838_vm7, %vm2839_vm5  ;;  %vm2876_vm14 = vweird.f32 %v2870_v58 }
 0xa53   :  { %v2835_v50 = vsub.f32 1.0, %v2834_v8  ;;  %vm2859_vm10 = vmor %vm2857_vm8, %vm2858_vm6  ;;  %v2880_v1 = vand.u32 2147483647, %v2870_v58  ;;  %v2883_v4 = vor.u32 1.1754944e-38, %v2882_v2 }
 0xa54   :  { %v2854_v37 = vsub.f32 1.0, %v2853_v57 }
 0xa55   :  { %v2836_v10 = vmul.f32 %v3457_v59, %v2835_v50  ;;  %vm2881_vm0 = vcmp.eq.f32.partialorder %v2880_v1, 8.507059e+37 }
 0xa56   :  { %v2855_v34 = vmul.f32 %v3459_v41, %v2854_v37 }
 0xa57   :  { %v3461_v31 = vpop.eup %3460  ;;  %v2837_v18 = vadd.f32 %v3457_v59, %v2836_v10 }
 0xa58   :  { %v2856_v55 = vadd.f32 %v3459_v41, %v2855_v34  ;;  %v2872_v46 = vmul.f32 %v3461_v31, %v2870_v58  ;;  %v3463_v56 = vpop.eup %3462  ;;  %vm2877_vm13 = vweird.f32 %v3461_v31 }
 0xa59   :  { %v2841_v26 = vsel %vm2840_vm9, %v3457_v59, %v2837_v18  ;;  %vm2878_vm15 = vmor %vm2876_vm14, %vm2877_vm13 }
 0xa5a   :  { %v2846_v49 = vsel %vm2843_vm11, %v2845_v12, %v2841_v26  ;;  %v2860_v60 = vsel %vm2859_vm10, %v3459_v41, %v2856_v55  ;;  %v2873_v17 = vsub.f32 1.0, %v2872_v46 }
 0xa5b   :  { %v2865_v28 = vsel %vm2862_vm12, %v2864_v16, %v2860_v60  ;;  %v2888_v3 = vmul.f32 %v3463_v56, %v2846_v49 }
 0xa5c   :  { %v2887_v30 = vmul.f32 %v2865_v28, %v5672_v32  ;;  %v2874_v62 = vmul.f32 %v3461_v31, %v2873_v17  ;;  %v6433_v32 = vld [vmem:[#allocation21_spill] sm:$0xff] }
 0xa5e   :  { %v5734_v23 = vadd.f32 %v2888_v3, %v2887_v30  ;;  %v2875_v24 = vadd.f32 %v3461_v31, %v2874_v62 }
 0xa60   :  { %3464 = vtanh.f32 %v5734_v23  ;;  %v2879_v27 = vsel %vm2878_vm15, %v3461_v31, %v2875_v24 }
 0xa61   :  { %v2884_v54 = vsel %vm2881_vm0, %v2883_v4, %v2879_v27 }
 0xa66   :  { %v3465_v5 = vpop.eup %3464 }
 0xa67   :  { %v2891_v21 = vmul.f32 %v3465_v5, %v2884_v54 }
 0xa69   :  { %2910 = vmatmul.f32.vlgmr.msra.gmra.mxu0 %v2891_v21  ;;  %2930 = vmatmul.f32.vlgmr.msra.gmra.mxu1 %v2891_v21 }
 0xa6a   :  { %2950 = vmatmul.f32.vlgmr.msra.gmra.mxu2 %v2891_v21  ;;  %2970 = vmatmul.f32.vlgmr.msra.gmra.mxu3 %v2891_v21 }
 0xa71   :  { %3087 = vmatmul.f32.vlgmr.msrb.gmra.mxu0 %v6433_v32 }
 0xa79   :  { %3090 = vmatmul.f32.gmra.mxu0 %v6434_v47 }
 0xa81   :  { %3093 = vmatmul.f32.gmra.mxu0 %v6435_v0 }
 0xa89   :  { %3096 = vmatmul.f32.gmra.mxu0 %v6436_v43 }
 0xa91   :  { %3099 = vmatmul.f32.gmra.mxu0 %v5597_v11 }
 0xa99   :  { %3102 = vmatmul.f32.gmra.mxu0 %v5675_v44 }
 0xaa1   :  { %3105 = vmatmul.f32.gmra.mxu0 %v2891_v21 }
 0xae6   :  { %v2911_v29 = vpop.f32.mrf.mxu0  ;;  %v2931_v45 = vpop.f32.mrf.mxu1 }
 0xae7   :  { %v2974_v48 = vadd.f32 %v2911_v29, %v6429_v42  ;;  %v2975_v7 = vadd.f32 %v2931_v45, %v6430_v33 }
 0xae9   :  { %v3214_v40 = vmul.f32 -1.442695, %v2974_v48  ;;  %v3215_v51 = vmul.f32 -1.442695, %v2975_v7 }
 0xaeb   :  { %3466 = vpow2.f32 %v3214_v40 }
 0xaec   :  { %3468 = vpow2.f32 %v3215_v51 }
 0xaed   :  { %v2971_v22 = vpop.f32.mrf.mxu3  ;;  %v2951_v36 = vpop.f32.mrf.mxu2 }
 0xaee   :  { %v2977_v11 = vadd.f32 %v2971_v22, %v6431_v53  ;;  %v3088_v44 = vpop.f32.mrf.mxu0  ;;  %v2976_v59 = vadd.f32 %v2951_v36, %v6432_v13 }
 0xaef   :  { %v3089_v35 = vadd.f32 %v5748_v15, %v3088_v44 }
 0xaf0   :  { %v3216_v19 = vmul.f32 -1.442695, %v2977_v11 }
 0xaf1   :  { %v3467_v25 = vpop.eup %3466  ;;  %3112 = vst.msk [vmem:[%s5802_s9] sm:$0xff] %vm236_vm1, %v3089_v35 }
 0xaf2   :  { %v3469_v42 = vpop.eup %3468  ;;  %v2981_v33 = vadd.f32 1.0, %v3467_v25  ;;  %3470 = vpow2.f32 %v3216_v19 }
 0xaf3   :  { %v3000_v38 = vadd.f32 1.0, %v3469_v42 }
 0xaf4   :  { %3472 = vrcp.f32 %v2981_v33  ;;  %v2991_v37 = vand.u32 2147483647, %v2981_v33  ;;  %v2993_v52 = vand.u32 2147483648, %v2981_v33  ;;  %vm2987_vm4 = vweird.f32 %v2981_v33 }
 0xaf5   :  { %3474 = vrcp.f32 %v3000_v38  ;;  %v3012_v10 = vand.u32 2147483648, %v3000_v38  ;;  %v3010_v31 = vand.u32 2147483647, %v3000_v38  ;;  %vm3006_vm5 = vweird.f32 %v3000_v38 }
 0xaf6   :  { %v3091_v6 = vpop.f32.mrf.mxu0  ;;  %v2994_v12 = vor.u32 1.1754944e-38, %v2993_v52  ;;  %vm2992_vm8 = vcmp.eq.f32.partialorder %v2991_v37, 8.507059e+37 }
 0xaf7   :  { %v3092_v53 = vadd.f32 %v5748_v15, %v3091_v6  ;;  %v3013_v16 = vor.u32 1.1754944e-38, %v3012_v10  ;;  %vm3011_vm9 = vcmp.eq.f32.partialorder %v3010_v31, 8.507059e+37 }
 0xaf8   :  { %v3471_v20 = vpop.eup %3470 }
 0xaf9   :  { %v3019_v63 = vadd.f32 1.0, %v3471_v20  ;;  %3113 = vst.msk [vmem:[%s5802_s9 + $0x8] sm:$0xff] %vm236_vm1, %v3092_v53 }
 0xafa   :  { %v3473_v58 = vpop.eup %3472 }
 0xafb   :  { %v3475_v39 = vpop.eup %3474  ;;  %v2983_v41 = vmul.f32 %v3473_v58, %v2981_v33  ;;  %3476 = vrcp.f32 %v3019_v63  ;;  %vm2988_vm2 = vweird.f32 %v3473_v58  ;;  %v3031_v4 = vand.u32 2147483648, %v3019_v63 }
 0xafc   :  { %v3002_v8 = vmul.f32 %v3475_v39, %v3000_v38  ;;  %3478 = vtanh.f32 %v2976_v59  ;;  %vm3007_vm3 = vweird.f32 %v3475_v39  ;;  %vm2989_vm6 = vmor %vm2987_vm4, %vm2988_vm2  ;;  %vm3025_vm11 = vweird.f32 %v3019_v63 }
 0xafd   :  { %v2984_v57 = vsub.f32 1.0, %v2983_v41  ;;  %vm3008_vm7 = vmor %vm3006_vm5, %vm3007_vm3  ;;  %v3029_v5 = vand.u32 2147483647, %v3019_v63 }
 0xafe   :  { %v3003_v50 = vsub.f32 1.0, %v3002_v8  ;;  %v3094_v9 = vpop.f32.mrf.mxu0 }
 0xaff   :  { %v2985_v14 = vmul.f32 %v3473_v58, %v2984_v57  ;;  %v3095_v34 = vadd.f32 %v5748_v15, %v3094_v9  ;;  %vm3030_vm13 = vcmp.eq.f32.partialorder %v3029_v5, 8.507059e+37 }
 0xb00   :  { %v3004_v61 = vmul.f32 %v3475_v39, %v3003_v50 }
 0xb01   :  { %v3477_v18 = vpop.eup %3476  ;;  %v2986_v13 = vadd.f32 %v3473_v58, %v2985_v14  ;;  %3114 = vst.msk [vmem:[%s5802_s9 + $0x10] sm:$0xff] %vm236_vm1, %v3095_v34 }
 0xb02   :  { %v3005_v55 = vadd.f32 %v3475_v39, %v3004_v61  ;;  %v3021_v46 = vmul.f32 %v3477_v18, %v3019_v63  ;;  %v3479_v56 = vpop.eup %3478  ;;  %vm3026_vm10 = vweird.f32 %v3477_v18 }
 0xb03   :  { %v2990_v26 = vsel %vm2989_vm6, %v3473_v58, %v2986_v13  ;;  %vm3027_vm12 = vmor %vm3025_vm11, %vm3026_vm10 }
 0xb04   :  { %v2995_v49 = vsel %vm2992_vm8, %v2994_v12, %v2990_v26  ;;  %v3009_v60 = vsel %vm3008_vm7, %v3475_v39, %v3005_v55  ;;  %v3022_v17 = vsub.f32 1.0, %v3021_v46 }
 0xb05   :  { %v3014_v28 = vsel %vm3011_vm9, %v3013_v16, %v3009_v60  ;;  %v3037_v3 = vmul.f32 %v3479_v56, %v2995_v49 }
 0xb06   :  { %v3036_v30 = vmul.f32 %v3014_v28, %v5734_v23  ;;  %v3097_v62 = vpop.f32.mrf.mxu0  ;;  %v3023_v24 = vmul.f32 %v3477_v18, %v3022_v17  ;;  %v3032_v23 = vor.u32 1.1754944e-38, %v3031_v4 }
 0xb07   :  { %v3098_v2 = vadd.f32 %v5748_v15, %v3097_v62 }
 0xb08   :  { %v3038_v1 = vadd.f32 %v3037_v3, %v3036_v30  ;;  %v3024_v27 = vadd.f32 %v3477_v18, %v3023_v24 }
 0xb09   :  { %3115 = vst.msk [vmem:[%s5802_s9 + $0x18] sm:$0xff] %vm236_vm1, %v3098_v2 }
 0xb0a   :  { %3480 = vtanh.f32 %v3038_v1  ;;  %v3028_v54 = vsel %vm3027_vm12, %v3477_v18, %v3024_v27 }
 0xb0b   :  { %v3033_v0 = vsel %vm3030_vm13, %v3032_v23, %v3028_v54 }
 0xb0e   :  { %v3100_v21 = vpop.f32.mrf.mxu0 }
 0xb0f   :  { %v3101_v32 = vadd.f32 %v5748_v15, %v3100_v21 }
 0xb10   :  { %v3481_v47 = vpop.eup %3480 }
 0xb11   :  { %3116 = vst.msk [vmem:[%s5802_s9 + $0x20] sm:$0xff] %vm236_vm1, %v3101_v32  ;;  %v3040_v43 = vmul.f32 %v3481_v47, %v3033_v0 }
 0xb13   :  { %3108 = vmatmul.f32.gmra.mxu0 %v3040_v43 }
 0xb16   :  { %v3103_v29 = vpop.f32.mrf.mxu0 }
 0xb17   :  { %v3104_v45 = vadd.f32 %v5748_v15, %v3103_v29 }
 0xb19   :  { %3117 = vst.msk [vmem:[%s5802_s9 + $0x28] sm:$0xff] %vm236_vm1, %v3104_v45 }
 0xb1e   :  { %v3106_v48 = vpop.f32.mrf.mxu0 }
 0xb1f   :  { %v3107_v7 = vadd.f32 %v5748_v15, %v3106_v48 }
 0xb21   :  { %3118 = vst.msk [vmem:[%s5802_s9 + $0x30] sm:$0xff] %vm236_vm1, %v3107_v7 }
 0xb90   :  { %v3109_v40 = vpop.f32.mrf.mxu0 }
 0xb91   :  { %v3110_v51 = vadd.f32 %v5748_v15, %v3109_v40 }
 0xb93   :  { %3119 = vst.msk [vmem:[%s5802_s9 + $0x38] sm:$0xff] %vm236_vm1, %v3110_v51 }
 0xb94   :  { %3124 = vsyncpa [#allocation5], 1 }
 0xb95   :  { %3125 = vsyncpa [#allocation7], 1 }

</bundles_post_ra>
